<compile_context>
chip_gen: v7x
topology: tpu7x:2x2x1
jax: 0.10.0
libtpu: 0.0.40
codegen_flags: <defaults>
</compile_context>

<pallas_src>
import functools

import jax
import jax.numpy as jnp
import numpy as np
from jax import lax
from jax.experimental import pallas as pl
from jax.experimental.pallas import tpu as pltpu

# densenet169 hook channel counts
C1, C2, C3, C4 = 64, 256, 512, 1280
C_RED = 512
C_P = C1 + C2 + C3                    # 832  (pooled c1|c2|c3 concat)
C_CAT = C_P + C_RED                   # 1344 (input channels of c5_reduction)
BN_EPS = 1e-5


# --------------------------------------------------------------------------
# Pallas kernel: one (batch b, row-tile t) grid step processes `tile_hw`
# pixels of one image.  Weights use grid-invariant full blocks (no re-DMA),
# the logits output block is resident across t and accumulates the global
# average pool.
# --------------------------------------------------------------------------
def _head_kernel(p123_ref, c4_ref,
                 bn4_ref, w4_ref, b4_ref,
                 bn5p_ref, bn5d_ref, w5p_ref, w5d_ref, b5_ref,
                 wroi_ref, broi_ref, wc6_ref, bc6_ref,
                 roi_ref, out_ref, *, inv_hw):
    f32 = jnp.float32
    bf16 = jnp.bfloat16
    t = pl.program_id(1)

    # c4_reduction: BN(eval) -> ReLU (f32 on VPU) -> 1x1 conv (bf16 MXU).
    c4 = c4_ref[...].astype(f32)                              # (tile, 1280)
    x4 = jnp.maximum(c4 * bn4_ref[0:1, :] + bn4_ref[1:2, :], 0.0)
    c4r = (jnp.dot(x4.astype(bf16), w4_ref[...], preferred_element_type=f32)
           + b4_ref[...])                                     # (tile, 512)

    # c5_reduction on the (virtual) channel concat [p1|p2|p3 | c4r].
    # BN+ReLU is per-channel so it is applied block-wise; the 1x1 conv is
    # split into matching row blocks of w5 (mathematically == concat + conv).
    p = p123_ref[...].astype(f32)                             # (tile, 832)
    ap = jnp.maximum(p * bn5p_ref[0:1, :] + bn5p_ref[1:2, :], 0.0)
    ad = jnp.maximum(c4r * bn5d_ref[0:1, :] + bn5d_ref[1:2, :], 0.0)
    c5 = (jnp.dot(ap.astype(bf16), w5p_ref[...], preferred_element_type=f32)
          + jnp.dot(ad.astype(bf16), w5d_ref[...], preferred_element_type=f32)
          + b5_ref[...])                                      # (tile, 512)

    # roi head: 1x1 conv to a single channel + sigmoid (f32, EUP exp).
    roi_logit = jnp.sum(c5 * wroi_ref[...], axis=-1, keepdims=True) + broi_ref[...]
    roi = 1.0 / (1.0 + jnp.exp(-roi_logit))                   # (tile, 1)
    roi_ref[...] = roi

    # c6 head on roi-gated features; accumulate the per-batch global avg pool.
    gated = (c5 * roi).astype(bf16)
    logits_px = (jnp.dot(gated, wc6_ref[...], preferred_element_type=f32)
                 + bc6_ref[...])                              # (tile, nc)
    part = jnp.sum(logits_px, axis=0, keepdims=True)          # (1, nc)

    @pl.when(t == 0)
    def _():
        out_ref[...] = jnp.zeros_like(out_ref)

    out_ref[...] += part

    @pl.when(t == pl.num_programs(1) - 1)
    def _():
        out_ref[...] *= inv_hw


# --------------------------------------------------------------------------
# Glue
# --------------------------------------------------------------------------
def _avg_pool2(x_nhwc, stride, ho, wo):
    """AvgPool2d(kernel=(2,2), stride=stride) == mean of 4 shifted slabs."""
    acc = None
    for di in (0, 1):
        for dj in (0, 1):
            s = x_nhwc[:, di::stride, dj::stride, :][:, :ho, :wo, :]
            acc = s if acc is None else acc + s
    return acc * 0.25


def _pick_row_tile(hw):
    for t in (256, 128, 64, 32, 16, 8):
        if hw % t == 0:
            return t
    return hw   # single full-hw tile when hw is not a multiple of 8


def densenet_gusa_head(c1_nchw, c2_nchw, c3_nchw, c4_nchw, params):
    bf16 = jnp.bfloat16
    num_classes = params["wc6"].shape[1]

    to_nhwc = lambda x: jnp.transpose(x, (0, 2, 3, 1))
    c1, c2, c3, c4 = map(to_nhwc, (c1_nchw, c2_nchw, c3_nchw, c4_nchw))
    nb, hc, wc_, _ = c4.shape
    hw = hc * wc_
    p_total = nb * hw

    # Pre-averaged pooling branches (4x less activation DMA into the kernel).
    p1 = _avg_pool2(c1, 8, hc, wc_)
    p2 = _avg_pool2(c2, 4, hc, wc_)
    p3 = _avg_pool2(c3, 2, hc, wc_)
    p123 = jnp.concatenate([p1, p2, p3], axis=-1).reshape(nb, hw, C_P).astype(bf16)
    c4f = c4.reshape(nb, hw, C4).astype(bf16)

    # bf16 weights (halves the dominant weight DMA); biases / BN stay f32.
    w4 = params["w4"].astype(bf16)
    w5p = params["w5"][:C_P].astype(bf16)
    w5d = params["w5"][C_P:].astype(bf16)
    wc6 = params["wc6"].astype(bf16)
    bn5p = params["bn5"][:, :C_P]
    bn5d = params["bn5"][:, C_P:]

    inputs = (p123, c4f,
              params["bn4"], w4, params["b4"],
              bn5p, bn5d, w5p, w5d, params["b5"],
              params["wroi"], params["broi"], wc6, params["bc6"])

    tile_hw = _pick_row_tile(hw)
    n_t = hw // tile_hw
    act = lambda c: pl.BlockSpec((None, tile_hw, c), lambda b, t: (b, t, 0))
    wgt = lambda shp: pl.BlockSpec(shp, lambda b, t: (0, 0))

    in_specs = [
        act(C_P), act(C4),
        wgt((2, C4)), wgt((C4, C_RED)), wgt((1, C_RED)),
        wgt((2, C_P)), wgt((2, C_RED)), wgt((C_P, C_RED)),
        wgt((C_RED, C_RED)), wgt((1, C_RED)),
        wgt((1, C_RED)), wgt((1, 1)), wgt((C_RED, num_classes)),
        wgt((1, num_classes)),
    ]
    out_specs = (
        pl.BlockSpec((None, tile_hw, 1), lambda b, t: (b, t, 0)),        # roi
        pl.BlockSpec((None, 1, num_classes), lambda b, t: (b, 0, 0)),    # logits acc
    )

    flops = 2 * p_total * (C4 * C_RED + C_CAT * C_RED
                           + C_RED * num_classes + C_RED)
    bytes_accessed = int(sum(int(np.prod(a.shape)) * a.dtype.itemsize
                             for a in inputs)
                         + p_total * 4 + nb * num_classes * 4)

    roi_flat, logits = pl.pallas_call(
        functools.partial(_head_kernel, inv_hw=1.0 / hw),
        grid=(nb, n_t),
        in_specs=in_specs,
        out_specs=out_specs,
        out_shape=(jax.ShapeDtypeStruct((nb, hw, 1), jnp.float32),
                   jax.ShapeDtypeStruct((nb, 1, num_classes), jnp.float32)),
        compiler_params=pltpu.CompilerParams(
            dimension_semantics=("parallel", "arbitrary"),
            vmem_limit_bytes=32 * 1024 * 1024),
        cost_estimate=pl.CostEstimate(flops=int(flops),
                                      transcendentals=int(p_total),
                                      bytes_accessed=bytes_accessed),
    )(*inputs)

    roi_map = roi_flat.reshape(nb, hc, wc_)[:, None, :, :]
    return logits.reshape(nb, num_classes), roi_map   # == torch (final_output, roi_map)


# --------------------------------------------------------------------------
# Deterministic parameter init (same shapes as the nn.Module's head layers,
# with eval-mode BatchNorm folded into per-channel scale/shift).
# --------------------------------------------------------------------------
def init_params(key, num_classes):
    keys = jax.random.split(key, 10)

    def bn_fold(k, c):
        kg, kb, km, kv = jax.random.split(k, 4)
        gamma = 1.0 + 0.1 * jax.random.normal(kg, (c,), jnp.float32)
        beta = 0.1 * jax.random.normal(kb, (c,), jnp.float32)
        mean = 0.1 * jax.random.normal(km, (c,), jnp.float32)
        var = jax.random.uniform(kv, (c,), jnp.float32, minval=0.5, maxval=1.5)
        scale = gamma / jnp.sqrt(var + BN_EPS)
        shift = beta - mean * scale
        return jnp.stack([scale, shift], axis=0)              # (2, c)

    return dict(
        bn4=bn_fold(keys[0], C4),
        w4=0.02 * jax.random.normal(keys[2], (C4, C_RED), jnp.float32),
        b4=0.01 * jax.random.normal(keys[3], (1, C_RED), jnp.float32),
        bn5=bn_fold(keys[1], C_CAT),
        w5=0.02 * jax.random.normal(keys[4], (C_CAT, C_RED), jnp.float32),
        b5=0.01 * jax.random.normal(keys[5], (1, C_RED), jnp.float32),
        wroi=0.05 * jax.random.normal(keys[6], (1, C_RED), jnp.float32),
        broi=0.01 * jax.random.normal(keys[7], (1, 1), jnp.float32),
        wc6=0.05 * jax.random.normal(keys[8], (C_RED, num_classes), jnp.float32),
        bc6=0.01 * jax.random.normal(keys[9], (1, num_classes), jnp.float32),
    )


# --------------------------------------------------------------------------
# Plain-JAX f32 reference of the same forward (for correctness checking)
# --------------------------------------------------------------------------
def reference_head(c1_nchw, c2_nchw, c3_nchw, c4_nchw, params):
    hi = lax.Precision.HIGHEST

    def pool(x_nchw, stride):
        x = jnp.transpose(x_nchw, (0, 2, 3, 1))
        s = lax.reduce_window(x, 0.0, lax.add, (1, 2, 2, 1),
                              (1, stride, stride, 1), "VALID")
        return s / 4.0

    p1, p2, p3 = pool(c1_nchw, 8), pool(c2_nchw, 4), pool(c3_nchw, 2)
    c4 = jnp.transpose(c4_nchw, (0, 2, 3, 1))
    bn4 = params["bn4"]
    x4 = jnp.maximum(c4 * bn4[0] + bn4[1], 0.0)
    c4r = jnp.einsum("nhwc,cd->nhwd", x4, params["w4"], precision=hi) + params["b4"][0]
    cat = jnp.concatenate([p1, p2, p3, c4r], axis=-1)
    bn5 = params["bn5"]
    x5 = jnp.maximum(cat * bn5[0] + bn5[1], 0.0)
    c5 = jnp.einsum("nhwc,cd->nhwd", x5, params["w5"], precision=hi) + params["b5"][0]
    roi = jax.nn.sigmoid(
        jnp.einsum("nhwc,c->nhw", c5, params["wroi"][0], precision=hi)[..., None]
        + params["broi"][0, 0])
    c6 = jnp.einsum("nhwc,cd->nhwd", c5 * roi, params["wc6"], precision=hi) + params["bc6"][0]
    logits = jnp.mean(c6, axis=(1, 2))
    roi_map = jnp.transpose(roi, (0, 3, 1, 2))
    return logits, roi_map


if __name__ == "__main__":
    key = jax.random.PRNGKey(0)
    k_feat, k_param = jax.random.split(key)
    kf = jax.random.split(k_feat, 4)

    N, NUM_CLASSES = 2, 10
    # Hooked backbone feature maps for an input image x of shape (2, 3, 64, 64)
    # (densenet169: relu0 @ H/2, denseblock1 @ H/4, denseblock2 @ H/8,
    #  denseblock3 @ H/16), synthesized deterministically.
    c1 = jax.random.normal(kf[0], (N, C1, 32, 32), jnp.float32)
    c2 = jax.random.normal(kf[1], (N, C2, 16, 16), jnp.float32)
    c3 = jax.random.normal(kf[2], (N, C3, 8, 8), jnp.float32)
    c4 = jax.random.normal(kf[3], (N, C4, 4, 4), jnp.float32)

    params = init_params(k_param, NUM_CLASSES)

    logits, roi_map = jax.jit(densenet_gusa_head)(c1, c2, c3, c4, params)
    jax.block_until_ready((logits, roi_map))

    ref_logits, ref_roi = reference_head(c1, c2, c3, c4, params)
    # bf16 matmul operands vs f32 reference: tolerance absorbs the quantization.
    np.testing.assert_allclose(np.asarray(logits), np.asarray(ref_logits),
                               rtol=2e-2, atol=2e-2)
    np.testing.assert_allclose(np.asarray(roi_map), np.asarray(ref_roi),
                               rtol=2e-2, atol=2e-2)
    assert logits.shape == (N, NUM_CLASSES)
    assert roi_map.shape == (N, 1, 4, 4)
    print("KERNEL_OK")
</pallas_src>

<mosaic_0001>
module attributes {stable_mosaic.version = 11 : i64} {
  func.func @_head_kernel(%arg0: i32, %arg1: i32, %arg2: memref<1x16x832xbf16, #tpu.memory_space<vmem>>, %arg3: memref<1x16x1280xbf16, #tpu.memory_space<vmem>>, %arg4: memref<2x1280xf32, #tpu.memory_space<vmem>>, %arg5: memref<1280x512xbf16, #tpu.memory_space<vmem>>, %arg6: memref<1x512xf32, #tpu.memory_space<vmem>>, %arg7: memref<2x832xf32, #tpu.memory_space<vmem>>, %arg8: memref<2x512xf32, #tpu.memory_space<vmem>>, %arg9: memref<832x512xbf16, #tpu.memory_space<vmem>>, %arg10: memref<512x512xbf16, #tpu.memory_space<vmem>>, %arg11: memref<1x512xf32, #tpu.memory_space<vmem>>, %arg12: memref<1x512xf32, #tpu.memory_space<vmem>>, %arg13: memref<1x1xf32, #tpu.memory_space<vmem>>, %arg14: memref<512x10xbf16, #tpu.memory_space<vmem>>, %arg15: memref<1x10xf32, #tpu.memory_space<vmem>>, %arg16: memref<1x16x1xf32, #tpu.memory_space<vmem>>, %arg17: memref<1x1x10xf32, #tpu.memory_space<vmem>>) attributes {dimension_semantics = [#tpu.dimension_semantics<parallel>, #tpu.dimension_semantics<arbitrary>], iteration_bounds = array<i64: 2, 1>, scalar_prefetch = 0 : i64, scratch_operands = 0 : i64, tpu.core_type = #tpu.core_type<tc>, window_params = [{transform_indices = @transform_0, window_bounds = array<i64: 1, 16, 832>}, {transform_indices = @transform_1, window_bounds = array<i64: 1, 16, 1280>}, {pipeline_mode = #tpu.pipeline_mode<synchronous>, transform_indices = @transform_2, window_bounds = array<i64: 2, 1280>}, {pipeline_mode = #tpu.pipeline_mode<synchronous>, transform_indices = @transform_3, window_bounds = array<i64: 1280, 512>}, {pipeline_mode = #tpu.pipeline_mode<synchronous>, transform_indices = @transform_4, window_bounds = array<i64: 1, 512>}, {pipeline_mode = #tpu.pipeline_mode<synchronous>, transform_indices = @transform_5, window_bounds = array<i64: 2, 832>}, {pipeline_mode = #tpu.pipeline_mode<synchronous>, transform_indices = @transform_6, window_bounds = array<i64: 2, 512>}, {pipeline_mode = #tpu.pipeline_mode<synchronous>, transform_indices = @transform_7, window_bounds = array<i64: 832, 512>}, {pipeline_mode = #tpu.pipeline_mode<synchronous>, transform_indices = @transform_8, window_bounds = array<i64: 512, 512>}, {pipeline_mode = #tpu.pipeline_mode<synchronous>, transform_indices = @transform_9, window_bounds = array<i64: 1, 512>}, {pipeline_mode = #tpu.pipeline_mode<synchronous>, transform_indices = @transform_10, window_bounds = array<i64: 1, 512>}, {pipeline_mode = #tpu.pipeline_mode<synchronous>, transform_indices = @transform_11, window_bounds = array<i64: 1, 1>}, {pipeline_mode = #tpu.pipeline_mode<synchronous>, transform_indices = @transform_12, window_bounds = array<i64: 512, 10>}, {pipeline_mode = #tpu.pipeline_mode<synchronous>, transform_indices = @transform_13, window_bounds = array<i64: 1, 10>}, {transform_indices = @transform_14, window_bounds = array<i64: 1, 16, 1>}, {transform_indices = @transform_15, window_bounds = array<i64: 1, 1, 10>}]} {
    %c0 = arith.constant 0 : index
    %c0_0 = arith.constant 0 : index
    %c0_1 = arith.constant 0 : index
    %0 = vector.load %arg3[%c0, %c0_0, %c0_1] : memref<1x16x1280xbf16, #tpu.memory_space<vmem>>, vector<1x16x1280xbf16>
    %1 = vector.shape_cast %0 : vector<1x16x1280xbf16> to vector<16x1280xbf16>
    %2 = arith.extf %1 : vector<16x1280xbf16> to vector<16x1280xf32>
    %c0_2 = arith.constant 0 : index
    %c0_3 = arith.constant 0 : index
    %3 = vector.load %arg4[%c0_2, %c0_3] : memref<2x1280xf32, #tpu.memory_space<vmem>>, vector<1x1280xf32>
    %4 = vector.broadcast %3 : vector<1x1280xf32> to vector<16x1280xf32>
    %5 = arith.mulf %2, %4 : vector<16x1280xf32>
    %c1 = arith.constant 1 : index
    %c0_4 = arith.constant 0 : index
    %6 = vector.load %arg4[%c1, %c0_4] : memref<2x1280xf32, #tpu.memory_space<vmem>>, vector<1x1280xf32>
    %7 = vector.broadcast %6 : vector<1x1280xf32> to vector<16x1280xf32>
    %8 = arith.addf %5, %7 : vector<16x1280xf32>
    %cst = arith.constant 0.000000e+00 : f32
    %9 = vector.broadcast %cst : f32 to vector<16x1280xf32>
    %10 = arith.maximumf %8, %9 : vector<16x1280xf32>
    %11 = arith.truncf %10 : vector<16x1280xf32> to vector<16x1280xbf16>
    %c0_5 = arith.constant 0 : index
    %c0_6 = arith.constant 0 : index
    %12 = vector.load %arg5[%c0_5, %c0_6] : memref<1280x512xbf16, #tpu.memory_space<vmem>>, vector<1280x512xbf16>
    %cst_7 = arith.constant dense<0.000000e+00> : vector<16x512xf32>
    %13 = tpu.matmul %11, %12, %cst_7 {dimension_numbers = #tpu.dot_dimension_numbers<[1], [0], [0], [1], [0, 0, 1, 1], [], []>} : vector<16x1280xbf16>, vector<1280x512xbf16>, vector<16x512xf32> -> vector<16x512xf32>
    %c0_8 = arith.constant 0 : index
    %c0_9 = arith.constant 0 : index
    %14 = vector.load %arg6[%c0_8, %c0_9] : memref<1x512xf32, #tpu.memory_space<vmem>>, vector<1x512xf32>
    %15 = vector.broadcast %14 : vector<1x512xf32> to vector<16x512xf32>
    %16 = arith.addf %13, %15 : vector<16x512xf32>
    %c0_10 = arith.constant 0 : index
    %c0_11 = arith.constant 0 : index
    %c0_12 = arith.constant 0 : index
    %17 = vector.load %arg2[%c0_10, %c0_11, %c0_12] : memref<1x16x832xbf16, #tpu.memory_space<vmem>>, vector<1x16x832xbf16>
    %18 = vector.shape_cast %17 : vector<1x16x832xbf16> to vector<16x832xbf16>
    %19 = arith.extf %18 : vector<16x832xbf16> to vector<16x832xf32>
    %c0_13 = arith.constant 0 : index
    %c0_14 = arith.constant 0 : index
    %20 = vector.load %arg7[%c0_13, %c0_14] : memref<2x832xf32, #tpu.memory_space<vmem>>, vector<1x832xf32>
    %21 = vector.broadcast %20 : vector<1x832xf32> to vector<16x832xf32>
    %22 = arith.mulf %19, %21 : vector<16x832xf32>
    %c1_15 = arith.constant 1 : index
    %c0_16 = arith.constant 0 : index
    %23 = vector.load %arg7[%c1_15, %c0_16] : memref<2x832xf32, #tpu.memory_space<vmem>>, vector<1x832xf32>
    %24 = vector.broadcast %23 : vector<1x832xf32> to vector<16x832xf32>
    %25 = arith.addf %22, %24 : vector<16x832xf32>
    %cst_17 = arith.constant 0.000000e+00 : f32
    %26 = vector.broadcast %cst_17 : f32 to vector<16x832xf32>
    %27 = arith.maximumf %25, %26 : vector<16x832xf32>
    %c0_18 = arith.constant 0 : index
    %c0_19 = arith.constant 0 : index
    %28 = vector.load %arg8[%c0_18, %c0_19] : memref<2x512xf32, #tpu.memory_space<vmem>>, vector<1x512xf32>
    %29 = vector.broadcast %28 : vector<1x512xf32> to vector<16x512xf32>
    %30 = arith.mulf %16, %29 : vector<16x512xf32>
    %c1_20 = arith.constant 1 : index
    %c0_21 = arith.constant 0 : index
    %31 = vector.load %arg8[%c1_20, %c0_21] : memref<2x512xf32, #tpu.memory_space<vmem>>, vector<1x512xf32>
    %32 = vector.broadcast %31 : vector<1x512xf32> to vector<16x512xf32>
    %33 = arith.addf %30, %32 : vector<16x512xf32>
    %cst_22 = arith.constant 0.000000e+00 : f32
    %34 = vector.broadcast %cst_22 : f32 to vector<16x512xf32>
    %35 = arith.maximumf %33, %34 : vector<16x512xf32>
    %36 = arith.truncf %27 : vector<16x832xf32> to vector<16x832xbf16>
    %c0_23 = arith.constant 0 : index
    %c0_24 = arith.constant 0 : index
    %37 = vector.load %arg9[%c0_23, %c0_24] : memref<832x512xbf16, #tpu.memory_space<vmem>>, vector<832x512xbf16>
    %cst_25 = arith.constant dense<0.000000e+00> : vector<16x512xf32>
    %38 = tpu.matmul %36, %37, %cst_25 {dimension_numbers = #tpu.dot_dimension_numbers<[1], [0], [0], [1], [0, 0, 1, 1], [], []>} : vector<16x832xbf16>, vector<832x512xbf16>, vector<16x512xf32> -> vector<16x512xf32>
    %39 = arith.truncf %35 : vector<16x512xf32> to vector<16x512xbf16>
    %c0_26 = arith.constant 0 : index
    %c0_27 = arith.constant 0 : index
    %40 = vector.load %arg10[%c0_26, %c0_27] : memref<512x512xbf16, #tpu.memory_space<vmem>>, vector<512x512xbf16>
    %cst_28 = arith.constant dense<0.000000e+00> : vector<16x512xf32>
    %41 = tpu.matmul %39, %40, %cst_28 {dimension_numbers = #tpu.dot_dimension_numbers<[1], [0], [0], [1], [0, 0, 1, 1], [], []>} : vector<16x512xbf16>, vector<512x512xbf16>, vector<16x512xf32> -> vector<16x512xf32>
    %42 = arith.addf %38, %41 : vector<16x512xf32>
    %c0_29 = arith.constant 0 : index
    %c0_30 = arith.constant 0 : index
    %43 = vector.load %arg11[%c0_29, %c0_30] : memref<1x512xf32, #tpu.memory_space<vmem>>, vector<1x512xf32>
    %44 = vector.broadcast %43 : vector<1x512xf32> to vector<16x512xf32>
    %45 = arith.addf %42, %44 : vector<16x512xf32>
    %c0_31 = arith.constant 0 : index
    %c0_32 = arith.constant 0 : index
    %46 = vector.load %arg12[%c0_31, %c0_32] : memref<1x512xf32, #tpu.memory_space<vmem>>, vector<1x512xf32>
    %47 = vector.broadcast %46 : vector<1x512xf32> to vector<16x512xf32>
    %48 = arith.mulf %45, %47 : vector<16x512xf32>
    %cst_33 = arith.constant dense<0.000000e+00> : vector<16xf32>
    %49 = vector.multi_reduction <add>, %48, %cst_33 [1] : vector<16x512xf32> to vector<16xf32>
    %50 = vector.shape_cast %49 : vector<16xf32> to vector<16x1xf32>
    %c0_34 = arith.constant 0 : index
    %c0_35 = arith.constant 0 : index
    %51 = vector.load %arg13[%c0_34, %c0_35] : memref<1x1xf32, #tpu.memory_space<vmem>>, vector<1x1xf32>
    %52 = vector.broadcast %51 : vector<1x1xf32> to vector<16x1xf32>
    %53 = arith.addf %50, %52 : vector<16x1xf32>
    %cst_36 = arith.constant 0.000000e+00 : f32
    %54 = vector.broadcast %cst_36 : f32 to vector<16x1xf32>
    %55 = arith.subf %54, %53 : vector<16x1xf32>
    %56 = math.exp %55 : vector<16x1xf32>
    %cst_37 = arith.constant 1.000000e+00 : f32
    %57 = vector.broadcast %cst_37 : f32 to vector<16x1xf32>
    %58 = arith.addf %57, %56 : vector<16x1xf32>
    %cst_38 = arith.constant 1.000000e+00 : f32
    %59 = vector.broadcast %cst_38 : f32 to vector<16x1xf32>
    %60 = arith.divf %59, %58 : vector<16x1xf32>
    %c0_39 = arith.constant 0 : index
    %c0_40 = arith.constant 0 : index
    %c0_41 = arith.constant 0 : index
    %61 = vector.load %arg16[%c0_39, %c0_40, %c0_41] : memref<1x16x1xf32, #tpu.memory_space<vmem>>, vector<1x16x1xf32>
    %62 = vector.shape_cast %61 : vector<1x16x1xf32> to vector<16x1xf32>
    %63 = vector.shape_cast %60 : vector<16x1xf32> to vector<1x16x1xf32>
    tpu.vector_store %arg16[%c0_39, %c0_40, %c0_41], %63 {strides = array<i32>} : memref<1x16x1xf32, #tpu.memory_space<vmem>>, vector<1x16x1xf32>,
    %64 = vector.broadcast %60 : vector<16x1xf32> to vector<16x512xf32>
    %65 = arith.mulf %45, %64 : vector<16x512xf32>
    %66 = arith.truncf %65 : vector<16x512xf32> to vector<16x512xbf16>
    %c0_42 = arith.constant 0 : index
    %c0_43 = arith.constant 0 : index
    %67 = vector.load %arg14[%c0_42, %c0_43] : memref<512x10xbf16, #tpu.memory_space<vmem>>, vector<512x10xbf16>
    %cst_44 = arith.constant dense<0.000000e+00> : vector<16x10xf32>
    %68 = tpu.matmul %66, %67, %cst_44 {dimension_numbers = #tpu.dot_dimension_numbers<[1], [0], [0], [1], [0, 0, 1, 1], [], []>} : vector<16x512xbf16>, vector<512x10xbf16>, vector<16x10xf32> -> vector<16x10xf32>
    %c0_45 = arith.constant 0 : index
    %c0_46 = arith.constant 0 : index
    %69 = vector.load %arg15[%c0_45, %c0_46] : memref<1x10xf32, #tpu.memory_space<vmem>>, vector<1x10xf32>
    %70 = vector.broadcast %69 : vector<1x10xf32> to vector<16x10xf32>
    %71 = arith.addf %68, %70 : vector<16x10xf32>
    %cst_47 = arith.constant dense<0.000000e+00> : vector<10xf32>
    %72 = vector.multi_reduction <add>, %71, %cst_47 [0] : vector<16x10xf32> to vector<10xf32>
    %73 = vector.shape_cast %72 : vector<10xf32> to vector<1x10xf32>
    %c0_i32 = arith.constant 0 : i32
    %74 = arith.cmpi eq, %arg1, %c0_i32 : i32
    %75 = arith.extui %74 : i1 to i32
    %c0_i32_48 = arith.constant 0 : i32
    %76 = arith.cmpi ne, %75, %c0_i32_48 : i32
    scf.if %76 {
      %cst_57 = arith.constant 0.000000e+00 : f32
      %86 = vector.broadcast %cst_57 : f32 to vector<1x10xf32>
      %c0_58 = arith.constant 0 : index
      %c0_59 = arith.constant 0 : index
      %c0_60 = arith.constant 0 : index
      %87 = vector.load %arg17[%c0_58, %c0_59, %c0_60] : memref<1x1x10xf32, #tpu.memory_space<vmem>>, vector<1x1x10xf32>
      %88 = vector.shape_cast %87 : vector<1x1x10xf32> to vector<1x10xf32>
      %89 = vector.shape_cast %86 : vector<1x10xf32> to vector<1x1x10xf32>
      tpu.vector_store %arg17[%c0_58, %c0_59, %c0_60], %89 {strides = array<i32>} : memref<1x1x10xf32, #tpu.memory_space<vmem>>, vector<1x1x10xf32>,
    } else {
    }
    %c0_49 = arith.constant 0 : index
    %c0_50 = arith.constant 0 : index
    %c0_51 = arith.constant 0 : index
    %77 = vector.load %arg17[%c0_49, %c0_50, %c0_51] : memref<1x1x10xf32, #tpu.memory_space<vmem>>, vector<1x1x10xf32>
    %78 = vector.shape_cast %77 : vector<1x1x10xf32> to vector<1x10xf32>
    %79 = arith.addf %78, %73 : vector<1x10xf32>
    %c0_52 = arith.constant 0 : index
    %c0_53 = arith.constant 0 : index
    %c0_54 = arith.constant 0 : index
    %80 = vector.load %arg17[%c0_52, %c0_53, %c0_54] : memref<1x1x10xf32, #tpu.memory_space<vmem>>, vector<1x1x10xf32>
    %81 = vector.shape_cast %80 : vector<1x1x10xf32> to vector<1x10xf32>
    %82 = vector.shape_cast %79 : vector<1x10xf32> to vector<1x1x10xf32>
    tpu.vector_store %arg17[%c0_52, %c0_53, %c0_54], %82 {strides = array<i32>} : memref<1x1x10xf32, #tpu.memory_space<vmem>>, vector<1x1x10xf32>,
    %c0_i32_55 = arith.constant 0 : i32
    %83 = arith.cmpi eq, %arg1, %c0_i32_55 : i32
    %84 = arith.extui %83 : i1 to i32
    %c0_i32_56 = arith.constant 0 : i32
    %85 = arith.cmpi ne, %84, %c0_i32_56 : i32
    scf.if %85 {
      %c0_57 = arith.constant 0 : index
      %c0_58 = arith.constant 0 : index
      %c0_59 = arith.constant 0 : index
      %86 = vector.load %arg17[%c0_57, %c0_58, %c0_59] : memref<1x1x10xf32, #tpu.memory_space<vmem>>, vector<1x1x10xf32>
      %87 = vector.shape_cast %86 : vector<1x1x10xf32> to vector<1x10xf32>
      %cst_60 = arith.constant 6.250000e-02 : f32
      %88 = vector.broadcast %cst_60 : f32 to vector<1x10xf32>
      %89 = arith.mulf %87, %88 : vector<1x10xf32>
      %c0_61 = arith.constant 0 : index
      %c0_62 = arith.constant 0 : index
      %c0_63 = arith.constant 0 : index
      %90 = vector.load %arg17[%c0_61, %c0_62, %c0_63] : memref<1x1x10xf32, #tpu.memory_space<vmem>>, vector<1x1x10xf32>
      %91 = vector.shape_cast %90 : vector<1x1x10xf32> to vector<1x10xf32>
      %92 = vector.shape_cast %89 : vector<1x10xf32> to vector<1x1x10xf32>
      tpu.vector_store %arg17[%c0_61, %c0_62, %c0_63], %92 {strides = array<i32>} : memref<1x1x10xf32, #tpu.memory_space<vmem>>, vector<1x1x10xf32>,
    } else {
    }
    return
  }
  func.func @transform_0(%arg0: i32, %arg1: i32) -> (i32, i32, i32) {
    %c0_i32 = arith.constant 0 : i32
    %c0_i32_0 = arith.constant 0 : i32
    return %arg0, %arg1, %c0_i32 : i32, i32, i32
  }
  func.func @transform_1(%arg0: i32, %arg1: i32) -> (i32, i32, i32) {
    %c0_i32 = arith.constant 0 : i32
    %c0_i32_0 = arith.constant 0 : i32
    return %arg0, %arg1, %c0_i32 : i32, i32, i32
  }
  func.func @transform_2(%arg0: i32, %arg1: i32) -> (i32, i32) {
    %c0_i32 = arith.constant 0 : i32
    %c0_i32_0 = arith.constant 0 : i32
    %c0_i32_1 = arith.constant 0 : i32
    return %c0_i32, %c0_i32_0 : i32, i32
  }
  func.func @transform_3(%arg0: i32, %arg1: i32) -> (i32, i32) {
    %c0_i32 = arith.constant 0 : i32
    %c0_i32_0 = arith.constant 0 : i32
    %c0_i32_1 = arith.constant 0 : i32
    return %c0_i32, %c0_i32_0 : i32, i32
  }
  func.func @transform_4(%arg0: i32, %arg1: i32) -> (i32, i32) {
    %c0_i32 = arith.constant 0 : i32
    %c0_i32_0 = arith.constant 0 : i32
    %c0_i32_1 = arith.constant 0 : i32
    return %c0_i32, %c0_i32_0 : i32, i32
  }
  func.func @transform_5(%arg0: i32, %arg1: i32) -> (i32, i32) {
    %c0_i32 = arith.constant 0 : i32
    %c0_i32_0 = arith.constant 0 : i32
    %c0_i32_1 = arith.constant 0 : i32
    return %c0_i32, %c0_i32_0 : i32, i32
  }
  func.func @transform_6(%arg0: i32, %arg1: i32) -> (i32, i32) {
    %c0_i32 = arith.constant 0 : i32
    %c0_i32_0 = arith.constant 0 : i32
    %c0_i32_1 = arith.constant 0 : i32
    return %c0_i32, %c0_i32_0 : i32, i32
  }
  func.func @transform_7(%arg0: i32, %arg1: i32) -> (i32, i32) {
    %c0_i32 = arith.constant 0 : i32
    %c0_i32_0 = arith.constant 0 : i32
    %c0_i32_1 = arith.constant 0 : i32
    return %c0_i32, %c0_i32_0 : i32, i32
  }
  func.func @transform_8(%arg0: i32, %arg1: i32) -> (i32, i32) {
    %c0_i32 = arith.constant 0 : i32
    %c0_i32_0 = arith.constant 0 : i32
    %c0_i32_1 = arith.constant 0 : i32
    return %c0_i32, %c0_i32_0 : i32, i32
  }
  func.func @transform_9(%arg0: i32, %arg1: i32) -> (i32, i32) {
    %c0_i32 = arith.constant 0 : i32
    %c0_i32_0 = arith.constant 0 : i32
    %c0_i32_1 = arith.constant 0 : i32
    return %c0_i32, %c0_i32_0 : i32, i32
  }
  func.func @transform_10(%arg0: i32, %arg1: i32) -> (i32, i32) {
    %c0_i32 = arith.constant 0 : i32
    %c0_i32_0 = arith.constant 0 : i32
    %c0_i32_1 = arith.constant 0 : i32
    return %c0_i32, %c0_i32_0 : i32, i32
  }
  func.func @transform_11(%arg0: i32, %arg1: i32) -> (i32, i32) {
    %c0_i32 = arith.constant 0 : i32
    %c0_i32_0 = arith.constant 0 : i32
    %c0_i32_1 = arith.constant 0 : i32
    return %c0_i32, %c0_i32_0 : i32, i32
  }
  func.func @transform_12(%arg0: i32, %arg1: i32) -> (i32, i32) {
    %c0_i32 = arith.constant 0 : i32
    %c0_i32_0 = arith.constant 0 : i32
    %c0_i32_1 = arith.constant 0 : i32
    return %c0_i32, %c0_i32_0 : i32, i32
  }
  func.func @transform_13(%arg0: i32, %arg1: i32) -> (i32, i32) {
    %c0_i32 = arith.constant 0 : i32
    %c0_i32_0 = arith.constant 0 : i32
    %c0_i32_1 = arith.constant 0 : i32
    return %c0_i32, %c0_i32_0 : i32, i32
  }
  func.func @transform_14(%arg0: i32, %arg1: i32) -> (i32, i32, i32) {
    %c0_i32 = arith.constant 0 : i32
    %c0_i32_0 = arith.constant 0 : i32
    return %arg0, %arg1, %c0_i32 : i32, i32, i32
  }
  func.func @transform_15(%arg0: i32, %arg1: i32) -> (i32, i32, i32) {
    %c0_i32 = arith.constant 0 : i32
    %c0_i32_0 = arith.constant 0 : i32
    %c0_i32_1 = arith.constant 0 : i32
    return %arg0, %c0_i32, %c0_i32_0 : i32, i32, i32
  }
}

</mosaic_0001>

<bundles_post_ra>
// kernel: densenet_gusa_head.1
= control target key start
LH: loop header
LB: loop body
LE: loop exit
PB: predicated region body
PF: predicated region fallthrough
CT: control target
= control target key end

     0   :  { %s11144_s0 = inlined_call_operand.vmem [shape: bf16[2,16,832], index: 0, kind: input, shape index: {}]   ;;  %s11145_s1 = inlined_call_operand.vmem [shape: bf16[2,16,1280], index: 1, kind: input, shape index: {}]   ;;  %s11146_s2 = inlined_call_operand.vmem [shape: f32[2,1280], index: 2, kind: input, shape index: {}]   ;;  %s11147_s3 = inlined_call_operand.vmem [shape: bf16[1280,512], index: 3, kind: input, shape index: {}]   ;;  %s11148_s4 = inlined_call_operand.vmem [shape: f32[1,512], index: 4, kind: input, shape index: {}]   ;;  %s11149_s5 = inlined_call_operand.vmem [shape: f32[2,832], index: 5, kind: input, shape index: {}]   ;;  %s11150_s6 = inlined_call_operand.vmem [shape: f32[2,512], index: 6, kind: input, shape index: {}]   ;;  %s11151_s7 = inlined_call_operand.vmem [shape: bf16[832,512], index: 7, kind: input, shape index: {}]   ;;  %s11152_s8 = inlined_call_operand.vmem [shape: bf16[512,512], index: 8, kind: input, shape index: {}]   ;;  %s11153_s9 = inlined_call_operand.vmem [shape: f32[1,512], index: 9, kind: input, shape index: {}]   ;;  %s11154_s10 = inlined_call_operand.vmem [shape: f32[1,512], index: 10, kind: input, shape index: {}]   ;;  %s11155_s11 = inlined_call_operand.<no memory space> [shape: f32[1,1], index: 11, kind: input, shape index: {}]   ;;  %s11156_s12 = inlined_call_operand.vmem [shape: bf16[512,10], index: 12, kind: input, shape index: {}]   ;;  %s11157_s13 = inlined_call_operand.vmem [shape: f32[1,10], index: 13, kind: input, shape index: {}]   ;;  %s11158_s14 = inlined_call_operand.vmem [shape: f32[2,16,1], index: 14, kind: output, shape index: {0}]   ;;  %s11159_s15 = inlined_call_operand.hbm [shape: f32[2,1,10], index: 15, kind: output, shape index: {1}]  }
   0x1   :  { %11165 = sst [smem:[#allocation12_spill]] %s11145_s1  ;;  %v21_v0 = vstv %s11155_s11 }
   0x2   :  { %22 = vst [vmem:[#allocation2] sm:$0x1] %v21_v0 }
   0x3   :  { %23 = vsyncpa [#allocation4], 0 }
   0x4   :  { %25 = vsyncpa [#allocation4 + $0x1], 0  ;;  %s8657_s20 = smov 0   ;;  %s8659_s21 = smov 0  }
   0x5   :  { %s8661_s22 = smov 0   ;;  %s8663_s23 = smov 0  }
   0x6   :  { %s8665_s24 = smov 0   ;;  %s8667_s25 = smov 0  }
   0x7 LB: > { %11166 = sst [smem:[#allocation6_spill]] %s8549_s20  ;;  %s6570_s11 = sadd.s32 4294967295, %s8569_s25   ;;  %s8569_s25 = sphi %s8667_s25, %s31_s25   ;;  %s8565_s24 = sphi %s8665_s24, %s11180_s24   ;;  %s8561_s23 = sphi %s8663_s23, %s11179_s23   ;;  %s8557_s22 = sphi %s8661_s22, %s11178_s22   ;;  %s8553_s21 = sphi %s8659_s21, %s11182_s21   ;;  %s8549_s20 = sphi %s8657_s20, %s11181_s20  }
   0x8   : > { %11167 = sst [smem:[#allocation7_spill]] %s8557_s22  ;;  %s6571_s26 = sadd.s32 4294967294, %s8569_s25  }
   0x9   : > { %11168 = sst [smem:[#allocation8_spill]] %s8565_s24  ;;  %s43_s27 = sadd.s32 1, %s8565_s24 }
   0xa   : > { %s386_s28 = sadd.s32 1, %s8557_s22  ;;  %p45_p0 = scmp.ge.s32.totalorder %s43_s27, 2 }
   0xb   : > { %p396_p1 = scmp.ne.s32.totalorder %s8557_s22, %s8553_s21  ;;  %p397_p2 = scmp.eq.s32.totalorder %s6570_s11, 1 }
   0xc   : > { %p402_p3 = scmp.ne.s32.totalorder %s8553_s21, %s8549_s20  ;;  %s11184_s27 = smov (%p45_p0, %s43_s27), 0 }
   0xd   : > { %11169 = sst [smem:[#allocation9_spill]] %s11184_s27  ;;  %p8697_p4 = por %p397_p2, %p396_p1 }
   0xe   : > { %p403_p5 = scmp.eq.s32.totalorder %s6571_s26, 1  ;;  %s383_s30 = ssub.s32 %s8565_s24, %s11184_s27 }
   0xf   : > { %p6574_p6 = scmp.ge.s32.totalorder %s8569_s25, 1  ;;  %p384_p7 = scmp.eq.s32.totalorder %s383_s30, 0 }
  0x10   : > { %p8704_p8 = por %p403_p5, %p402_p3  ;;  %p485_p9 = scmp.lt.s32.totalorder %s8569_s25, 3 }
  0x11   : > { %s8710_s17 = scalar_select %p384_p7, %s8557_s22, %s386_s28  }
  0x12   : > { %s11171_s16 = scalar_select %p8704_p8, 1, 0 }
  0x13   : > { %11173 = sst [smem:[#allocation11_spill]] %s8710_s17  ;;  %p486_p10 = pnand %p6574_p6, %p485_p9 }
  0x14   : > { %11172 = sst [smem:[#allocation10_spill]] %s11171_s16  ;;  %v7465_v1 = vld [vmem:[%s11147_s3 + $0x4] ss:$16 sps:$4 sm:$0xff] (!%p486_p10)   ;;  %v7467_v2 = vld [vmem:[%s11147_s3 + $0xc] ss:$16 sps:$4 sm:$0xff] (!%p486_p10)   ;;  %p557_p11 = scmp.lt.s32.totalorder (!%p486_p10), %s8561_s23, 1  ;;  %v624_v38 = vlaneseq (!%p486_p10) }
  0x15   : > { %489 = sbr.rel (%p486_p10) target bundleno = 1633 (0x661), region = 76  ;;  %2742 = vmatprep.subr.bf16.mxu0 (!%p486_p10), %v7465_v1  ;;  %v7469_v3 = vld [vmem:[%s11147_s3] ss:$16 sps:$4 sm:$0xff] (!%p486_p10)   ;;  %v7470_v4 = vld [vmem:[%s11147_s3 + $0x8] ss:$16 sps:$4 sm:$0xff] (!%p486_p10)   ;;  %2957 = vmatprep.subr.bf16.mxu1 (!%p486_p10), %v7467_v2  ;;  %s11174_s1 = sld [smem:[#allocation12_spill]] (!%p486_p10) }
  0x16   : > { %v7471_v5 = vld [vmem:[%s11147_s3 + $0x24] ss:$16 sps:$4 sm:$0xff] (!%p486_p10)   ;;  %2743 = vmatpush1.bf16.msra.mxu0 (!%p486_p10), %v7469_v3  ;;  %2958 = vmatpush1.bf16.msra.mxu1 (!%p486_p10), %v7470_v4  ;;  %v7473_v6 = vld [vmem:[%s11147_s3 + $0x2c] ss:$16 sps:$4 sm:$0xff] (!%p486_p10)   ;;  %v7475_v7 = vld [vmem:[%s11147_s3 + $0x20] ss:$16 sps:$4 sm:$0xff] (!%p486_p10)  }
  0x17   : > { %2744 = vmatprep.subr.bf16.mxu0 (!%p486_p10), %v7471_v5  ;;  %v7476_v8 = vld [vmem:[%s11147_s3 + $0x28] ss:$16 sps:$4 sm:$0xff] (!%p486_p10)   ;;  %2959 = vmatprep.subr.bf16.mxu1 (!%p486_p10), %v7473_v6  ;;  %v7477_v9 = vld [vmem:[%s11147_s3 + $0x44] ss:$16 sps:$4 sm:$0xff] (!%p486_p10)   ;;  %v7479_v10 = vld [vmem:[%s11147_s3 + $0x4c] ss:$16 sps:$4 sm:$0xff] (!%p486_p10)  }
  0x18   : > { %v7481_v11 = vld [vmem:[%s11147_s3 + $0x40] ss:$16 sps:$4 sm:$0xff] (!%p486_p10)   ;;  %v7482_v12 = vld [vmem:[%s11147_s3 + $0x48] ss:$16 sps:$4 sm:$0xff] (!%p486_p10)   ;;  %v7483_v13 = vld [vmem:[%s11147_s3 + $0x64] ss:$16 sps:$4 sm:$0xff] (!%p486_p10)  }
  0x19   : > { %v7485_v14 = vld [vmem:[%s11147_s3 + $0x6c] ss:$16 sps:$4 sm:$0xff] (!%p486_p10)   ;;  %v7487_v15 = vld [vmem:[%s11147_s3 + $0x60] ss:$16 sps:$4 sm:$0xff] (!%p486_p10)   ;;  %v7488_v16 = vld [vmem:[%s11147_s3 + $0x68] ss:$16 sps:$4 sm:$0xff] (!%p486_p10)  }
  0x1a   : > { %2745 = vmatpush1.bf16.msra.mxu0 (!%p486_p10), %v7475_v7  ;;  %2960 = vmatpush1.bf16.msra.mxu1 (!%p486_p10), %v7476_v8  ;;  %v7489_v17 = vld [vmem:[%s11147_s3 + $0x84] ss:$16 sps:$4 sm:$0xff] (!%p486_p10)   ;;  %v7491_v18 = vld [vmem:[%s11147_s3 + $0x8c] ss:$16 sps:$4 sm:$0xff] (!%p486_p10)   ;;  %v7493_v19 = vld [vmem:[%s11147_s3 + $0x80] ss:$16 sps:$4 sm:$0xff] (!%p486_p10)  }
  0x1b   : > { %2746 = vmatprep.subr.bf16.mxu0 (!%p486_p10), %v7477_v9  ;;  %2961 = vmatprep.subr.bf16.mxu1 (!%p486_p10), %v7479_v10  ;;  %v7494_v20 = vld [vmem:[%s11147_s3 + $0x88] ss:$16 sps:$4 sm:$0xff] (!%p486_p10)   ;;  %v7495_v21 = vld [vmem:[%s11147_s3 + $0xa4] ss:$16 sps:$4 sm:$0xff] (!%p486_p10)   ;;  %v7497_v22 = vld [vmem:[%s11147_s3 + $0xac] ss:$16 sps:$4 sm:$0xff] (!%p486_p10)  }
  0x1c   : > { %v7499_v23 = vld [vmem:[%s11147_s3 + $0xa0] ss:$16 sps:$4 sm:$0xff]   ;;  %v7500_v24 = vld [vmem:[%s11147_s3 + $0xa8] ss:$16 sps:$4 sm:$0xff]   ;;  %v7501_v25 = vld [vmem:[%s11147_s3 + $0xc4] ss:$16 sps:$4 sm:$0xff]  }
  0x1d   : > { %v7503_v26 = vld [vmem:[%s11147_s3 + $0xcc] ss:$16 sps:$4 sm:$0xff]   ;;  %v7505_v27 = vld [vmem:[%s11147_s3 + $0xc0] ss:$16 sps:$4 sm:$0xff]   ;;  %v7506_v28 = vld [vmem:[%s11147_s3 + $0xc8] ss:$16 sps:$4 sm:$0xff]  }
  0x1e   : > { %2747 = vmatpush1.bf16.msra.mxu0 %v7481_v11  ;;  %2962 = vmatpush1.bf16.msra.mxu1 %v7482_v12  ;;  %v7507_v29 = vld [vmem:[%s11147_s3 + $0xe4] ss:$16 sps:$4 sm:$0xff]   ;;  %v7509_v30 = vld [vmem:[%s11147_s3 + $0xec] ss:$16 sps:$4 sm:$0xff]   ;;  %v7511_v31 = vld [vmem:[%s11147_s3 + $0xe0] ss:$16 sps:$4 sm:$0xff]  }
  0x1f   : > { %2748 = vmatprep.subr.bf16.mxu0 %v7483_v13  ;;  %2963 = vmatprep.subr.bf16.mxu1 %v7485_v14  ;;  %v7512_v32 = vld [vmem:[%s11147_s3 + $0xe8] ss:$16 sps:$4 sm:$0xff]   ;;  %v7513_v33 = vld [vmem:[%s11147_s3 + $0x104] ss:$16 sps:$4 sm:$0xff]   ;;  %v7515_v34 = vld [vmem:[%s11147_s3 + $0x10c] ss:$16 sps:$4 sm:$0xff]  }
  0x20   : > { %v7517_v35 = vld [vmem:[%s11147_s3 + $0x100] ss:$16 sps:$4 sm:$0xff]   ;;  %v7518_v36 = vld [vmem:[%s11147_s3 + $0x108] ss:$16 sps:$4 sm:$0xff]   ;;  %s8822_s20 = scalar_select %p557_p11, %s8561_s23, 1  ;;  %v8840_v43 = vshrl.u32 %v624_v38, 7 }
  0x21   : > { %v7519_v37 = vld [vmem:[%s11147_s3 + $0x124] ss:$16 sps:$4 sm:$0xff]   ;;  %v7521_v39 = vld [vmem:[%s11147_s3 + $0x12c] ss:$16 sps:$4 sm:$0xff]   ;;  %v7523_v40 = vld [vmem:[%s11147_s3 + $0x120] ss:$16 sps:$4 sm:$0xff]  }
  0x22   : > { %2749 = vmatpush1.bf16.msra.mxu0 %v7487_v15  ;;  %2964 = vmatpush1.bf16.msra.mxu1 %v7488_v16  ;;  %s7405_s28 = smul.u32 80, %s8822_s20  ;;  %v7524_v41 = vld [vmem:[%s11147_s3 + $0x128] ss:$16 sps:$4 sm:$0xff]   ;;  %v7525_v42 = vld [vmem:[%s11147_s3 + $0x144] ss:$16 sps:$4 sm:$0xff]   ;;  %v8860_v48 = vsub.s32 1, %v8840_v43 }
  0x23   : > { %2750 = vmatprep.subr.bf16.mxu0 %v7489_v17  ;;  %2965 = vmatprep.subr.bf16.mxu1 %v7491_v18  ;;  %v7527_v44 = vld [vmem:[%s11147_s3 + $0x14c] ss:$16 sps:$4 sm:$0xff]   ;;  %v7529_v45 = vld [vmem:[%s11147_s3 + $0x140] ss:$16 sps:$4 sm:$0xff]   ;;  %v7530_v46 = vld [vmem:[%s11147_s3 + $0x148] ss:$16 sps:$4 sm:$0xff]  }
  0x24   : > { %s8854_s11 = scalar_lea.vmem %s11174_s1, %s7405_s28  ;;  %v7531_v47 = vld [vmem:[%s11147_s3 + $0x164] ss:$16 sps:$4 sm:$0xff]   ;;  %v7533_v49 = vld [vmem:[%s11147_s3 + $0x16c] ss:$16 sps:$4 sm:$0xff]   ;;  %v7535_v50 = vld [vmem:[%s11147_s3 + $0x160] ss:$16 sps:$4 sm:$0xff]  }
  0x25   : > { %v7536_v51 = vld [vmem:[%s11147_s3 + $0x168] ss:$16 sps:$4 sm:$0xff]   ;;  %v589_v52 = vld [vmem:[%s8854_s11] sm:$0xff]  ;;  %v8884_v57 = vsub.s32 0, %v8840_v43  ;;  %v7539_v62 = vld [vmem:[%s11147_s3 + $0x18c] ss:$16 sps:$4 sm:$0xff]  }
  0x26   : > { %2751 = vmatpush1.bf16.msra.mxu0 %v7493_v19  ;;  %2966 = vmatpush1.bf16.msra.mxu1 %v7494_v20  ;;  %v594_v53 = vld [vmem:[%s8854_s11 + $0x28] sm:$0xff]  ;;  %v600_v54 = vunpack.c.h.bf16 %v589_v52  ;;  %v7537_v58 = vld [vmem:[%s11147_s3 + $0x184] ss:$16 sps:$4 sm:$0xff]   ;;  %v7541_v1 = vld [vmem:[%s11147_s3 + $0x180] ss:$16 sps:$4 sm:$0xff]   ;;  %v599_v3 = vunpack.c.l.bf16 %v589_v52  ;;  %s7404_s30 = smul.u32 56, %s8822_s20 }
  0x27   : > { %2752 = vmatprep.subr.bf16.mxu0 %v7495_v21  ;;  %2967 = vmatprep.subr.bf16.mxu1 %v7497_v22  ;;  %v8876_v55 = vld [vmem:[%s11146_s2] ss:$2 sm:$0xff]  ;;  %v8881_v56 = vld [vmem:[%s11146_s2 + $0x1] ss:$2 sm:$0xff]  ;;  %v610_v59 = vunpack.c.h.bf16 %v594_v53  ;;  %v609_v4 = vunpack.c.l.bf16 %v594_v53  ;;  %vm5579_vm0 = vcmask 523264   ;;  %s7279_s24 = sshll.u32 %s8822_s20, 4 }
  0x28   : > { %v631_v60 = vrot.slane %v8876_v55, %v8860_v48  ;;  %v707_v61 = vrot.slane %v8881_v56, %v8860_v48  ;;  %v7542_v2 = vld [vmem:[%s11147_s3 + $0x188] ss:$16 sps:$4 sm:$0xff]   ;;  %v627_v5 = vrot.slane %v8876_v55, %v8884_v57  ;;  %v7543_v6 = vld [vmem:[%s11147_s3 + $0x1a4] ss:$16 sps:$4 sm:$0xff]   ;;  %v7545_v9 = vld [vmem:[%s11147_s3 + $0x1ac] ss:$16 sps:$4 sm:$0xff]   ;;  %v703_v15 = vrot.slane %v8881_v56, %v8884_v57  ;;  %s10179_s1 = scalar_lea.vmem %s11144_s0, %s7404_s30  ;;  %s586_s17 = scalar_lea.vmem %s11158_s14, %s7279_s24 }
  0x29   : > { %v7547_v12 = vld [vmem:[%s11147_s3 + $0x1a0] ss:$16 sps:$4 sm:$0xff]   ;;  %v7548_v16 = vld [vmem:[%s11147_s3 + $0x1a8] ss:$16 sps:$4 sm:$0xff]   ;;  %v7549_v18 = vld [vmem:[%s11147_s3 + $0x1c4] ss:$16 sps:$4 sm:$0xff]  }
  0x2a   : > { %2753 = vmatpush1.bf16.msra.mxu0 %v7499_v23  ;;  %2968 = vmatpush1.bf16.msra.mxu1 %v7500_v24  ;;  %v675_v63 = vmul.f32 %v631_v60, %v600_v54  ;;  %v685_v0 = vmul.f32 %v631_v60, %v610_v59  ;;  %v674_v13 = vmul.f32 %v627_v5, %v599_v3  ;;  %v7551_v19 = vld [vmem:[%s11147_s3 + $0x1cc] ss:$16 sps:$4 sm:$0xff]   ;;  %v7553_v20 = vld [vmem:[%s11147_s3 + $0x1c0] ss:$16 sps:$4 sm:$0xff]   ;;  %v7554_v23 = vld [vmem:[%s11147_s3 + $0x1c8] ss:$16 sps:$4 sm:$0xff]  }
  0x2b   : > { %2754 = vmatprep.subr.bf16.mxu0 %v7501_v25  ;;  %2969 = vmatprep.subr.bf16.mxu1 %v7503_v26  ;;  %v684_v14 = vmul.f32 %v627_v5, %v609_v4  ;;  %v7555_v24 = vld [vmem:[%s11147_s3 + $0x1e4] ss:$16 sps:$4 sm:$0xff]   ;;  %v7557_v25 = vld [vmem:[%s11147_s3 + $0x1ec] ss:$16 sps:$4 sm:$0xff]   ;;  %v7559_v26 = vld [vmem:[%s11147_s3 + $0x1e0] ss:$16 sps:$4 sm:$0xff]  }
  0x2c   : > { %v751_v7 = vadd.f32 %v707_v61, %v675_v63  ;;  %v761_v8 = vadd.f32 %v707_v61, %v685_v0  ;;  %v750_v21 = vadd.f32 %v703_v15, %v674_v13  ;;  %v7570_v38 = vld [vmem:[%s11147_s3 + $0x228] ss:$16 sps:$4 sm:$0xff]   ;;  %v7593_v53 = vld [vmem:[%s11147_s3 + $0x2a4] ss:$16 sps:$4 sm:$0xff]   ;;  %v7596_v54 = vld [vmem:[%s11147_s3 + $0x2ac] ss:$16 sps:$4 sm:$0xff]  }
  0x2d   : > { %v760_v22 = vadd.f32 %v703_v15, %v684_v14  ;;  %v7588_v52 = vld [vmem:[%s11147_s3 + $0x288] ss:$16 sps:$4 sm:$0xff]   ;;  %v7591_v59 = vld [vmem:[%s11147_s3 + $0x2a0] ss:$16 sps:$4 sm:$0xff]   ;;  %v7599_v61 = vld [vmem:[%s11147_s3 + $0x2c4] ss:$16 sps:$4 sm:$0xff]  }
  0x2e   : > { %2755 = vmatpush1.bf16.msra.mxu0 %v7505_v27  ;;  %2970 = vmatpush1.bf16.msra.mxu1 %v7506_v28  ;;  %v771_v10 = vmax.f32 %v751_v7, 0.0  ;;  %v781_v11 = vmax.f32 %v761_v8, 0.0  ;;  %v770_v27 = vmax.f32 %v750_v21, 0.0  ;;  %v7594_v60 = vld [vmem:[%s11147_s3 + $0x2a8] ss:$16 sps:$4 sm:$0xff]   ;;  %vm6018_vm1 = vcmask 7168  }
  0x2f   : > { %2756 = vmatprep.subr.bf16.mxu0 %v7507_v29  ;;  %2971 = vmatprep.subr.bf16.mxu1 %v7509_v30  ;;  %v780_v28 = vmax.f32 %v760_v22, 0.0  ;;  %v7560_v29 = vld [vmem:[%s11147_s3 + $0x1e8] ss:$16 sps:$4 sm:$0xff]   ;;  %v7563_v30 = vld [vmem:[%s11147_s3 + $0x204] ss:$16 sps:$4 sm:$0xff]   ;;  %vm6402_vm2 = vcmask 73728  }
  0x30   : > { %v791_v17 = vpack.c.bf16 %v781_v11, %v771_v10  ;;  %v7597_v63 = vld [vmem:[%s11147_s3 + $0x2c0] ss:$16 sps:$4 sm:$0xff]   ;;  %v7600_v3 = vld [vmem:[%s11147_s3 + $0x2c8] ss:$16 sps:$4 sm:$0xff]   ;;  %v7605_v4 = vld [vmem:[%s11147_s3 + $0x2e4] ss:$16 sps:$4 sm:$0xff]  }
  0x31   : > { %v7608_v8 = vld [vmem:[%s11147_s3 + $0x2ec] ss:$16 sps:$4 sm:$0xff]   ;;  %v7603_v11 = vld [vmem:[%s11147_s3 + $0x2e0] ss:$16 sps:$4 sm:$0xff]   ;;  %v7611_v13 = vld [vmem:[%s11147_s3 + $0x304] ss:$16 sps:$4 sm:$0xff]  }
  0x32   : > { %2757 = vmatpush1.bf16.msra.mxu0 %v7511_v31  ;;  %2972 = vmatpush1.bf16.msra.mxu1 %v7512_v32  ;;  %v7566_v31 = vld [vmem:[%s11147_s3 + $0x20c] ss:$16 sps:$4 sm:$0xff]   ;;  %v7561_v32 = vld [vmem:[%s11147_s3 + $0x200] ss:$16 sps:$4 sm:$0xff]   ;;  %v7617_v21 = vld [vmem:[%s11147_s3 + $0x324] ss:$16 sps:$4 sm:$0xff]  }
  0x33   : > { %2758 = vmatprep.subr.bf16.mxu0 %v7513_v33  ;;  %2973 = vmatprep.subr.bf16.mxu1 %v7515_v34  ;;  %v790_v33 = vpack.c.bf16 %v780_v28, %v770_v27  ;;  %v7564_v34 = vld [vmem:[%s11147_s3 + $0x208] ss:$16 sps:$4 sm:$0xff]   ;;  %v7626_v27 = vld [vmem:[%s11147_s3 + $0x34c] ss:$16 sps:$4 sm:$0xff]   ;;  %v7621_v28 = vld [vmem:[%s11147_s3 + $0x340] ss:$16 sps:$4 sm:$0xff]  }
  0x34   : > { %2774 = vmatprep.mubr.bf16.mxu0 %v791_v17  ;;  %2989 = vmatprep.mubr.bf16.mxu1 %v791_v17  ;;  %vm6388_vm3 = vcmask 80896   ;;  %s7276_s22 = sshll.u32 %s8561_s23, 4  ;;  %s8573_s23 = smov [#allocation3]  }
  0x35   : > { %s11093_s27 = scalar_lea.hbm %s11159_s15, %s7276_s22 }
  0x36   : > { %2759 = vmatpush1.bf16.msra.mxu0 %v7517_v35  ;;  %2974 = vmatpush1.bf16.msra.mxu1 %v7518_v36  ;;  %v7569_v35 = vld [vmem:[%s11147_s3 + $0x224] ss:$16 sps:$4 sm:$0xff]   ;;  %v7572_v36 = vld [vmem:[%s11147_s3 + $0x22c] ss:$16 sps:$4 sm:$0xff]  }
  0x37   : > { %2760 = vmatprep.subr.bf16.mxu0 %v7519_v37  ;;  %2975 = vmatprep.subr.bf16.mxu1 %v7521_v39  ;;  %v7567_v37 = vld [vmem:[%s11147_s3 + $0x220] ss:$16 sps:$4 sm:$0xff]   ;;  %v7575_v39 = vld [vmem:[%s11147_s3 + $0x244] ss:$16 sps:$4 sm:$0xff]  }
  0x3a   : > { %2761 = vmatpush1.bf16.msra.mxu0 %v7523_v40  ;;  %2976 = vmatpush1.bf16.msra.mxu1 %v7524_v41  ;;  %v7578_v40 = vld [vmem:[%s11147_s3 + $0x24c] ss:$16 sps:$4 sm:$0xff]   ;;  %v7573_v41 = vld [vmem:[%s11147_s3 + $0x240] ss:$16 sps:$4 sm:$0xff]  }
  0x3b   : > { %2762 = vmatprep.subr.bf16.mxu0 %v7525_v42  ;;  %2977 = vmatprep.subr.bf16.mxu1 %v7527_v44  ;;  %v7576_v42 = vld [vmem:[%s11147_s3 + $0x248] ss:$16 sps:$4 sm:$0xff]   ;;  %v7581_v44 = vld [vmem:[%s11147_s3 + $0x264] ss:$16 sps:$4 sm:$0xff]  }
  0x3e   : > { %2763 = vmatpush1.bf16.msra.mxu0 %v7529_v45  ;;  %2978 = vmatpush1.bf16.msra.mxu1 %v7530_v46  ;;  %v7584_v45 = vld [vmem:[%s11147_s3 + $0x26c] ss:$16 sps:$4 sm:$0xff]   ;;  %v7579_v46 = vld [vmem:[%s11147_s3 + $0x260] ss:$16 sps:$4 sm:$0xff]  }
  0x3f   : > { %2764 = vmatprep.subr.bf16.mxu0 %v7531_v47  ;;  %2979 = vmatprep.subr.bf16.mxu1 %v7533_v49  ;;  %v7582_v47 = vld [vmem:[%s11147_s3 + $0x268] ss:$16 sps:$4 sm:$0xff]   ;;  %v7587_v49 = vld [vmem:[%s11147_s3 + $0x284] ss:$16 sps:$4 sm:$0xff]  }
  0x42   : > { %2765 = vmatpush1.bf16.msra.mxu0 %v7535_v50  ;;  %2980 = vmatpush1.bf16.msra.mxu1 %v7536_v51  ;;  %v7590_v50 = vld [vmem:[%s11147_s3 + $0x28c] ss:$16 sps:$4 sm:$0xff]   ;;  %v7585_v51 = vld [vmem:[%s11147_s3 + $0x280] ss:$16 sps:$4 sm:$0xff]  }
  0x43   : > { %2766 = vmatprep.subr.bf16.mxu0 %v7537_v58  ;;  %2981 = vmatprep.subr.bf16.mxu1 %v7539_v62  ;;  %v9009_v58 = vsub.s32 3, %v8840_v43  ;;  %v7602_v62 = vld [vmem:[%s11147_s3 + $0x2cc] ss:$16 sps:$4 sm:$0xff]  }
  0x45   : > { %v639_v0 = vrot.slane %v8876_v55, %v9009_v58  ;;  %v715_v7 = vrot.slane %v8881_v56, %v9009_v58 }
  0x46   : > { %2767 = vmatpush1.bf16.msra.mxu0 %v7541_v1  ;;  %2982 = vmatpush1.bf16.msra.mxu1 %v7542_v2  ;;  %v9029_v1 = vld [vmem:[%s8854_s11 + $0x8] sm:$0xff]  ;;  %v9032_v2 = vld [vmem:[%s8854_s11 + $0x30] sm:$0xff] }
  0x47   : > { %2768 = vmatprep.subr.bf16.mxu0 %v7543_v6  ;;  %2983 = vmatprep.subr.bf16.mxu1 %v7545_v9  ;;  %v602_v5 = vunpack.c.h.bf16 %v9029_v1  ;;  %v612_v6 = vunpack.c.h.bf16 %v9032_v2 }
  0x49   : > { %v677_v9 = vmul.f32 %v639_v0, %v602_v5  ;;  %v687_v10 = vmul.f32 %v639_v0, %v612_v6  ;;  %v7654_v0 = vld [vmem:[%s11147_s3 + $0x3e8] ss:$16 sps:$4 sm:$0xff]   ;;  %v9165_v5 = vsub.s32 5, %v8840_v43  ;;  %v7657_v6 = vld [vmem:[%s11147_s3 + $0x400] ss:$16 sps:$4 sm:$0xff]  }
  0x4a   : > { %2769 = vmatpush1.bf16.msra.mxu0 %v7547_v12  ;;  %2984 = vmatpush1.bf16.msra.mxu1 %v7548_v16  ;;  %v7606_v12 = vld [vmem:[%s11147_s3 + $0x2e8] ss:$16 sps:$4 sm:$0xff]   ;;  %v7614_v16 = vld [vmem:[%s11147_s3 + $0x30c] ss:$16 sps:$4 sm:$0xff]  }
  0x4b   : > { %2770 = vmatprep.subr.bf16.mxu0 %v7549_v18  ;;  %2985 = vmatprep.subr.bf16.mxu1 %v7551_v19  ;;  %v753_v14 = vadd.f32 %v715_v7, %v677_v9  ;;  %v763_v15 = vadd.f32 %v715_v7, %v687_v10  ;;  %v7609_v19 = vld [vmem:[%s11147_s3 + $0x300] ss:$16 sps:$4 sm:$0xff]   ;;  %v7660_v7 = vld [vmem:[%s11147_s3 + $0x408] ss:$16 sps:$4 sm:$0xff]   ;;  %v7665_v9 = vld [vmem:[%s11147_s3 + $0x424] ss:$16 sps:$4 sm:$0xff]  }
  0x4c   : > { %v7668_v10 = vld [vmem:[%s11147_s3 + $0x42c] ss:$16 sps:$4 sm:$0xff]  }
  0x4d   : > { %v773_v17 = vmax.f32 %v753_v14, 0.0  ;;  %v783_v18 = vmax.f32 %v763_v15, 0.0  ;;  %v723_v15 = vrot.slane %v8881_v56, %v9165_v5 }
  0x4e   : > { %2771 = vmatpush1.bf16.msra.mxu0 %v7553_v20  ;;  %2986 = vmatpush1.bf16.msra.mxu1 %v7554_v23  ;;  %v7612_v20 = vld [vmem:[%s11147_s3 + $0x308] ss:$16 sps:$4 sm:$0xff]   ;;  %v7620_v23 = vld [vmem:[%s11147_s3 + $0x32c] ss:$16 sps:$4 sm:$0xff]  }
  0x4f   : > { %2772 = vmatprep.subr.bf16.mxu0 %v7555_v24  ;;  %2987 = vmatprep.subr.bf16.mxu1 %v7557_v25  ;;  %v793_v22 = vpack.c.bf16 %v783_v18, %v773_v17  ;;  %v7615_v24 = vld [vmem:[%s11147_s3 + $0x320] ss:$16 sps:$4 sm:$0xff]   ;;  %v7618_v25 = vld [vmem:[%s11147_s3 + $0x328] ss:$16 sps:$4 sm:$0xff]   ;;  %v7671_v18 = vld [vmem:[%s11147_s3 + $0x444] ss:$16 sps:$4 sm:$0xff]  }
  0x52   : > { %2773 = vmatpush1.bf16.msra.mxu0 %v7559_v26  ;;  %2988 = vmatpush1.bf16.msra.mxu1 %v7560_v29  ;;  %v7623_v26 = vld [vmem:[%s11147_s3 + $0x344] ss:$16 sps:$4 sm:$0xff]   ;;  %v7624_v29 = vld [vmem:[%s11147_s3 + $0x348] ss:$16 sps:$4 sm:$0xff]  }
  0x53   : > { %2785 = vmatprep.subr.bf16.mxu0 %v7563_v30  ;;  %3000 = vmatprep.subr.bf16.mxu1 %v7566_v31  ;;  %v7629_v30 = vld [vmem:[%s11147_s3 + $0x364] ss:$16 sps:$4 sm:$0xff]   ;;  %v7632_v31 = vld [vmem:[%s11147_s3 + $0x36c] ss:$16 sps:$4 sm:$0xff]  }
  0x55   : > { %2775 = vmatmul.mubr.bf16.vlgmr.msra.gmra.mrb[0].mxu0 %v790_v33  ;;  %2990 = vmatmul.mubr.bf16.vlgmr.msra.gmra.mrb[0].mxu1 %v790_v33  ;;  %v7630_v33 = vld [vmem:[%s11147_s3 + $0x368] ss:$16 sps:$4 sm:$0xff]  }
  0x56   : > { %2786 = vmatpush1.bf16.msra.mxu0 %v7561_v32  ;;  %3001 = vmatpush1.bf16.msra.mxu1 %v7564_v34  ;;  %v7627_v32 = vld [vmem:[%s11147_s3 + $0x360] ss:$16 sps:$4 sm:$0xff]   ;;  %v9102_v34 = vsub.s32 2, %v8840_v43 }
  0x57   : > { %2787 = vmatprep.subr.bf16.mxu0 %v7569_v35  ;;  %3002 = vmatprep.subr.bf16.mxu1 %v7572_v36  ;;  %v7635_v35 = vld [vmem:[%s11147_s3 + $0x384] ss:$16 sps:$4 sm:$0xff]   ;;  %v7638_v36 = vld [vmem:[%s11147_s3 + $0x38c] ss:$16 sps:$4 sm:$0xff]  }
  0x58   : > { %2817 = vmatprep.mubr.bf16.mxu0 %v793_v22  ;;  %3032 = vmatprep.mubr.bf16.mxu1 %v793_v22 }
  0x5a   : > { %2788 = vmatpush1.bf16.msra.mxu0 %v7567_v37  ;;  %3003 = vmatpush1.bf16.msra.mxu1 %v7570_v38  ;;  %v7633_v37 = vld [vmem:[%s11147_s3 + $0x380] ss:$16 sps:$4 sm:$0xff]   ;;  %v7636_v38 = vld [vmem:[%s11147_s3 + $0x388] ss:$16 sps:$4 sm:$0xff]  }
  0x5b   : > { %2789 = vmatprep.subr.bf16.mxu0 %v7575_v39  ;;  %3004 = vmatprep.subr.bf16.mxu1 %v7578_v40  ;;  %v601_v39 = vunpack.c.l.bf16 %v9029_v1  ;;  %v611_v40 = vunpack.c.l.bf16 %v9032_v2 }
  0x5e   : > { %2790 = vmatpush1.bf16.msra.mxu0 %v7573_v41  ;;  %3005 = vmatpush1.bf16.msra.mxu1 %v7576_v42  ;;  %v635_v41 = vrot.slane %v8876_v55, %v9102_v34  ;;  %v7641_v42 = vld [vmem:[%s11147_s3 + $0x3a4] ss:$16 sps:$4 sm:$0xff]  }
  0x5f   : > { %2791 = vmatprep.subr.bf16.mxu0 %v7581_v44  ;;  %3006 = vmatprep.subr.bf16.mxu1 %v7584_v45  ;;  %v7644_v44 = vld [vmem:[%s11147_s3 + $0x3ac] ss:$16 sps:$4 sm:$0xff]   ;;  %v7639_v45 = vld [vmem:[%s11147_s3 + $0x3a0] ss:$16 sps:$4 sm:$0xff]  }
  0x62   : > { %2792 = vmatpush1.bf16.msra.mxu0 %v7579_v46  ;;  %3007 = vmatpush1.bf16.msra.mxu1 %v7582_v47  ;;  %v7642_v46 = vld [vmem:[%s11147_s3 + $0x3a8] ss:$16 sps:$4 sm:$0xff]   ;;  %v676_v47 = vmul.f32 %v635_v41, %v601_v39  ;;  %v7687_v39 = vld [vmem:[%s11147_s3 + $0x4a0] ss:$16 sps:$4 sm:$0xff]  }
  0x63   : > { %2793 = vmatprep.subr.bf16.mxu0 %v7587_v49  ;;  %3008 = vmatprep.subr.bf16.mxu1 %v7590_v50  ;;  %v686_v49 = vmul.f32 %v635_v41, %v611_v40  ;;  %v711_v50 = vrot.slane %v8881_v56, %v9102_v34  ;;  %v7674_v56 = vld [vmem:[%s11147_s3 + $0x44c] ss:$16 sps:$4 sm:$0xff]   ;;  %v7690_v40 = vld [vmem:[%s11147_s3 + $0x4a8] ss:$16 sps:$4 sm:$0xff]   ;;  %v7695_v41 = vld [vmem:[%s11147_s3 + $0x4c4] ss:$16 sps:$4 sm:$0xff]  }
  0x66   : > { %2794 = vmatpush1.bf16.msra.mxu0 %v7585_v51  ;;  %3009 = vmatpush1.bf16.msra.mxu1 %v7588_v52  ;;  %v7647_v51 = vld [vmem:[%s11147_s3 + $0x3c4] ss:$16 sps:$4 sm:$0xff]   ;;  %v7650_v52 = vld [vmem:[%s11147_s3 + $0x3cc] ss:$16 sps:$4 sm:$0xff]  }
  0x67   : > { %2795 = vmatprep.subr.bf16.mxu0 %v7593_v53  ;;  %3010 = vmatprep.subr.bf16.mxu1 %v7596_v54  ;;  %v7645_v53 = vld [vmem:[%s11147_s3 + $0x3c0] ss:$16 sps:$4 sm:$0xff]   ;;  %v7648_v54 = vld [vmem:[%s11147_s3 + $0x3c8] ss:$16 sps:$4 sm:$0xff]  }
  0x6a   : > { %2796 = vmatpush1.bf16.msra.mxu0 %v7591_v59  ;;  %3011 = vmatpush1.bf16.msra.mxu1 %v7594_v60  ;;  %v752_v59 = vadd.f32 %v711_v50, %v676_v47  ;;  %v762_v60 = vadd.f32 %v711_v50, %v686_v49  ;;  %v7704_v47 = vld [vmem:[%s11147_s3 + $0x4ec] ss:$16 sps:$4 sm:$0xff]   ;;  %v7699_v49 = vld [vmem:[%s11147_s3 + $0x4e0] ss:$16 sps:$4 sm:$0xff]   ;;  %v7702_v50 = vld [vmem:[%s11147_s3 + $0x4e8] ss:$16 sps:$4 sm:$0xff]  }
  0x6b   : > { %2797 = vmatprep.subr.bf16.mxu0 %v7599_v61  ;;  %3012 = vmatprep.subr.bf16.mxu1 %v7602_v62  ;;  %v7653_v61 = vld [vmem:[%s11147_s3 + $0x3e4] ss:$16 sps:$4 sm:$0xff]   ;;  %v7656_v62 = vld [vmem:[%s11147_s3 + $0x3ec] ss:$16 sps:$4 sm:$0xff]  }
  0x6c   : > { %v772_v1 = vmax.f32 %v752_v59, 0.0  ;;  %v782_v2 = vmax.f32 %v762_v60, 0.0  ;;  %v7713_v59 = vld [vmem:[%s11147_s3 + $0x524] ss:$16 sps:$4 sm:$0xff]   ;;  %v7716_v60 = vld [vmem:[%s11147_s3 + $0x52c] ss:$16 sps:$4 sm:$0xff]  }
  0x6e   : > { %2798 = vmatpush1.bf16.msra.mxu0 %v7597_v63  ;;  %3013 = vmatpush1.bf16.msra.mxu1 %v7600_v3  ;;  %v7651_v63 = vld [vmem:[%s11147_s3 + $0x3e0] ss:$16 sps:$4 sm:$0xff]   ;;  %v7659_v3 = vld [vmem:[%s11147_s3 + $0x404] ss:$16 sps:$4 sm:$0xff]  }
  0x6f   : > { %2799 = vmatprep.subr.bf16.mxu0 %v7605_v4  ;;  %3014 = vmatprep.subr.bf16.mxu1 %v7608_v8  ;;  %v7662_v4 = vld [vmem:[%s11147_s3 + $0x40c] ss:$16 sps:$4 sm:$0xff]   ;;  %v792_v8 = vpack.c.bf16 %v782_v2, %v772_v1  ;;  %v7717_v1 = vld [vmem:[%s11147_s3 + $0x540] ss:$16 sps:$4 sm:$0xff]   ;;  %v7720_v2 = vld [vmem:[%s11147_s3 + $0x548] ss:$16 sps:$4 sm:$0xff]  }
  0x72   : > { %2800 = vmatpush1.bf16.msra.mxu0 %v7603_v11  ;;  %3015 = vmatpush1.bf16.msra.mxu1 %v7606_v12  ;;  %v647_v11 = vrot.slane %v8876_v55, %v9165_v5  ;;  %v9182_v12 = vld [vmem:[%s8854_s11 + $0x10] sm:$0xff]  ;;  %v7666_v55 = vld [vmem:[%s11147_s3 + $0x428] ss:$16 sps:$4 sm:$0xff]  }
  0x73   : > { %2801 = vmatprep.subr.bf16.mxu0 %v7611_v13  ;;  %3016 = vmatprep.subr.bf16.mxu1 %v7614_v16  ;;  %v9185_v13 = vld [vmem:[%s8854_s11 + $0x38] sm:$0xff]  ;;  %v604_v14 = vunpack.c.h.bf16 %v9182_v12  ;;  %v7663_v16 = vld [vmem:[%s11147_s3 + $0x420] ss:$16 sps:$4 sm:$0xff]  }
  0x74   : > { %v614_v17 = vunpack.c.h.bf16 %v9185_v13 }
  0x76   : > { %2802 = vmatpush1.bf16.msra.mxu0 %v7609_v19  ;;  %3017 = vmatpush1.bf16.msra.mxu1 %v7612_v20  ;;  %v679_v19 = vmul.f32 %v647_v11, %v604_v14  ;;  %v689_v20 = vmul.f32 %v647_v11, %v614_v17  ;;  %v7729_v11 = vld [vmem:[%s11147_s3 + $0x580] ss:$16 sps:$4 sm:$0xff]   ;;  %v7732_v14 = vld [vmem:[%s11147_s3 + $0x588] ss:$16 sps:$4 sm:$0xff]  }
  0x77   : > { %2803 = vmatprep.subr.bf16.mxu0 %v7617_v21  ;;  %3018 = vmatprep.subr.bf16.mxu1 %v7620_v23  ;;  %v7669_v21 = vld [vmem:[%s11147_s3 + $0x440] ss:$16 sps:$4 sm:$0xff]   ;;  %v7672_v23 = vld [vmem:[%s11147_s3 + $0x448] ss:$16 sps:$4 sm:$0xff]  }
  0x78   : > { %v755_v22 = vadd.f32 %v723_v15, %v679_v19  ;;  %v9338_v17 = vld [vmem:[%s11146_s2] ss:$2 sm:$0xff] }
  0x79   : > { %v9346_v19 = vld [vmem:[%s8854_s11 + $0x40] sm:$0xff] }
  0x7a   : > { %2804 = vmatpush1.bf16.msra.mxu0 %v7615_v24  ;;  %3019 = vmatpush1.bf16.msra.mxu1 %v7618_v25  ;;  %v7677_v24 = vld [vmem:[%s11147_s3 + $0x464] ss:$16 sps:$4 sm:$0xff]   ;;  %v765_v25 = vadd.f32 %v723_v15, %v689_v20  ;;  %v654_v15 = vsub.s32 7, %v8840_v43 }
  0x7b   : > { %2805 = vmatprep.subr.bf16.mxu0 %v7623_v26  ;;  %3020 = vmatprep.subr.bf16.mxu1 %v7626_v27  ;;  %v7680_v26 = vld [vmem:[%s11147_s3 + $0x46c] ss:$16 sps:$4 sm:$0xff]   ;;  %v775_v27 = vmax.f32 %v755_v22, 0.0 }
  0x7c   : > { %v655_v22 = vrot.slane %v9338_v17, %v654_v15 }
  0x7e   : > { %2806 = vmatpush1.bf16.msra.mxu0 %v7621_v28  ;;  %3021 = vmatpush1.bf16.msra.mxu1 %v7624_v29  ;;  %v785_v28 = vmax.f32 %v765_v25, 0.0  ;;  %v7675_v29 = vld [vmem:[%s11147_s3 + $0x460] ss:$16 sps:$4 sm:$0xff]  }
  0x7f   : > { %2807 = vmatprep.subr.bf16.mxu0 %v7629_v30  ;;  %3022 = vmatprep.subr.bf16.mxu1 %v7632_v31  ;;  %v7678_v30 = vld [vmem:[%s11147_s3 + $0x468] ss:$16 sps:$4 sm:$0xff]  }
  0x80   : > { %v795_v31 = vpack.c.bf16 %v785_v28, %v775_v27  ;;  %v7738_v28 = vld [vmem:[%s11147_s3 + $0x5a8] ss:$16 sps:$4 sm:$0xff]  }
  0x82   : > { %2808 = vmatpush1.bf16.msra.mxu0 %v7627_v32  ;;  %3023 = vmatpush1.bf16.msra.mxu1 %v7630_v33  ;;  %v7683_v32 = vld [vmem:[%s11147_s3 + $0x484] ss:$16 sps:$4 sm:$0xff]   ;;  %v7686_v33 = vld [vmem:[%s11147_s3 + $0x48c] ss:$16 sps:$4 sm:$0xff]  }
  0x83   : > { %2809 = vmatprep.subr.bf16.mxu0 %v7635_v35  ;;  %3024 = vmatprep.subr.bf16.mxu1 %v7638_v36  ;;  %v7681_v35 = vld [vmem:[%s11147_s3 + $0x480] ss:$16 sps:$4 sm:$0xff]   ;;  %v7684_v36 = vld [vmem:[%s11147_s3 + $0x488] ss:$16 sps:$4 sm:$0xff]  }
  0x86   : > { %2810 = vmatpush1.bf16.msra.mxu0 %v7633_v37  ;;  %3025 = vmatpush1.bf16.msra.mxu1 %v7636_v38  ;;  %v7689_v37 = vld [vmem:[%s11147_s3 + $0x4a4] ss:$16 sps:$4 sm:$0xff]   ;;  %v7692_v38 = vld [vmem:[%s11147_s3 + $0x4ac] ss:$16 sps:$4 sm:$0xff]  }
  0x87   : > { %2811 = vmatprep.subr.bf16.mxu0 %v7641_v42  ;;  %3026 = vmatprep.subr.bf16.mxu1 %v7644_v44  ;;  %v7698_v42 = vld [vmem:[%s11147_s3 + $0x4cc] ss:$16 sps:$4 sm:$0xff]   ;;  %v7693_v44 = vld [vmem:[%s11147_s3 + $0x4c0] ss:$16 sps:$4 sm:$0xff]  }
  0x8a   : > { %2812 = vmatpush1.bf16.msra.mxu0 %v7639_v45  ;;  %3027 = vmatpush1.bf16.msra.mxu1 %v7642_v46  ;;  %v7696_v45 = vld [vmem:[%s11147_s3 + $0x4c8] ss:$16 sps:$4 sm:$0xff]   ;;  %v7701_v46 = vld [vmem:[%s11147_s3 + $0x4e4] ss:$16 sps:$4 sm:$0xff]  }
  0x8b   : > { %2813 = vmatprep.subr.bf16.mxu0 %v7647_v51  ;;  %3028 = vmatprep.subr.bf16.mxu1 %v7650_v52  ;;  %v7707_v51 = vld [vmem:[%s11147_s3 + $0x504] ss:$16 sps:$4 sm:$0xff]   ;;  %v7710_v52 = vld [vmem:[%s11147_s3 + $0x50c] ss:$16 sps:$4 sm:$0xff]  }
  0x8e   : > { %2814 = vmatpush1.bf16.msra.mxu0 %v7645_v53  ;;  %3029 = vmatpush1.bf16.msra.mxu1 %v7648_v54  ;;  %v7705_v53 = vld [vmem:[%s11147_s3 + $0x500] ss:$16 sps:$4 sm:$0xff]   ;;  %v7708_v54 = vld [vmem:[%s11147_s3 + $0x508] ss:$16 sps:$4 sm:$0xff]  }
  0x8f   : > { %2815 = vmatprep.subr.bf16.mxu0 %v7653_v61  ;;  %3030 = vmatprep.subr.bf16.mxu1 %v7656_v62  ;;  %v7711_v61 = vld [vmem:[%s11147_s3 + $0x520] ss:$16 sps:$4 sm:$0xff]   ;;  %v7714_v62 = vld [vmem:[%s11147_s3 + $0x528] ss:$16 sps:$4 sm:$0xff]  }
  0x92   : > { %2816 = vmatpush1.bf16.msra.mxu0 %v7651_v63  ;;  %3031 = vmatpush1.bf16.msra.mxu1 %v7654_v0  ;;  %v7719_v63 = vld [vmem:[%s11147_s3 + $0x544] ss:$16 sps:$4 sm:$0xff]   ;;  %v7722_v0 = vld [vmem:[%s11147_s3 + $0x54c] ss:$16 sps:$4 sm:$0xff]  }
  0x93   : > { %2828 = vmatprep.subr.bf16.mxu0 %v7659_v3  ;;  %3043 = vmatprep.subr.bf16.mxu1 %v7662_v4  ;;  %v7725_v3 = vld [vmem:[%s11147_s3 + $0x564] ss:$16 sps:$4 sm:$0xff]   ;;  %v7728_v4 = vld [vmem:[%s11147_s3 + $0x56c] ss:$16 sps:$4 sm:$0xff]  }
  0x95   : > { %2818 = vmatmul.mubr.bf16.vlgmr.msra.gmra.mrb[0].mxu0 %v792_v8  ;;  %3033 = vmatmul.mubr.bf16.vlgmr.msra.gmra.mrb[0].mxu1 %v792_v8  ;;  %v7726_v8 = vld [vmem:[%s11147_s3 + $0x568] ss:$16 sps:$4 sm:$0xff]  }
  0x96   : > { %2829 = vmatpush1.bf16.msra.mxu0 %v7657_v6  ;;  %3044 = vmatpush1.bf16.msra.mxu1 %v7660_v7  ;;  %v9312_v6 = vsub.s32 4, %v8840_v43  ;;  %v7723_v7 = vld [vmem:[%s11147_s3 + $0x560] ss:$16 sps:$4 sm:$0xff]  }
  0x97   : > { %2830 = vmatprep.subr.bf16.mxu0 %v7665_v9  ;;  %3045 = vmatprep.subr.bf16.mxu1 %v7668_v10  ;;  %v7731_v9 = vld [vmem:[%s11147_s3 + $0x584] ss:$16 sps:$4 sm:$0xff]   ;;  %v7734_v10 = vld [vmem:[%s11147_s3 + $0x58c] ss:$16 sps:$4 sm:$0xff]  }
  0x98   : > { %2860 = vmatprep.mubr.bf16.mxu0 %v795_v31  ;;  %3075 = vmatprep.mubr.bf16.mxu1 %v795_v31 }
  0x9a   : > { %2831 = vmatpush1.bf16.msra.mxu0 %v7663_v16  ;;  %3046 = vmatpush1.bf16.msra.mxu1 %v7666_v55  ;;  %v603_v16 = vunpack.c.l.bf16 %v9182_v12  ;;  %v613_v55 = vunpack.c.l.bf16 %v9185_v13  ;;  %v7737_v12 = vld [vmem:[%s11147_s3 + $0x5a4] ss:$16 sps:$4 sm:$0xff]   ;;  %v7740_v13 = vld [vmem:[%s11147_s3 + $0x5ac] ss:$16 sps:$4 sm:$0xff]  }
  0x9b   : > { %2832 = vmatprep.subr.bf16.mxu0 %v7671_v18  ;;  %3047 = vmatprep.subr.bf16.mxu1 %v7674_v56  ;;  %v643_v18 = vrot.slane %v9338_v17, %v9312_v6  ;;  %v9343_v56 = vld [vmem:[%s8854_s11 + $0x18] sm:$0xff] }
  0x9c   : > { %v606_v20 = vunpack.c.h.bf16 %v9343_v56 }
  0x9d   : > { %v688_v25 = vmul.f32 %v643_v18, %v613_v55  ;;  %v7785_v55 = vld [vmem:[%s11147_s3 + $0x6a4] ss:$16 sps:$4 sm:$0xff]  }
  0x9e   : > { %2833 = vmatpush1.bf16.msra.mxu0 %v7669_v21  ;;  %3048 = vmatpush1.bf16.msra.mxu1 %v7672_v23  ;;  %v616_v21 = vunpack.c.h.bf16 %v9346_v19  ;;  %v7735_v23 = vld [vmem:[%s11147_s3 + $0x5a0] ss:$16 sps:$4 sm:$0xff]   ;;  %v681_v31 = vmul.f32 %v655_v22, %v606_v20  ;;  %v7791_v20 = vld [vmem:[%s11147_s3 + $0x6c4] ss:$16 sps:$4 sm:$0xff]  }
  0x9f   : > { %2834 = vmatprep.subr.bf16.mxu0 %v7677_v24  ;;  %3049 = vmatprep.subr.bf16.mxu1 %v7680_v26  ;;  %v678_v24 = vmul.f32 %v643_v18, %v603_v16  ;;  %v9363_v26 = vld [vmem:[%s11146_s2 + $0x1] ss:$2 sm:$0xff] }
  0xa0   : > { %v719_v27 = vrot.slane %v9363_v26, %v9312_v6  ;;  %v7780_v16 = vld [vmem:[%s11147_s3 + $0x688] ss:$16 sps:$4 sm:$0xff]   ;;  %v7788_v18 = vld [vmem:[%s11147_s3 + $0x6ac] ss:$16 sps:$4 sm:$0xff]  }
  0xa2   : > { %2835 = vmatpush1.bf16.msra.mxu0 %v7675_v29  ;;  %3050 = vmatpush1.bf16.msra.mxu1 %v7678_v30  ;;  %v7743_v29 = vld [vmem:[%s11147_s3 + $0x5c4] ss:$16 sps:$4 sm:$0xff]   ;;  %v7746_v30 = vld [vmem:[%s11147_s3 + $0x5cc] ss:$16 sps:$4 sm:$0xff]  }
  0xa3   : > { %2836 = vmatprep.subr.bf16.mxu0 %v7683_v32  ;;  %3051 = vmatprep.subr.bf16.mxu1 %v7686_v33  ;;  %v691_v32 = vmul.f32 %v655_v22, %v616_v21  ;;  %v731_v33 = vrot.slane %v9363_v26, %v654_v15  ;;  %v7777_v15 = vld [vmem:[%s11147_s3 + $0x680] ss:$16 sps:$4 sm:$0xff]   ;;  %v7794_v21 = vld [vmem:[%s11147_s3 + $0x6cc] ss:$16 sps:$4 sm:$0xff]  }
  0xa4   : > { %v7789_v22 = vld [vmem:[%s11147_s3 + $0x6c0] ss:$16 sps:$4 sm:$0xff]  }
  0xa6   : > { %2837 = vmatpush1.bf16.msra.mxu0 %v7681_v35  ;;  %3052 = vmatpush1.bf16.msra.mxu1 %v7684_v36  ;;  %v7741_v35 = vld [vmem:[%s11147_s3 + $0x5c0] ss:$16 sps:$4 sm:$0xff]   ;;  %v754_v36 = vadd.f32 %v719_v27, %v678_v24  ;;  %v7797_v24 = vld [vmem:[%s11147_s3 + $0x6e4] ss:$16 sps:$4 sm:$0xff]  }
  0xa7   : > { %2838 = vmatprep.subr.bf16.mxu0 %v7689_v37  ;;  %3053 = vmatprep.subr.bf16.mxu1 %v7692_v38  ;;  %v764_v37 = vadd.f32 %v719_v27, %v688_v25  ;;  %v7744_v38 = vld [vmem:[%s11147_s3 + $0x5c8] ss:$16 sps:$4 sm:$0xff]   ;;  %v7800_v25 = vld [vmem:[%s11147_s3 + $0x6ec] ss:$16 sps:$4 sm:$0xff]   ;;  %v7795_v27 = vld [vmem:[%s11147_s3 + $0x6e0] ss:$16 sps:$4 sm:$0xff]  }
  0xaa   : > { %2839 = vmatpush1.bf16.msra.mxu0 %v7687_v39  ;;  %3054 = vmatpush1.bf16.msra.mxu1 %v7690_v40  ;;  %v7749_v39 = vld [vmem:[%s11147_s3 + $0x5e4] ss:$16 sps:$4 sm:$0xff]   ;;  %v7752_v40 = vld [vmem:[%s11147_s3 + $0x5ec] ss:$16 sps:$4 sm:$0xff]  }
  0xab   : > { %2840 = vmatprep.subr.bf16.mxu0 %v7695_v41  ;;  %3055 = vmatprep.subr.bf16.mxu1 %v7698_v42  ;;  %v757_v41 = vadd.f32 %v731_v33, %v681_v31  ;;  %v767_v42 = vadd.f32 %v731_v33, %v691_v32  ;;  %v7801_v31 = vld [vmem:[%s11147_s3 + $0x700] ss:$16 sps:$4 sm:$0xff]   ;;  %v7804_v32 = vld [vmem:[%s11147_s3 + $0x708] ss:$16 sps:$4 sm:$0xff]   ;;  %v7809_v33 = vld [vmem:[%s11147_s3 + $0x724] ss:$16 sps:$4 sm:$0xff]  }
  0xae   : > { %2841 = vmatpush1.bf16.msra.mxu0 %v7693_v44  ;;  %3056 = vmatpush1.bf16.msra.mxu1 %v7696_v45  ;;  %v7747_v44 = vld [vmem:[%s11147_s3 + $0x5e0] ss:$16 sps:$4 sm:$0xff]   ;;  %v774_v45 = vmax.f32 %v754_v36, 0.0 }
  0xaf   : > { %2842 = vmatprep.subr.bf16.mxu0 %v7701_v46  ;;  %3057 = vmatprep.subr.bf16.mxu1 %v7704_v47  ;;  %v784_v46 = vmax.f32 %v764_v37, 0.0  ;;  %v7750_v47 = vld [vmem:[%s11147_s3 + $0x5e8] ss:$16 sps:$4 sm:$0xff]   ;;  %v7807_v36 = vld [vmem:[%s11147_s3 + $0x720] ss:$16 sps:$4 sm:$0xff]  }
  0xb0   : > { %v7810_v37 = vld [vmem:[%s11147_s3 + $0x728] ss:$16 sps:$4 sm:$0xff]  }
  0xb2   : > { %2843 = vmatpush1.bf16.msra.mxu0 %v7699_v49  ;;  %3058 = vmatpush1.bf16.msra.mxu1 %v7702_v50  ;;  %v7755_v49 = vld [vmem:[%s11147_s3 + $0x604] ss:$16 sps:$4 sm:$0xff]   ;;  %v7758_v50 = vld [vmem:[%s11147_s3 + $0x60c] ss:$16 sps:$4 sm:$0xff]  }
  0xb3   : > { %2844 = vmatprep.subr.bf16.mxu0 %v7707_v51  ;;  %3059 = vmatprep.subr.bf16.mxu1 %v7710_v52  ;;  %v777_v51 = vmax.f32 %v757_v41, 0.0  ;;  %v787_v52 = vmax.f32 %v767_v42, 0.0  ;;  %v7816_v41 = vld [vmem:[%s11147_s3 + $0x748] ss:$16 sps:$4 sm:$0xff]   ;;  %v7821_v42 = vld [vmem:[%s11147_s3 + $0x764] ss:$16 sps:$4 sm:$0xff]  }
  0xb6   : > { %2845 = vmatpush1.bf16.msra.mxu0 %v7705_v53  ;;  %3060 = vmatpush1.bf16.msra.mxu1 %v7708_v54  ;;  %v7753_v53 = vld [vmem:[%s11147_s3 + $0x600] ss:$16 sps:$4 sm:$0xff]   ;;  %v794_v54 = vpack.c.bf16 %v784_v46, %v774_v45  ;;  %v9537_v46 = vsub.s32 6, %v8840_v43  ;;  %v9552_v43 = vld [vmem:[%s8854_s11 + $0x48] sm:$0xff] }
  0xb7   : > { %2846 = vmatprep.subr.bf16.mxu0 %v7713_v59  ;;  %3061 = vmatprep.subr.bf16.mxu1 %v7716_v60  ;;  %v7756_v59 = vld [vmem:[%s11147_s3 + $0x608] ss:$16 sps:$4 sm:$0xff]   ;;  %v7761_v60 = vld [vmem:[%s11147_s3 + $0x624] ss:$16 sps:$4 sm:$0xff]   ;;  %v7819_v45 = vld [vmem:[%s11147_s3 + $0x760] ss:$16 sps:$4 sm:$0xff]  }
  0xba   : > { %2847 = vmatpush1.bf16.msra.mxu0 %v7711_v61  ;;  %3062 = vmatpush1.bf16.msra.mxu1 %v7714_v62  ;;  %v7764_v61 = vld [vmem:[%s11147_s3 + $0x62c] ss:$16 sps:$4 sm:$0xff]   ;;  %v797_v62 = vpack.c.bf16 %v787_v52, %v777_v51  ;;  %v9549_v51 = vld [vmem:[%s8854_s11 + $0x20] sm:$0xff]  ;;  %v605_v52 = vunpack.c.l.bf16 %v9343_v56  ;;  %v7828_v56 = vld [vmem:[%s11147_s3 + $0x788] ss:$16 sps:$4 sm:$0xff]   ;;  %s8495_s11 = sshll.u32 %s8573_s23, 4  ;;  %s8496_s11 = int_to_ptr.vmem [resolvable:$false] %s8495_s11 }
  0xbb   : > { %2848 = vmatprep.subr.bf16.mxu0 %v7719_v63  ;;  %3063 = vmatprep.subr.bf16.mxu1 %v7722_v0  ;;  %v7759_v63 = vld [vmem:[%s11147_s3 + $0x620] ss:$16 sps:$4 sm:$0xff]   ;;  %v7762_v0 = vld [vmem:[%s11147_s3 + $0x628] ss:$16 sps:$4 sm:$0xff]   ;;  %s8497_s18 = scalar_lea.vmem %s8496_s11, 32 }
  0xbe   : > { %2849 = vmatpush1.bf16.msra.mxu0 %v7717_v1  ;;  %3064 = vmatpush1.bf16.msra.mxu1 %v7720_v2  ;;  %v7767_v1 = vld [vmem:[%s11147_s3 + $0x644] ss:$16 sps:$4 sm:$0xff]   ;;  %v7770_v2 = vld [vmem:[%s11147_s3 + $0x64c] ss:$16 sps:$4 sm:$0xff]  }
  0xbf   : > { %2850 = vmatprep.subr.bf16.mxu0 %v7725_v3  ;;  %3065 = vmatprep.subr.bf16.mxu1 %v7728_v4  ;;  %v7765_v3 = vld [vmem:[%s11147_s3 + $0x640] ss:$16 sps:$4 sm:$0xff]   ;;  %v7768_v4 = vld [vmem:[%s11147_s3 + $0x648] ss:$16 sps:$4 sm:$0xff]  }
  0xc2   : > { %2851 = vmatpush1.bf16.msra.mxu0 %v7723_v7  ;;  %3066 = vmatpush1.bf16.msra.mxu1 %v7726_v8  ;;  %v7773_v7 = vld [vmem:[%s11147_s3 + $0x664] ss:$16 sps:$4 sm:$0xff]   ;;  %v7776_v8 = vld [vmem:[%s11147_s3 + $0x66c] ss:$16 sps:$4 sm:$0xff]  }
  0xc3   : > { %2852 = vmatprep.subr.bf16.mxu0 %v7731_v9  ;;  %3067 = vmatprep.subr.bf16.mxu1 %v7734_v10  ;;  %v7771_v9 = vld [vmem:[%s11147_s3 + $0x660] ss:$16 sps:$4 sm:$0xff]   ;;  %v7774_v10 = vld [vmem:[%s11147_s3 + $0x668] ss:$16 sps:$4 sm:$0xff]  }
  0xc6   : > { %2853 = vmatpush1.bf16.msra.mxu0 %v7729_v11  ;;  %3068 = vmatpush1.bf16.msra.mxu1 %v7732_v14  ;;  %v7779_v11 = vld [vmem:[%s11147_s3 + $0x684] ss:$16 sps:$4 sm:$0xff]   ;;  %v7782_v14 = vld [vmem:[%s11147_s3 + $0x68c] ss:$16 sps:$4 sm:$0xff]  }
  0xc7   : > { %2854 = vmatprep.subr.bf16.mxu0 %v7737_v12  ;;  %3069 = vmatprep.subr.bf16.mxu1 %v7740_v13  ;;  %v7783_v12 = vld [vmem:[%s11147_s3 + $0x6a0] ss:$16 sps:$4 sm:$0xff]   ;;  %v7786_v13 = vld [vmem:[%s11147_s3 + $0x6a8] ss:$16 sps:$4 sm:$0xff]  }
  0xca   : > { %2855 = vmatpush1.bf16.msra.mxu0 %v7735_v23  ;;  %3070 = vmatpush1.bf16.msra.mxu1 %v7738_v28  ;;  %v7792_v23 = vld [vmem:[%s11147_s3 + $0x6c8] ss:$16 sps:$4 sm:$0xff]  }
  0xcb   : > { %2856 = vmatprep.subr.bf16.mxu0 %v7743_v29  ;;  %3071 = vmatprep.subr.bf16.mxu1 %v7746_v30  ;;  %v7798_v28 = vld [vmem:[%s11147_s3 + $0x6e8] ss:$16 sps:$4 sm:$0xff]   ;;  %v7803_v29 = vld [vmem:[%s11147_s3 + $0x704] ss:$16 sps:$4 sm:$0xff]   ;;  %v7806_v30 = vld [vmem:[%s11147_s3 + $0x70c] ss:$16 sps:$4 sm:$0xff]  }
  0xce   : > { %2857 = vmatpush1.bf16.msra.mxu0 %v7741_v35  ;;  %3072 = vmatpush1.bf16.msra.mxu1 %v7744_v38  ;;  %v7812_v35 = vld [vmem:[%s11147_s3 + $0x72c] ss:$16 sps:$4 sm:$0xff]   ;;  %v7815_v38 = vld [vmem:[%s11147_s3 + $0x744] ss:$16 sps:$4 sm:$0xff]  }
  0xcf   : > { %2858 = vmatprep.subr.bf16.mxu0 %v7749_v39  ;;  %3073 = vmatprep.subr.bf16.mxu1 %v7752_v40  ;;  %v7818_v39 = vld [vmem:[%s11147_s3 + $0x74c] ss:$16 sps:$4 sm:$0xff]   ;;  %v7813_v40 = vld [vmem:[%s11147_s3 + $0x740] ss:$16 sps:$4 sm:$0xff]  }
  0xd2   : > { %2859 = vmatpush1.bf16.msra.mxu0 %v7747_v44  ;;  %3074 = vmatpush1.bf16.msra.mxu1 %v7750_v47  ;;  %v7824_v44 = vld [vmem:[%s11147_s3 + $0x76c] ss:$16 sps:$4 sm:$0xff]   ;;  %v7822_v47 = vld [vmem:[%s11147_s3 + $0x768] ss:$16 sps:$4 sm:$0xff]  }
  0xd3   : > { %2871 = vmatprep.subr.bf16.mxu0 %v7755_v49  ;;  %3086 = vmatprep.subr.bf16.mxu1 %v7758_v50  ;;  %v7827_v49 = vld [vmem:[%s11147_s3 + $0x784] ss:$16 sps:$4 sm:$0xff]   ;;  %v7830_v50 = vld [vmem:[%s11147_s3 + $0x78c] ss:$16 sps:$4 sm:$0xff]  }
  0xd5   : > { %2861 = vmatmul.mubr.bf16.vlgmr.msra.gmra.mrb[0].mxu0 %v794_v54  ;;  %3076 = vmatmul.mubr.bf16.vlgmr.msra.gmra.mrb[0].mxu1 %v794_v54  ;;  %v651_v54 = vrot.slane %v9338_v17, %v9537_v46  ;;  %v7833_v17 = vld [vmem:[%s11147_s3 + $0x7a4] ss:$16 sps:$4 sm:$0xff]  }
  0xd6   : > { %2872 = vmatpush1.bf16.msra.mxu0 %v7753_v53  ;;  %3087 = vmatpush1.bf16.msra.mxu1 %v7756_v59  ;;  %v615_v53 = vunpack.c.l.bf16 %v9346_v19  ;;  %v9561_v59 = vld [vmem:[%s11146_s2 + $0x10] ss:$2 sm:$0x3]  ;;  %v7836_v19 = vld [vmem:[%s11147_s3 + $0x7ac] ss:$16 sps:$4 sm:$0xff]  }
  0xd7   : > { %2873 = vmatprep.subr.bf16.mxu0 %v7761_v60  ;;  %3088 = vmatprep.subr.bf16.mxu1 %v7764_v61  ;;  %v7825_v60 = vld [vmem:[%s11147_s3 + $0x780] ss:$16 sps:$4 sm:$0xff]   ;;  %v608_v61 = vunpack.c.h.bf16 %v9549_v51 }
  0xd8   : > { %2903 = vmatprep.mubr.bf16.mxu0 %v797_v62  ;;  %3118 = vmatprep.mubr.bf16.mxu1 %v797_v62  ;;  %v618_v62 = vunpack.c.h.bf16 %v9552_v43 }
  0xda   : > { %2874 = vmatpush1.bf16.msra.mxu0 %v7759_v63  ;;  %3089 = vmatpush1.bf16.msra.mxu1 %v7762_v0  ;;  %v663_v63 = vrot.slane %v9561_v59, %v8860_v48  ;;  %v680_v0 = vmul.f32 %v651_v54, %v605_v52  ;;  %v7878_v52 = vld [vmem:[%s11147_s3 + $0x88c] ss:$16 sps:$4 sm:$0xff]  }
  0xdb   : > { %2875 = vmatprep.subr.bf16.mxu0 %v7767_v1  ;;  %3090 = vmatprep.subr.bf16.mxu1 %v7770_v2  ;;  %v690_v1 = vmul.f32 %v651_v54, %v615_v53  ;;  %v727_v2 = vrot.slane %v9363_v26, %v9537_v46  ;;  %v7839_v26 = vld [vmem:[%s11147_s3 + $0x7c4] ss:$16 sps:$4 sm:$0xff]   ;;  %v7873_v53 = vld [vmem:[%s11147_s3 + $0x880] ss:$16 sps:$4 sm:$0xff]   ;;  %v7876_v54 = vld [vmem:[%s11147_s3 + $0x888] ss:$16 sps:$4 sm:$0xff]  }
  0xde   : > { %2876 = vmatpush1.bf16.msra.mxu0 %v7765_v3  ;;  %3091 = vmatpush1.bf16.msra.mxu1 %v7768_v4  ;;  %v9584_v3 = vld [vmem:[%s11146_s2 + $0x11] ss:$2 sm:$0x3] }
  0xdf   : > { %2877 = vmatprep.subr.bf16.mxu0 %v7773_v7  ;;  %3092 = vmatprep.subr.bf16.mxu1 %v7776_v8  ;;  %v7831_v4 = vld [vmem:[%s11147_s3 + $0x7a0] ss:$16 sps:$4 sm:$0xff]   ;;  %v7834_v7 = vld [vmem:[%s11147_s3 + $0x7a8] ss:$16 sps:$4 sm:$0xff]   ;;  %v7842_v8 = vld [vmem:[%s11147_s3 + $0x7cc] ss:$16 sps:$4 sm:$0xff]  }
  0xe2   : > { %2878 = vmatpush1.bf16.msra.mxu0 %v7771_v9  ;;  %3093 = vmatpush1.bf16.msra.mxu1 %v7774_v10  ;;  %v683_v9 = vmul.f32 %v663_v63, %v608_v61  ;;  %v693_v10 = vmul.f32 %v663_v63, %v618_v62  ;;  %v7887_v61 = vld [vmem:[%s11147_s3 + $0x8c4] ss:$16 sps:$4 sm:$0xff]   ;;  %v7890_v62 = vld [vmem:[%s11147_s3 + $0x8cc] ss:$16 sps:$4 sm:$0xff]   ;;  %v7885_v63 = vld [vmem:[%s11147_s3 + $0x8c0] ss:$16 sps:$4 sm:$0xff]  }
  0xe3   : > { %2879 = vmatprep.subr.bf16.mxu0 %v7779_v11  ;;  %3094 = vmatprep.subr.bf16.mxu1 %v7782_v14  ;;  %v739_v11 = vrot.slane %v9584_v3, %v8860_v48  ;;  %v756_v14 = vadd.f32 %v727_v2, %v680_v0  ;;  %v7888_v0 = vld [vmem:[%s11147_s3 + $0x8c8] ss:$16 sps:$4 sm:$0xff]  }
  0xe6   : > { %2880 = vmatpush1.bf16.msra.mxu0 %v7777_v15  ;;  %3095 = vmatpush1.bf16.msra.mxu1 %v7780_v16  ;;  %v766_v15 = vadd.f32 %v727_v2, %v690_v1  ;;  %v7837_v16 = vld [vmem:[%s11147_s3 + $0x7c0] ss:$16 sps:$4 sm:$0xff]   ;;  %v7893_v1 = vld [vmem:[%s11147_s3 + $0x8e4] ss:$16 sps:$4 sm:$0xff]   ;;  %v7896_v2 = vld [vmem:[%s11147_s3 + $0x8ec] ss:$16 sps:$4 sm:$0xff]  }
  0xe7   : > { %2881 = vmatprep.subr.bf16.mxu0 %v7785_v55  ;;  %3096 = vmatprep.subr.bf16.mxu1 %v7788_v18  ;;  %v7840_v55 = vld [vmem:[%s11147_s3 + $0x7c8] ss:$16 sps:$4 sm:$0xff]   ;;  %v7845_v18 = vld [vmem:[%s11147_s3 + $0x7e4] ss:$16 sps:$4 sm:$0xff]  }
  0xea   : > { %2882 = vmatpush1.bf16.msra.mxu0 %v7783_v12  ;;  %3097 = vmatpush1.bf16.msra.mxu1 %v7786_v13  ;;  %v7848_v12 = vld [vmem:[%s11147_s3 + $0x7ec] ss:$16 sps:$4 sm:$0xff]   ;;  %v759_v13 = vadd.f32 %v739_v11, %v683_v9  ;;  %v7897_v9 = vld [vmem:[%s11147_s3 + $0x900] ss:$16 sps:$4 sm:$0xff]  }
  0xeb   : > { %2883 = vmatprep.subr.bf16.mxu0 %v7791_v20  ;;  %3098 = vmatprep.subr.bf16.mxu1 %v7794_v21  ;;  %v769_v20 = vadd.f32 %v739_v11, %v693_v10  ;;  %v776_v21 = vmax.f32 %v756_v14, 0.0  ;;  %v7900_v10 = vld [vmem:[%s11147_s3 + $0x908] ss:$16 sps:$4 sm:$0xff]   ;;  %v7905_v11 = vld [vmem:[%s11147_s3 + $0x924] ss:$16 sps:$4 sm:$0xff]  }
  0xec   : > { %v7908_v14 = vld [vmem:[%s11147_s3 + $0x92c] ss:$16 sps:$4 sm:$0xff]  }
  0xee   : > { %2884 = vmatpush1.bf16.msra.mxu0 %v7789_v22  ;;  %3099 = vmatpush1.bf16.msra.mxu1 %v7792_v23  ;;  %v786_v22 = vmax.f32 %v766_v15, 0.0  ;;  %v7843_v23 = vld [vmem:[%s11147_s3 + $0x7e0] ss:$16 sps:$4 sm:$0xff]  }
  0xef   : > { %2885 = vmatprep.subr.bf16.mxu0 %v7797_v24  ;;  %3100 = vmatprep.subr.bf16.mxu1 %v7800_v25  ;;  %v7846_v24 = vld [vmem:[%s11147_s3 + $0x7e8] ss:$16 sps:$4 sm:$0xff]   ;;  %v7851_v25 = vld [vmem:[%s11147_s3 + $0x804] ss:$16 sps:$4 sm:$0xff]   ;;  %v7903_v15 = vld [vmem:[%s11147_s3 + $0x920] ss:$16 sps:$4 sm:$0xff]  }
  0xf2   : > { %2886 = vmatpush1.bf16.msra.mxu0 %v7795_v27  ;;  %3101 = vmatpush1.bf16.msra.mxu1 %v7798_v28  ;;  %v7854_v27 = vld [vmem:[%s11147_s3 + $0x80c] ss:$16 sps:$4 sm:$0xff]   ;;  %v7849_v28 = vld [vmem:[%s11147_s3 + $0x800] ss:$16 sps:$4 sm:$0xff]  }
  0xf3   : > { %2887 = vmatprep.subr.bf16.mxu0 %v7803_v29  ;;  %3102 = vmatprep.subr.bf16.mxu1 %v7806_v30  ;;  %v7852_v29 = vld [vmem:[%s11147_s3 + $0x808] ss:$16 sps:$4 sm:$0xff]   ;;  %v779_v30 = vmax.f32 %v759_v13, 0.0 }
  0xf4   : > { %v7912_v13 = vld [vmem:[%s11147_s3 + $0x948] ss:$16 sps:$4 sm:$0xff]  }
  0xf6   : > { %2888 = vmatpush1.bf16.msra.mxu0 %v7801_v31  ;;  %3103 = vmatpush1.bf16.msra.mxu1 %v7804_v32  ;;  %v789_v31 = vmax.f32 %v769_v20, 0.0  ;;  %v796_v32 = vpack.c.bf16 %v786_v22, %v776_v21  ;;  %v7917_v20 = vld [vmem:[%s11147_s3 + $0x964] ss:$16 sps:$4 sm:$0xff]   ;;  %v7920_v21 = vld [vmem:[%s11147_s3 + $0x96c] ss:$16 sps:$4 sm:$0xff]  }
  0xf7   : > { %2889 = vmatprep.subr.bf16.mxu0 %v7809_v33  ;;  %3104 = vmatprep.subr.bf16.mxu1 %v7812_v35  ;;  %v7857_v33 = vld [vmem:[%s11147_s3 + $0x824] ss:$16 sps:$4 sm:$0xff]   ;;  %v7860_v35 = vld [vmem:[%s11147_s3 + $0x82c] ss:$16 sps:$4 sm:$0xff]   ;;  %v7915_v22 = vld [vmem:[%s11147_s3 + $0x960] ss:$16 sps:$4 sm:$0xff]  }
  0xfa   : > { %2890 = vmatpush1.bf16.msra.mxu0 %v7807_v36  ;;  %3105 = vmatpush1.bf16.msra.mxu1 %v7810_v37  ;;  %v7855_v36 = vld [vmem:[%s11147_s3 + $0x820] ss:$16 sps:$4 sm:$0xff]   ;;  %v7858_v37 = vld [vmem:[%s11147_s3 + $0x828] ss:$16 sps:$4 sm:$0xff]  }
  0xfb   : > { %2891 = vmatprep.subr.bf16.mxu0 %v7815_v38  ;;  %3106 = vmatprep.subr.bf16.mxu1 %v7818_v39  ;;  %v799_v38 = vpack.c.bf16 %v789_v31, %v779_v30  ;;  %v7863_v39 = vld [vmem:[%s11147_s3 + $0x844] ss:$16 sps:$4 sm:$0xff]   ;;  %v7932_v30 = vld [vmem:[%s11147_s3 + $0x9ac] ss:$16 sps:$4 sm:$0xff]   ;;  %v607_v31 = vunpack.c.l.bf16 %v9549_v51 }
  0xfc   : > { %v7935_v51 = vld [vmem:[%s11147_s3 + $0x9c4] ss:$16 sps:$4 sm:$0xff]  }
  0xfe   : > { %2892 = vmatpush1.bf16.msra.mxu0 %v7813_v40  ;;  %3107 = vmatpush1.bf16.msra.mxu1 %v7816_v41  ;;  %v7866_v40 = vld [vmem:[%s11147_s3 + $0x84c] ss:$16 sps:$4 sm:$0xff]   ;;  %v7861_v41 = vld [vmem:[%s11147_s3 + $0x840] ss:$16 sps:$4 sm:$0xff]  }
  0xff   : > { %2893 = vmatprep.subr.bf16.mxu0 %v7821_v42  ;;  %3108 = vmatprep.subr.bf16.mxu1 %v7824_v44  ;;  %v7864_v42 = vld [vmem:[%s11147_s3 + $0x848] ss:$16 sps:$4 sm:$0xff]   ;;  %v7869_v44 = vld [vmem:[%s11147_s3 + $0x864] ss:$16 sps:$4 sm:$0xff]  }
 0x102   : > { %2894 = vmatpush1.bf16.msra.mxu0 %v7819_v45  ;;  %3109 = vmatpush1.bf16.msra.mxu1 %v7822_v47  ;;  %v7872_v45 = vld [vmem:[%s11147_s3 + $0x86c] ss:$16 sps:$4 sm:$0xff]   ;;  %v7867_v47 = vld [vmem:[%s11147_s3 + $0x860] ss:$16 sps:$4 sm:$0xff]  }
 0x103   : > { %2895 = vmatprep.subr.bf16.mxu0 %v7827_v49  ;;  %3110 = vmatprep.subr.bf16.mxu1 %v7830_v50  ;;  %v7870_v49 = vld [vmem:[%s11147_s3 + $0x868] ss:$16 sps:$4 sm:$0xff]   ;;  %v7875_v50 = vld [vmem:[%s11147_s3 + $0x884] ss:$16 sps:$4 sm:$0xff]  }
 0x106   : > { %2896 = vmatpush1.bf16.msra.mxu0 %v7825_v60  ;;  %3111 = vmatpush1.bf16.msra.mxu1 %v7828_v56  ;;  %v7881_v60 = vld [vmem:[%s11147_s3 + $0x8a4] ss:$16 sps:$4 sm:$0xff]   ;;  %v7884_v56 = vld [vmem:[%s11147_s3 + $0x8ac] ss:$16 sps:$4 sm:$0xff]  }
 0x107   : > { %2897 = vmatprep.subr.bf16.mxu0 %v7833_v17  ;;  %3112 = vmatprep.subr.bf16.mxu1 %v7836_v19  ;;  %v7879_v17 = vld [vmem:[%s11147_s3 + $0x8a0] ss:$16 sps:$4 sm:$0xff]   ;;  %v7882_v19 = vld [vmem:[%s11147_s3 + $0x8a8] ss:$16 sps:$4 sm:$0xff]  }
 0x10a   : > { %2898 = vmatpush1.bf16.msra.mxu0 %v7831_v4  ;;  %3113 = vmatpush1.bf16.msra.mxu1 %v7834_v7  ;;  %v7891_v4 = vld [vmem:[%s11147_s3 + $0x8e0] ss:$16 sps:$4 sm:$0xff]   ;;  %v7894_v7 = vld [vmem:[%s11147_s3 + $0x8e8] ss:$16 sps:$4 sm:$0xff]  }
 0x10b   : > { %2899 = vmatprep.subr.bf16.mxu0 %v7839_v26  ;;  %3114 = vmatprep.subr.bf16.mxu1 %v7842_v8  ;;  %v7899_v26 = vld [vmem:[%s11147_s3 + $0x904] ss:$16 sps:$4 sm:$0xff]   ;;  %v7902_v8 = vld [vmem:[%s11147_s3 + $0x90c] ss:$16 sps:$4 sm:$0xff]  }
 0x10e   : > { %2900 = vmatpush1.bf16.msra.mxu0 %v7837_v16  ;;  %3115 = vmatpush1.bf16.msra.mxu1 %v7840_v55  ;;  %v7906_v16 = vld [vmem:[%s11147_s3 + $0x928] ss:$16 sps:$4 sm:$0xff]   ;;  %v7911_v55 = vld [vmem:[%s11147_s3 + $0x944] ss:$16 sps:$4 sm:$0xff]  }
 0x10f   : > { %2901 = vmatprep.subr.bf16.mxu0 %v7845_v18  ;;  %3116 = vmatprep.subr.bf16.mxu1 %v7848_v12  ;;  %v7914_v18 = vld [vmem:[%s11147_s3 + $0x94c] ss:$16 sps:$4 sm:$0xff]   ;;  %v7909_v12 = vld [vmem:[%s11147_s3 + $0x940] ss:$16 sps:$4 sm:$0xff]  }
 0x112   : > { %2902 = vmatpush1.bf16.msra.mxu0 %v7843_v23  ;;  %3117 = vmatpush1.bf16.msra.mxu1 %v7846_v24  ;;  %v7918_v23 = vld [vmem:[%s11147_s3 + $0x968] ss:$16 sps:$4 sm:$0xff]   ;;  %v7923_v24 = vld [vmem:[%s11147_s3 + $0x984] ss:$16 sps:$4 sm:$0xff]  }
 0x113   : > { %2914 = vmatprep.subr.bf16.mxu0 %v7851_v25  ;;  %3129 = vmatprep.subr.bf16.mxu1 %v7854_v27  ;;  %v7926_v25 = vld [vmem:[%s11147_s3 + $0x98c] ss:$16 sps:$4 sm:$0xff]   ;;  %v7921_v27 = vld [vmem:[%s11147_s3 + $0x980] ss:$16 sps:$4 sm:$0xff]  }
 0x115   : > { %2904 = vmatmul.mubr.bf16.vlgmr.msra.gmra.mrb[0].mxu0 %v796_v32  ;;  %3119 = vmatmul.mubr.bf16.vlgmr.msra.gmra.mrb[0].mxu1 %v796_v32  ;;  %v617_v32 = vunpack.c.l.bf16 %v9552_v43  ;;  %v7938_v43 = vld [vmem:[%s11147_s3 + $0x9cc] ss:$16 sps:$4 sm:$0xff]  }
 0x116   : > { %2915 = vmatpush1.bf16.msra.mxu0 %v7849_v28  ;;  %3130 = vmatpush1.bf16.msra.mxu1 %v7852_v29  ;;  %v7924_v28 = vld [vmem:[%s11147_s3 + $0x988] ss:$16 sps:$4 sm:$0xff]   ;;  %v7929_v29 = vld [vmem:[%s11147_s3 + $0x9a4] ss:$16 sps:$4 sm:$0xff]  }
 0x117   : > { %2916 = vmatprep.subr.bf16.mxu0 %v7857_v33  ;;  %3131 = vmatprep.subr.bf16.mxu1 %v7860_v35  ;;  %v659_v33 = vrot.slane %v9561_v59, %v8884_v57  ;;  %v7927_v35 = vld [vmem:[%s11147_s3 + $0x9a0] ss:$16 sps:$4 sm:$0xff]   ;;  %v735_v59 = vrot.slane %v9584_v3, %v8884_v57  ;;  %v7944_v3 = vld [vmem:[%s11147_s3 + $0x9ec] ss:$16 sps:$4 sm:$0xff]  }
 0x118   : > { %2946 = vmatprep.mubr.bf16.mxu0 %v799_v38  ;;  %3161 = vmatprep.mubr.bf16.mxu1 %v799_v38 }
 0x119   : > { %v692_v38 = vmul.f32 %v659_v33, %v617_v32  ;;  %v8004_v32 = vld [vmem:[%s11152_s8 + $0x12c] ss:$16 sps:$4 sm:$0xff]  }
 0x11a   : > { %2917 = vmatpush1.bf16.msra.mxu0 %v7855_v36  ;;  %3132 = vmatpush1.bf16.msra.mxu1 %v7858_v37  ;;  %v7930_v36 = vld [vmem:[%s11147_s3 + $0x9a8] ss:$16 sps:$4 sm:$0xff]   ;;  %v682_v37 = vmul.f32 %v659_v33, %v607_v31  ;;  %v8001_v31 = vld [vmem:[%s11152_s8 + $0x124] ss:$16 sps:$4 sm:$0xff]   ;;  %v7999_v33 = vld [vmem:[%s11152_s8 + $0x120] ss:$16 sps:$4 sm:$0xff]  }
 0x11b   : > { %2918 = vmatprep.subr.bf16.mxu0 %v7863_v39  ;;  %3133 = vmatprep.subr.bf16.mxu1 %v7866_v40  ;;  %v7933_v39 = vld [vmem:[%s11147_s3 + $0x9c0] ss:$16 sps:$4 sm:$0xff]   ;;  %v7936_v40 = vld [vmem:[%s11147_s3 + $0x9c8] ss:$16 sps:$4 sm:$0xff]  }
 0x11e   : > { %2919 = vmatpush1.bf16.msra.mxu0 %v7861_v41  ;;  %3134 = vmatpush1.bf16.msra.mxu1 %v7864_v42  ;;  %v7941_v41 = vld [vmem:[%s11147_s3 + $0x9e4] ss:$16 sps:$4 sm:$0xff]   ;;  %v758_v42 = vadd.f32 %v735_v59, %v682_v37 }
 0x11f   : > { %2920 = vmatprep.subr.bf16.mxu0 %v7869_v44  ;;  %3135 = vmatprep.subr.bf16.mxu1 %v7872_v45  ;;  %v768_v44 = vadd.f32 %v735_v59, %v692_v38  ;;  %v7939_v45 = vld [vmem:[%s11147_s3 + $0x9e0] ss:$16 sps:$4 sm:$0xff]   ;;  %v8008_v59 = vld [vmem:[%s11152_s8 + $0x148] ss:$16 sps:$4 sm:$0xff]   ;;  %v8013_v37 = vld [vmem:[%s11152_s8 + $0x164] ss:$16 sps:$4 sm:$0xff]  }
 0x120   : > { %v8016_v38 = vld [vmem:[%s11152_s8 + $0x16c] ss:$16 sps:$4 sm:$0xff]  }
 0x122   : > { %2921 = vmatpush1.bf16.msra.mxu0 %v7867_v47  ;;  %3136 = vmatpush1.bf16.msra.mxu1 %v7870_v49  ;;  %v7942_v47 = vld [vmem:[%s11147_s3 + $0x9e8] ss:$16 sps:$4 sm:$0xff]   ;;  %v778_v49 = vmax.f32 %v758_v42, 0.0  ;;  %v8017_v42 = vld [vmem:[%s11152_s8 + $0x180] ss:$16 sps:$4 sm:$0xff]  }
 0x123   : > { %2922 = vmatprep.subr.bf16.mxu0 %v7875_v50  ;;  %3137 = vmatprep.subr.bf16.mxu1 %v7878_v52  ;;  %v788_v50 = vmax.f32 %v768_v44, 0.0  ;;  %v7947_v52 = vld [vmem:[%s11152_s8 + $0x4] ss:$16 sps:$4 sm:$0xff]   ;;  %v8020_v44 = vld [vmem:[%s11152_s8 + $0x188] ss:$16 sps:$4 sm:$0xff]  }
 0x126   : > { %2923 = vmatpush1.bf16.msra.mxu0 %v7873_v53  ;;  %3138 = vmatpush1.bf16.msra.mxu1 %v7876_v54  ;;  %v7950_v53 = vld [vmem:[%s11152_s8 + $0xc] ss:$16 sps:$4 sm:$0xff]   ;;  %v7945_v54 = vld [vmem:[%s11152_s8] ss:$16 sps:$4 sm:$0xff]  }
 0x127   : > { %2924 = vmatprep.subr.bf16.mxu0 %v7881_v60  ;;  %3139 = vmatprep.subr.bf16.mxu1 %v7884_v56  ;;  %v7948_v60 = vld [vmem:[%s11152_s8 + $0x8] ss:$16 sps:$4 sm:$0xff]   ;;  %v798_v56 = vpack.c.bf16 %v788_v50, %v778_v49  ;;  %v8028_v50 = vld [vmem:[%s11152_s8 + $0x1ac] ss:$16 sps:$4 sm:$0xff]  }
 0x128   : > { %v8026_v49 = vld [vmem:[%s11152_s8 + $0x1a8] ss:$16 sps:$4 sm:$0xff]  }
 0x12a   : > { %2925 = vmatpush1.bf16.msra.mxu0 %v7879_v17  ;;  %3140 = vmatpush1.bf16.msra.mxu1 %v7882_v19  ;;  %v7953_v17 = vld [vmem:[%s11152_s8 + $0x24] ss:$16 sps:$4 sm:$0xff]   ;;  %v7956_v19 = vld [vmem:[%s11152_s8 + $0x2c] ss:$16 sps:$4 sm:$0xff]  }
 0x12b   : > { %2926 = vmatprep.subr.bf16.mxu0 %v7887_v61  ;;  %3141 = vmatprep.subr.bf16.mxu1 %v7890_v62  ;;  %v7951_v61 = vld [vmem:[%s11152_s8 + $0x20] ss:$16 sps:$4 sm:$0xff]   ;;  %v7954_v62 = vld [vmem:[%s11152_s8 + $0x28] ss:$16 sps:$4 sm:$0xff]  }
 0x12e   : > { %2927 = vmatpush1.bf16.msra.mxu0 %v7885_v63  ;;  %3142 = vmatpush1.bf16.msra.mxu1 %v7888_v0  ;;  %v7959_v63 = vld [vmem:[%s11152_s8 + $0x44] ss:$16 sps:$4 sm:$0xff]   ;;  %v7962_v0 = vld [vmem:[%s11152_s8 + $0x4c] ss:$16 sps:$4 sm:$0xff]  }
 0x12f   : > { %2928 = vmatprep.subr.bf16.mxu0 %v7893_v1  ;;  %3143 = vmatprep.subr.bf16.mxu1 %v7896_v2  ;;  %v7957_v1 = vld [vmem:[%s11152_s8 + $0x40] ss:$16 sps:$4 sm:$0xff]   ;;  %v7960_v2 = vld [vmem:[%s11152_s8 + $0x48] ss:$16 sps:$4 sm:$0xff]  }
 0x132   : > { %2929 = vmatpush1.bf16.msra.mxu0 %v7891_v4  ;;  %3144 = vmatpush1.bf16.msra.mxu1 %v7894_v7  ;;  %v7965_v4 = vld [vmem:[%s11152_s8 + $0x64] ss:$16 sps:$4 sm:$0xff]   ;;  %v7968_v7 = vld [vmem:[%s11152_s8 + $0x6c] ss:$16 sps:$4 sm:$0xff]  }
 0x133   : > { %2930 = vmatprep.subr.bf16.mxu0 %v7899_v26  ;;  %3145 = vmatprep.subr.bf16.mxu1 %v7902_v8  ;;  %v7963_v26 = vld [vmem:[%s11152_s8 + $0x60] ss:$16 sps:$4 sm:$0xff]   ;;  %v7966_v8 = vld [vmem:[%s11152_s8 + $0x68] ss:$16 sps:$4 sm:$0xff]  }
 0x136   : > { %2931 = vmatpush1.bf16.msra.mxu0 %v7897_v9  ;;  %3146 = vmatpush1.bf16.msra.mxu1 %v7900_v10  ;;  %v7971_v9 = vld [vmem:[%s11152_s8 + $0x84] ss:$16 sps:$4 sm:$0xff]   ;;  %v7974_v10 = vld [vmem:[%s11152_s8 + $0x8c] ss:$16 sps:$4 sm:$0xff]  }
 0x137   : > { %2932 = vmatprep.subr.bf16.mxu0 %v7905_v11  ;;  %3147 = vmatprep.subr.bf16.mxu1 %v7908_v14  ;;  %v7969_v11 = vld [vmem:[%s11152_s8 + $0x80] ss:$16 sps:$4 sm:$0xff]   ;;  %v7972_v14 = vld [vmem:[%s11152_s8 + $0x88] ss:$16 sps:$4 sm:$0xff]  }
 0x13a   : > { %2933 = vmatpush1.bf16.msra.mxu0 %v7903_v15  ;;  %3148 = vmatpush1.bf16.msra.mxu1 %v7906_v16  ;;  %v7977_v15 = vld [vmem:[%s11152_s8 + $0xa4] ss:$16 sps:$4 sm:$0xff]   ;;  %v7980_v16 = vld [vmem:[%s11152_s8 + $0xac] ss:$16 sps:$4 sm:$0xff]  }
 0x13b   : > { %2934 = vmatprep.subr.bf16.mxu0 %v7911_v55  ;;  %3149 = vmatprep.subr.bf16.mxu1 %v7914_v18  ;;  %v7975_v55 = vld [vmem:[%s11152_s8 + $0xa0] ss:$16 sps:$4 sm:$0xff]   ;;  %v7978_v18 = vld [vmem:[%s11152_s8 + $0xa8] ss:$16 sps:$4 sm:$0xff]  }
 0x13e   : > { %2935 = vmatpush1.bf16.msra.mxu0 %v7909_v12  ;;  %3150 = vmatpush1.bf16.msra.mxu1 %v7912_v13  ;;  %v7983_v12 = vld [vmem:[%s11152_s8 + $0xc4] ss:$16 sps:$4 sm:$0xff]   ;;  %v7986_v13 = vld [vmem:[%s11152_s8 + $0xcc] ss:$16 sps:$4 sm:$0xff]  }
 0x13f   : > { %2936 = vmatprep.subr.bf16.mxu0 %v7917_v20  ;;  %3151 = vmatprep.subr.bf16.mxu1 %v7920_v21  ;;  %v7981_v20 = vld [vmem:[%s11152_s8 + $0xc0] ss:$16 sps:$4 sm:$0xff]   ;;  %v7984_v21 = vld [vmem:[%s11152_s8 + $0xc8] ss:$16 sps:$4 sm:$0xff]  }
 0x142   : > { %2937 = vmatpush1.bf16.msra.mxu0 %v7915_v22  ;;  %3152 = vmatpush1.bf16.msra.mxu1 %v7918_v23  ;;  %v7989_v22 = vld [vmem:[%s11152_s8 + $0xe4] ss:$16 sps:$4 sm:$0xff]   ;;  %v7992_v23 = vld [vmem:[%s11152_s8 + $0xec] ss:$16 sps:$4 sm:$0xff]  }
 0x143   : > { %2938 = vmatprep.subr.bf16.mxu0 %v7923_v24  ;;  %3153 = vmatprep.subr.bf16.mxu1 %v7926_v25  ;;  %v7987_v24 = vld [vmem:[%s11152_s8 + $0xe0] ss:$16 sps:$4 sm:$0xff]   ;;  %v7990_v25 = vld [vmem:[%s11152_s8 + $0xe8] ss:$16 sps:$4 sm:$0xff]  }
 0x146   : > { %2939 = vmatpush1.bf16.msra.mxu0 %v7921_v27  ;;  %3154 = vmatpush1.bf16.msra.mxu1 %v7924_v28  ;;  %v7995_v27 = vld [vmem:[%s11152_s8 + $0x104] ss:$16 sps:$4 sm:$0xff]   ;;  %v7998_v28 = vld [vmem:[%s11152_s8 + $0x10c] ss:$16 sps:$4 sm:$0xff]  }
 0x147   : > { %2940 = vmatprep.subr.bf16.mxu0 %v7929_v29  ;;  %3155 = vmatprep.subr.bf16.mxu1 %v7932_v30  ;;  %v7993_v29 = vld [vmem:[%s11152_s8 + $0x100] ss:$16 sps:$4 sm:$0xff]   ;;  %v7996_v30 = vld [vmem:[%s11152_s8 + $0x108] ss:$16 sps:$4 sm:$0xff]  }
 0x14a   : > { %2941 = vmatpush1.bf16.msra.mxu0 %v7927_v35  ;;  %3156 = vmatpush1.bf16.msra.mxu1 %v7930_v36  ;;  %v8002_v35 = vld [vmem:[%s11152_s8 + $0x128] ss:$16 sps:$4 sm:$0xff]   ;;  %v8007_v36 = vld [vmem:[%s11152_s8 + $0x144] ss:$16 sps:$4 sm:$0xff]  }
 0x14b   : > { %2942 = vmatprep.subr.bf16.mxu0 %v7935_v51  ;;  %3157 = vmatprep.subr.bf16.mxu1 %v7938_v43  ;;  %v8010_v51 = vld [vmem:[%s11152_s8 + $0x14c] ss:$16 sps:$4 sm:$0xff]   ;;  %v8005_v43 = vld [vmem:[%s11152_s8 + $0x140] ss:$16 sps:$4 sm:$0xff]  }
 0x14e   : > { %2943 = vmatpush1.bf16.msra.mxu0 %v7933_v39  ;;  %3158 = vmatpush1.bf16.msra.mxu1 %v7936_v40  ;;  %v8011_v39 = vld [vmem:[%s11152_s8 + $0x160] ss:$16 sps:$4 sm:$0xff]   ;;  %v8014_v40 = vld [vmem:[%s11152_s8 + $0x168] ss:$16 sps:$4 sm:$0xff]  }
 0x14f   : > { %2944 = vmatprep.subr.bf16.mxu0 %v7941_v41  ;;  %3159 = vmatprep.subr.bf16.mxu1 %v7944_v3  ;;  %v8019_v41 = vld [vmem:[%s11152_s8 + $0x184] ss:$16 sps:$4 sm:$0xff]   ;;  %v8022_v3 = vld [vmem:[%s11152_s8 + $0x18c] ss:$16 sps:$4 sm:$0xff]  }
 0x152   : > { %2945 = vmatpush1.bf16.msra.mxu0 %v7939_v45  ;;  %3160 = vmatpush1.bf16.msra.mxu1 %v7942_v47  ;;  %v8025_v45 = vld [vmem:[%s11152_s8 + $0x1a4] ss:$16 sps:$4 sm:$0xff]   ;;  %v8023_v47 = vld [vmem:[%s11152_s8 + $0x1a0] ss:$16 sps:$4 sm:$0xff]  }
 0x153   : > { %4367 = vmatprep.subr.bf16.mxu0 %v7947_v52  ;;  %4453 = vmatprep.subr.bf16.mxu1 %v7950_v53  ;;  %v8031_v52 = vld [vmem:[%s11152_s8 + $0x1c4] ss:$16 sps:$4 sm:$0xff]   ;;  %v8034_v53 = vld [vmem:[%s11152_s8 + $0x1cc] ss:$16 sps:$4 sm:$0xff]  }
 0x155   : > { %2947 = vmatmul.mubr.bf16.vlgmr.msra.gmra.mrb[0].mxu0 %v798_v56  ;;  %3162 = vmatmul.mubr.bf16.vlgmr.msra.gmra.mrb[0].mxu1 %v798_v56  ;;  %v8037_v56 = vld [vmem:[%s11152_s8 + $0x1e4] ss:$16 sps:$4 sm:$0xff]  }
 0x156   : > { %4368 = vmatpush1.bf16.msra.mxu0 %v7945_v54  ;;  %4454 = vmatpush1.bf16.msra.mxu1 %v7948_v60  ;;  %v8029_v54 = vld [vmem:[%s11152_s8 + $0x1c0] ss:$16 sps:$4 sm:$0xff]   ;;  %v8032_v60 = vld [vmem:[%s11152_s8 + $0x1c8] ss:$16 sps:$4 sm:$0xff]  }
 0x157   : > { %4369 = vmatprep.subr.bf16.mxu0 %v7953_v17  ;;  %4455 = vmatprep.subr.bf16.mxu1 %v7956_v19  ;;  %v8040_v17 = vld [vmem:[%s11152_s8 + $0x1ec] ss:$16 sps:$4 sm:$0xff]   ;;  %v8035_v19 = vld [vmem:[%s11152_s8 + $0x1e0] ss:$16 sps:$4 sm:$0xff]  }
 0x15a   : > { %4370 = vmatpush1.bf16.msra.mxu0 %v7951_v61  ;;  %4456 = vmatpush1.bf16.msra.mxu1 %v7954_v62  ;;  %v8038_v61 = vld [vmem:[%s11152_s8 + $0x1e8] ss:$16 sps:$4 sm:$0xff]   ;;  %v8043_v62 = vld [vmem:[%s11152_s8 + $0x204] ss:$16 sps:$4 sm:$0xff]  }
 0x15b   : > { %4371 = vmatprep.subr.bf16.mxu0 %v7959_v63  ;;  %4457 = vmatprep.subr.bf16.mxu1 %v7962_v0  ;;  %v8046_v63 = vld [vmem:[%s11152_s8 + $0x20c] ss:$16 sps:$4 sm:$0xff]   ;;  %v1120_v0 = vld [vmem:[%s11148_s4] sm:$0xf] }
 0x15e   : > { %4372 = vmatpush1.bf16.msra.mxu0 %v7957_v1  ;;  %4458 = vmatpush1.bf16.msra.mxu1 %v7960_v2  ;;  %v3311_v1 = vld [vmem:[%s11150_s6] ss:$2 sm:$0xf]  ;;  %v1125_v2 = vrot.slane %v1120_v0, %v8884_v57 }
 0x15f   : > { %4373 = vmatprep.subr.bf16.mxu0 %v7965_v4  ;;  %4459 = vmatprep.subr.bf16.mxu1 %v7968_v7  ;;  %v1133_v4 = vrot.slane %v1120_v0, %v9102_v34  ;;  %v6903_v7 = vld [vmem:[%s11150_s6 + $0x1] ss:$2 sm:$0xf] }
 0x162   : > { %4374 = vmatpush1.bf16.msra.mxu0 %v7963_v26  ;;  %4460 = vmatpush1.bf16.msra.mxu1 %v7966_v8  ;;  %v1129_v26 = vrot.slane %v1120_v0, %v8860_v48  ;;  %v1137_v8 = vrot.slane %v1120_v0, %v9009_v58 }
 0x163   : > { %4375 = vmatprep.subr.bf16.mxu0 %v7971_v9  ;;  %4461 = vmatprep.subr.bf16.mxu1 %v7974_v10  ;;  %v3316_v9 = vrot.slane %v3311_v1, %v8884_v57  ;;  %v3324_v10 = vrot.slane %v3311_v1, %v9102_v34 }
 0x166   : > { %4376 = vmatpush1.bf16.msra.mxu0 %v7969_v11  ;;  %4462 = vmatpush1.bf16.msra.mxu1 %v7972_v14 }
 0x167   : > { %4377 = vmatprep.subr.bf16.mxu0 %v7977_v15  ;;  %4463 = vmatprep.subr.bf16.mxu1 %v7980_v16  ;;  %v3320_v15 = vrot.slane %v3311_v1, %v8860_v48  ;;  %v3328_v16 = vrot.slane %v3311_v1, %v9009_v58  ;;  %v8041_v1 = vld [vmem:[%s11152_s8 + $0x200] ss:$16 sps:$4 sm:$0xff]  }
 0x16a   : > { %4378 = vmatpush1.bf16.msra.mxu0 %v7975_v55  ;;  %4464 = vmatpush1.bf16.msra.mxu1 %v7978_v18  ;;  %v3347_v18 = vrot.slane %v6903_v7, %v8884_v57 }
 0x16b   : > { %4379 = vmatprep.subr.bf16.mxu0 %v7983_v12  ;;  %4465 = vmatprep.subr.bf16.mxu1 %v7986_v13  ;;  %v3355_v13 = vrot.slane %v6903_v7, %v9102_v34 }
 0x16e   : > { %4380 = vmatpush1.bf16.msra.mxu0 %v7981_v20  ;;  %4466 = vmatpush1.bf16.msra.mxu1 %v7984_v21 }
 0x16f   : > { %4381 = vmatprep.subr.bf16.mxu0 %v7989_v22  ;;  %4467 = vmatprep.subr.bf16.mxu1 %v7992_v23  ;;  %v3351_v23 = vrot.slane %v6903_v7, %v8860_v48 }
 0x172   : > { %4382 = vmatpush1.bf16.msra.mxu0 %v7987_v24  ;;  %4468 = vmatpush1.bf16.msra.mxu1 %v7990_v25  ;;  %v3359_v25 = vrot.slane %v6903_v7, %v9009_v58  ;;  %v8049_v7 = vld [vmem:[%s11152_s8 + $0x224] ss:$16 sps:$4 sm:$0xff]  }
 0x173   : > { %4383 = vmatprep.subr.bf16.mxu0 %v7995_v27  ;;  %4469 = vmatprep.subr.bf16.mxu1 %v7998_v28 }
 0x176   : > { %4384 = vmatpush1.bf16.msra.mxu0 %v7993_v29  ;;  %4470 = vmatpush1.bf16.msra.mxu1 %v7996_v30 }
 0x177   : > { %4385 = vmatprep.subr.bf16.mxu0 %v8001_v31  ;;  %4471 = vmatprep.subr.bf16.mxu1 %v8004_v32 }
 0x17a   : > { %4386 = vmatpush1.bf16.msra.mxu0 %v7999_v33  ;;  %4472 = vmatpush1.bf16.msra.mxu1 %v8002_v35 }
 0x17b   : > { %4387 = vmatprep.subr.bf16.mxu0 %v8007_v36  ;;  %4473 = vmatprep.subr.bf16.mxu1 %v8010_v51 }
 0x17e   : > { %4388 = vmatpush1.bf16.msra.mxu0 %v8005_v43  ;;  %4474 = vmatpush1.bf16.msra.mxu1 %v8008_v59 }
 0x17f   : > { %4389 = vmatprep.subr.bf16.mxu0 %v8013_v37  ;;  %4475 = vmatprep.subr.bf16.mxu1 %v8016_v38 }
 0x182   : > { %4390 = vmatpush1.bf16.msra.mxu0 %v8011_v39  ;;  %4476 = vmatpush1.bf16.msra.mxu1 %v8014_v40 }
 0x183   : > { %4391 = vmatprep.subr.bf16.mxu0 %v8019_v41  ;;  %4477 = vmatprep.subr.bf16.mxu1 %v8022_v3 }
 0x186   : > { %4392 = vmatpush1.bf16.msra.mxu0 %v8017_v42  ;;  %4478 = vmatpush1.bf16.msra.mxu1 %v8020_v44 }
 0x187   : > { %4393 = vmatprep.subr.bf16.mxu0 %v8025_v45  ;;  %4479 = vmatprep.subr.bf16.mxu1 %v8028_v50 }
 0x18a   : > { %4394 = vmatpush1.bf16.msra.mxu0 %v8023_v47  ;;  %4480 = vmatpush1.bf16.msra.mxu1 %v8026_v49 }
 0x18b   : > { %4395 = vmatprep.subr.bf16.mxu0 %v8031_v52  ;;  %4481 = vmatprep.subr.bf16.mxu1 %v8034_v53 }
 0x18e   : > { %4396 = vmatpush1.bf16.msra.mxu0 %v8029_v54  ;;  %4482 = vmatpush1.bf16.msra.mxu1 %v8032_v60 }
 0x18f   : > { %4397 = vmatprep.subr.bf16.mxu0 %v8037_v56  ;;  %4483 = vmatprep.subr.bf16.mxu1 %v8040_v17 }
 0x192   : > { %4398 = vmatpush1.bf16.msra.mxu0 %v8035_v19  ;;  %4484 = vmatpush1.bf16.msra.mxu1 %v8038_v61 }
 0x193   : > { %4410 = vmatprep.subr.bf16.mxu0 %v8043_v62  ;;  %4496 = vmatprep.subr.bf16.mxu1 %v8046_v63 }
 0x228   : > { %v2948_v11 = vpop.f32.mrb[0].mxu0  ;;  %v3163_v14 = vpop.f32.mrb[0].mxu1 }
 0x229   : > { %v7324_v55 = vadd.f32 %v2948_v11, %v1125_v2  ;;  %v7328_v12 = vadd.f32 %v3163_v14, %v1133_v4  ;;  %v2950_v20 = vpop.f32.mrb[1].mxu0  ;;  %v3165_v21 = vpop.f32.mrb[1].mxu1  ;;  %v8058_v11 = vld [vmem:[%s11152_s8 + $0x24c] ss:$16 sps:$4 sm:$0xff]   ;;  %v8053_v14 = vld [vmem:[%s11152_s8 + $0x240] ss:$16 sps:$4 sm:$0xff]  }
 0x22a   : > { %v7325_v22 = vadd.f32 %v2950_v20, %v1129_v26  ;;  %v7329_v24 = vadd.f32 %v3165_v21, %v1137_v8  ;;  %v2952_v27 = vpop.f32.mrb[2].mxu0  ;;  %v3167_v28 = vpop.f32.mrb[2].mxu1  ;;  %v8070_v20 = vld [vmem:[%s11152_s8 + $0x28c] ss:$16 sps:$4 sm:$0xff]   ;;  %v8065_v21 = vld [vmem:[%s11152_s8 + $0x280] ss:$16 sps:$4 sm:$0xff]  }
 0x22b   : > { %v3333_v29 = vmul.f32 %v7324_v55, %v3316_v9  ;;  %v3335_v30 = vmul.f32 %v7328_v12, %v3324_v10  ;;  %v7326_v31 = vadd.f32 %v2952_v27, %v1125_v2  ;;  %v7330_v32 = vadd.f32 %v3167_v28, %v1133_v4  ;;  %v2954_v33 = vpop.f32.mrb[3].mxu0  ;;  %v3169_v35 = vpop.f32.mrb[3].mxu1  ;;  %v8044_v2 = vld [vmem:[%s11152_s8 + $0x208] ss:$16 sps:$4 sm:$0xff]   ;;  %v8064_v55 = vld [vmem:[%s11152_s8 + $0x26c] ss:$16 sps:$4 sm:$0xff]  }
 0x22c   : > { %v3334_v36 = vmul.f32 %v7325_v22, %v3320_v15  ;;  %v3336_v51 = vmul.f32 %v7329_v24, %v3328_v16  ;;  %v7327_v43 = vadd.f32 %v2954_v33, %v1129_v26  ;;  %v7331_v59 = vadd.f32 %v3169_v35, %v1137_v8  ;;  %v8052_v26 = vld [vmem:[%s11152_s8 + $0x22c] ss:$16 sps:$4 sm:$0xff]   ;;  %v8047_v8 = vld [vmem:[%s11152_s8 + $0x220] ss:$16 sps:$4 sm:$0xff]   ;;  %v8062_v12 = vld [vmem:[%s11152_s8 + $0x268] ss:$16 sps:$4 sm:$0xff]  }
 0x22d   : > { %v3364_v37 = vadd.f32 %v3347_v18, %v3333_v29  ;;  %v3366_v38 = vadd.f32 %v3355_v13, %v3335_v30  ;;  %v3337_v39 = vmul.f32 %v7326_v31, %v3316_v9  ;;  %v3339_v40 = vmul.f32 %v7330_v32, %v3324_v10  ;;  %v8050_v9 = vld [vmem:[%s11152_s8 + $0x228] ss:$16 sps:$4 sm:$0xff]   ;;  %v8055_v10 = vld [vmem:[%s11152_s8 + $0x244] ss:$16 sps:$4 sm:$0xff]   ;;  %v8076_v24 = vld [vmem:[%s11152_s8 + $0x2ac] ss:$16 sps:$4 sm:$0xff]  }
 0x22e   : > { %v3365_v41 = vadd.f32 %v3351_v23, %v3334_v36  ;;  %v3367_v3 = vadd.f32 %v3359_v25, %v3336_v51  ;;  %v3338_v42 = vmul.f32 %v7327_v43, %v3320_v15  ;;  %v3340_v44 = vmul.f32 %v7331_v59, %v3328_v16  ;;  %v8056_v15 = vld [vmem:[%s11152_s8 + $0x248] ss:$16 sps:$4 sm:$0xff]   ;;  %v8061_v16 = vld [vmem:[%s11152_s8 + $0x264] ss:$16 sps:$4 sm:$0xff]   ;;  %v8082_v29 = vld [vmem:[%s11152_s8 + $0x2cc] ss:$16 sps:$4 sm:$0xff]  }
 0x22f   : > { %v3368_v45 = vadd.f32 %v3347_v18, %v3337_v39  ;;  %v3370_v47 = vadd.f32 %v3355_v13, %v3339_v40  ;;  %v3372_v52 = vmax.f32 %v3364_v37, 0.0  ;;  %v3374_v53 = vmax.f32 %v3366_v38, 0.0  ;;  %v8059_v18 = vld [vmem:[%s11152_s8 + $0x260] ss:$16 sps:$4 sm:$0xff]   ;;  %v8067_v13 = vld [vmem:[%s11152_s8 + $0x284] ss:$16 sps:$4 sm:$0xff]  }
 0x230   : > { %v3369_v49 = vadd.f32 %v3351_v23, %v3338_v42  ;;  %v3371_v50 = vadd.f32 %v3359_v25, %v3340_v44  ;;  %v3373_v56 = vmax.f32 %v3365_v41, 0.0  ;;  %v3375_v17 = vmax.f32 %v3367_v3, 0.0  ;;  %v8068_v22 = vld [vmem:[%s11152_s8 + $0x288] ss:$16 sps:$4 sm:$0xff]   ;;  %v8073_v23 = vld [vmem:[%s11152_s8 + $0x2a4] ss:$16 sps:$4 sm:$0xff]  }
 0x231   : > { %v3376_v54 = vmax.f32 %v3368_v45, 0.0  ;;  %v3378_v60 = vmax.f32 %v3370_v47, 0.0  ;;  %v8071_v25 = vld [vmem:[%s11152_s8 + $0x2a0] ss:$16 sps:$4 sm:$0xff]   ;;  %v8074_v27 = vld [vmem:[%s11152_s8 + $0x2a8] ss:$16 sps:$4 sm:$0xff]  }
 0x232   : > { %v3377_v19 = vmax.f32 %v3369_v49, 0.0  ;;  %v3379_v61 = vmax.f32 %v3371_v50, 0.0  ;;  %v8079_v28 = vld [vmem:[%s11152_s8 + $0x2c4] ss:$16 sps:$4 sm:$0xff]   ;;  %v8077_v30 = vld [vmem:[%s11152_s8 + $0x2c0] ss:$16 sps:$4 sm:$0xff]  }
 0x233   : > { %v3595_v62 = vpack.c.bf16 %v3376_v54, %v3372_v52  ;;  %v10035_v63 = vpack.c.bf16 %v3378_v60, %v3374_v53  ;;  %v8080_v31 = vld [vmem:[%s11152_s8 + $0x2c8] ss:$16 sps:$4 sm:$0xff]   ;;  %v8085_v32 = vld [vmem:[%s11152_s8 + $0x2e4] ss:$16 sps:$4 sm:$0xff]   ;;  %v8088_v33 = vld [vmem:[%s11152_s8 + $0x2ec] ss:$16 sps:$4 sm:$0xff]  }
 0x234   : > { %v3596_v0 = vpack.c.bf16 %v3377_v19, %v3373_v56  ;;  %v3598_v4 = vpack.c.bf16 %v3379_v61, %v3375_v17  ;;  %v8083_v35 = vld [vmem:[%s11152_s8 + $0x2e0] ss:$16 sps:$4 sm:$0xff]   ;;  %v8086_v36 = vld [vmem:[%s11152_s8 + $0x2e8] ss:$16 sps:$4 sm:$0xff]   ;;  %v8091_v51 = vld [vmem:[%s11152_s8 + $0x304] ss:$16 sps:$4 sm:$0xff]  }
 0x235   : > { %v8094_v43 = vld [vmem:[%s11152_s8 + $0x30c] ss:$16 sps:$4 sm:$0xff]   ;;  %v8089_v59 = vld [vmem:[%s11152_s8 + $0x300] ss:$16 sps:$4 sm:$0xff]   ;;  %v8092_v37 = vld [vmem:[%s11152_s8 + $0x308] ss:$16 sps:$4 sm:$0xff]  }
 0x236   : > { %4399 = vmatprep.mubr.bf16.mxu0 %v3596_v0  ;;  %4485 = vmatprep.mubr.bf16.mxu1 %v3596_v0  ;;  %v8097_v38 = vld [vmem:[%s11152_s8 + $0x324] ss:$16 sps:$4 sm:$0xff]   ;;  %v8100_v39 = vld [vmem:[%s11152_s8 + $0x32c] ss:$16 sps:$4 sm:$0xff]   ;;  %v8095_v40 = vld [vmem:[%s11152_s8 + $0x320] ss:$16 sps:$4 sm:$0xff]  }
 0x237   : > { %4400 = vmatmul.mubr.bf16.vlgmr.msra.gmra.mrb[4].mxu0 %v3595_v62  ;;  %4486 = vmatmul.mubr.bf16.vlgmr.msra.gmra.mrb[4].mxu1 %v3595_v62  ;;  %v8098_v41 = vld [vmem:[%s11152_s8 + $0x328] ss:$16 sps:$4 sm:$0xff]   ;;  %v8103_v3 = vld [vmem:[%s11152_s8 + $0x344] ss:$16 sps:$4 sm:$0xff]   ;;  %v8106_v42 = vld [vmem:[%s11152_s8 + $0x34c] ss:$16 sps:$4 sm:$0xff]  }
 0x238   : > { %4411 = vmatpush1.bf16.msra.mxu0 %v8041_v1  ;;  %4497 = vmatpush1.bf16.msra.mxu1 %v8044_v2  ;;  %v8101_v44 = vld [vmem:[%s11152_s8 + $0x340] ss:$16 sps:$4 sm:$0xff]   ;;  %v8104_v45 = vld [vmem:[%s11152_s8 + $0x348] ss:$16 sps:$4 sm:$0xff]   ;;  %v8109_v47 = vld [vmem:[%s11152_s8 + $0x364] ss:$16 sps:$4 sm:$0xff]  }
 0x239   : > { %4442 = vmatprep.mubr.bf16.mxu0 %v3598_v4  ;;  %4528 = vmatprep.mubr.bf16.mxu1 %v3598_v4  ;;  %v8112_v49 = vld [vmem:[%s11152_s8 + $0x36c] ss:$16 sps:$4 sm:$0xff]   ;;  %v8107_v50 = vld [vmem:[%s11152_s8 + $0x360] ss:$16 sps:$4 sm:$0xff]   ;;  %v8110_v52 = vld [vmem:[%s11152_s8 + $0x368] ss:$16 sps:$4 sm:$0xff]  }
 0x23a   : > { %4412 = vmatprep.subr.bf16.mxu0 %v8049_v7  ;;  %4498 = vmatprep.subr.bf16.mxu1 %v8052_v26  ;;  %v8115_v53 = vld [vmem:[%s11152_s8 + $0x384] ss:$16 sps:$4 sm:$0xff]   ;;  %v8118_v54 = vld [vmem:[%s11152_s8 + $0x38c] ss:$16 sps:$4 sm:$0xff]   ;;  %v8113_v19 = vld [vmem:[%s11152_s8 + $0x380] ss:$16 sps:$4 sm:$0xff]  }
 0x23b   : > { %v10188_v60 = vld [vmem:[%s10179_s1] sm:$0xff]  ;;  %v8116_v61 = vld [vmem:[%s11152_s8 + $0x388] ss:$16 sps:$4 sm:$0xff]   ;;  %v8124_v0 = vld [vmem:[%s11152_s8 + $0x3ac] ss:$16 sps:$4 sm:$0xff]  }
 0x23c   : > { %4413 = vmatpush1.bf16.msra.mxu0 %v8047_v8  ;;  %4499 = vmatpush1.bf16.msra.mxu1 %v8050_v9  ;;  %v10191_v56 = vld [vmem:[%s10179_s1 + $0x1c] sm:$0xff]  ;;  %v8121_v62 = vld [vmem:[%s11152_s8 + $0x3a4] ss:$16 sps:$4 sm:$0xff]   ;;  %v3181_v1 = vunpack.c.h.bf16 %v10188_v60  ;;  %v8122_v8 = vld [vmem:[%s11152_s8 + $0x3a8] ss:$16 sps:$4 sm:$0xff]  }
 0x23d   : > { %4414 = vmatprep.subr.bf16.mxu0 %v8055_v10  ;;  %4500 = vmatprep.subr.bf16.mxu1 %v8058_v11  ;;  %v10196_v17 = vld [vmem:[%s11149_s5] ss:$2 sm:$0x7f]  ;;  %v3188_v2 = vunpack.c.h.bf16 %v10191_v56  ;;  %v10217_v7 = vld [vmem:[%s11149_s5 + $0x1] ss:$2 sm:$0x7f] }
 0x23e   : > { %v3203_v4 = vrot.slane %v10196_v17, %v8860_v48  ;;  %v8119_v26 = vld [vmem:[%s11152_s8 + $0x3a0] ss:$16 sps:$4 sm:$0xff]   ;;  %v8127_v9 = vld [vmem:[%s11152_s8 + $0x3c4] ss:$16 sps:$4 sm:$0xff]   ;;  %v8130_v10 = vld [vmem:[%s11152_s8 + $0x3cc] ss:$16 sps:$4 sm:$0xff]  }
 0x240   : > { %4415 = vmatpush1.bf16.msra.mxu0 %v8053_v14  ;;  %4501 = vmatpush1.bf16.msra.mxu1 %v8056_v15  ;;  %v3232_v11 = vmul.f32 %v3203_v4, %v3181_v1  ;;  %v3239_v14 = vmul.f32 %v3203_v4, %v3188_v2  ;;  %v3255_v15 = vrot.slane %v10217_v7, %v8860_v48  ;;  %v8187_v1 = vld [vmem:[%s11151_s7 + $0x104] ss:$16 sps:$4 sm:$0xff]   ;;  %v8190_v2 = vld [vmem:[%s11151_s7 + $0x10c] ss:$16 sps:$4 sm:$0xff]   ;;  %v8185_v4 = vld [vmem:[%s11151_s7 + $0x100] ss:$16 sps:$4 sm:$0xff]  }
 0x241   : > { %4416 = vmatprep.subr.bf16.mxu0 %v8061_v16  ;;  %4502 = vmatprep.subr.bf16.mxu1 %v8064_v55  ;;  %v8125_v16 = vld [vmem:[%s11152_s8 + $0x3c0] ss:$16 sps:$4 sm:$0xff]   ;;  %v8128_v55 = vld [vmem:[%s11152_s8 + $0x3c8] ss:$16 sps:$4 sm:$0xff]  }
 0x244   : > { %4417 = vmatpush1.bf16.msra.mxu0 %v8059_v18  ;;  %4503 = vmatpush1.bf16.msra.mxu1 %v8062_v12  ;;  %v8133_v18 = vld [vmem:[%s11152_s8 + $0x3e4] ss:$16 sps:$4 sm:$0xff]   ;;  %v8136_v12 = vld [vmem:[%s11152_s8 + $0x3ec] ss:$16 sps:$4 sm:$0xff]  }
 0x245   : > { %4418 = vmatprep.subr.bf16.mxu0 %v8067_v13  ;;  %4504 = vmatprep.subr.bf16.mxu1 %v8070_v20  ;;  %v3284_v13 = vadd.f32 %v3255_v15, %v3232_v11  ;;  %v3291_v20 = vadd.f32 %v3255_v15, %v3239_v14  ;;  %v8194_v11 = vld [vmem:[%s11151_s7 + $0x128] ss:$16 sps:$4 sm:$0xff]   ;;  %v8199_v14 = vld [vmem:[%s11151_s7 + $0x144] ss:$16 sps:$4 sm:$0xff]   ;;  %v8202_v15 = vld [vmem:[%s11151_s7 + $0x14c] ss:$16 sps:$4 sm:$0xff]  }
 0x248   : > { %4419 = vmatpush1.bf16.msra.mxu0 %v8065_v21  ;;  %4505 = vmatpush1.bf16.msra.mxu1 %v8068_v22  ;;  %v8131_v21 = vld [vmem:[%s11152_s8 + $0x3e0] ss:$16 sps:$4 sm:$0xff]   ;;  %v8134_v22 = vld [vmem:[%s11152_s8 + $0x3e8] ss:$16 sps:$4 sm:$0xff]  }
 0x249   : > { %4420 = vmatprep.subr.bf16.mxu0 %v8073_v23  ;;  %4506 = vmatprep.subr.bf16.mxu1 %v8076_v24  ;;  %v8139_v23 = vld [vmem:[%s11151_s7 + $0x4] ss:$16 sps:$4 sm:$0xff]   ;;  %v8142_v24 = vld [vmem:[%s11151_s7 + $0xc] ss:$16 sps:$4 sm:$0xff]  }
 0x24c   : > { %4421 = vmatpush1.bf16.msra.mxu0 %v8071_v25  ;;  %4507 = vmatpush1.bf16.msra.mxu1 %v8074_v27  ;;  %v3298_v25 = vmax.f32 %v3284_v13, 0.0  ;;  %v3305_v27 = vmax.f32 %v3291_v20, 0.0  ;;  %v8203_v13 = vld [vmem:[%s11151_s7 + $0x160] ss:$16 sps:$4 sm:$0xff]   ;;  %v8206_v20 = vld [vmem:[%s11151_s7 + $0x168] ss:$16 sps:$4 sm:$0xff]  }
 0x24d   : > { %4422 = vmatprep.subr.bf16.mxu0 %v8079_v28  ;;  %4508 = vmatprep.subr.bf16.mxu1 %v8082_v29  ;;  %v8137_v28 = vld [vmem:[%s11151_s7] ss:$16 sps:$4 sm:$0xff]   ;;  %v8140_v29 = vld [vmem:[%s11151_s7 + $0x8] ss:$16 sps:$4 sm:$0xff]  }
 0x250   : > { %4423 = vmatpush1.bf16.msra.mxu0 %v8077_v30  ;;  %4509 = vmatpush1.bf16.msra.mxu1 %v8080_v31  ;;  %v8145_v30 = vld [vmem:[%s11151_s7 + $0x24] ss:$16 sps:$4 sm:$0xff]   ;;  %v8148_v31 = vld [vmem:[%s11151_s7 + $0x2c] ss:$16 sps:$4 sm:$0xff]  }
 0x251   : > { %4424 = vmatprep.subr.bf16.mxu0 %v8085_v32  ;;  %4510 = vmatprep.subr.bf16.mxu1 %v8088_v33  ;;  %v3381_v32 = vpack.c.bf16 %v3305_v27, %v3298_v25  ;;  %v8143_v33 = vld [vmem:[%s11151_s7 + $0x20] ss:$16 sps:$4 sm:$0xff]   ;;  %v3199_v25 = vrot.slane %v10196_v17, %v8884_v57  ;;  %v10408_v27 = vld [vmem:[%s10179_s1 + $0x8] sm:$0xff] }
 0x254   : > { %4425 = vmatpush1.bf16.msra.mxu0 %v8083_v35  ;;  %4511 = vmatpush1.bf16.msra.mxu1 %v8086_v36  ;;  %v8146_v35 = vld [vmem:[%s11151_s7 + $0x28] ss:$16 sps:$4 sm:$0xff]   ;;  %v8151_v36 = vld [vmem:[%s11151_s7 + $0x44] ss:$16 sps:$4 sm:$0xff]  }
 0x255   : > { %4426 = vmatprep.subr.bf16.mxu0 %v8091_v51  ;;  %4512 = vmatprep.subr.bf16.mxu1 %v8094_v43  ;;  %v8149_v51 = vld [vmem:[%s11151_s7 + $0x40] ss:$16 sps:$4 sm:$0xff]   ;;  %v8152_v43 = vld [vmem:[%s11151_s7 + $0x48] ss:$16 sps:$4 sm:$0xff]  }
 0x258   : > { %4427 = vmatpush1.bf16.msra.mxu0 %v8089_v59  ;;  %4513 = vmatpush1.bf16.msra.mxu1 %v8092_v37  ;;  %v8157_v59 = vld [vmem:[%s11151_s7 + $0x64] ss:$16 sps:$4 sm:$0xff]   ;;  %v8160_v37 = vld [vmem:[%s11151_s7 + $0x6c] ss:$16 sps:$4 sm:$0xff]  }
 0x259   : > { %4428 = vmatprep.subr.bf16.mxu0 %v8097_v38  ;;  %4514 = vmatprep.subr.bf16.mxu1 %v8100_v39  ;;  %v8155_v38 = vld [vmem:[%s11151_s7 + $0x60] ss:$16 sps:$4 sm:$0xff]   ;;  %v8158_v39 = vld [vmem:[%s11151_s7 + $0x68] ss:$16 sps:$4 sm:$0xff]  }
 0x25c   : > { %4429 = vmatpush1.bf16.msra.mxu0 %v8095_v40  ;;  %4515 = vmatpush1.bf16.msra.mxu1 %v8098_v41  ;;  %v8163_v40 = vld [vmem:[%s11151_s7 + $0x84] ss:$16 sps:$4 sm:$0xff]   ;;  %v8166_v41 = vld [vmem:[%s11151_s7 + $0x8c] ss:$16 sps:$4 sm:$0xff]  }
 0x25d   : > { %4430 = vmatprep.subr.bf16.mxu0 %v8103_v3  ;;  %4516 = vmatprep.subr.bf16.mxu1 %v8106_v42  ;;  %v8161_v3 = vld [vmem:[%s11151_s7 + $0x80] ss:$16 sps:$4 sm:$0xff]   ;;  %v8164_v42 = vld [vmem:[%s11151_s7 + $0x88] ss:$16 sps:$4 sm:$0xff]  }
 0x260   : > { %4431 = vmatpush1.bf16.msra.mxu0 %v8101_v44  ;;  %4517 = vmatpush1.bf16.msra.mxu1 %v8104_v45  ;;  %v8169_v44 = vld [vmem:[%s11151_s7 + $0xa4] ss:$16 sps:$4 sm:$0xff]   ;;  %v8172_v45 = vld [vmem:[%s11151_s7 + $0xac] ss:$16 sps:$4 sm:$0xff]  }
 0x261   : > { %4432 = vmatprep.subr.bf16.mxu0 %v8109_v47  ;;  %4518 = vmatprep.subr.bf16.mxu1 %v8112_v49  ;;  %v8167_v47 = vld [vmem:[%s11151_s7 + $0xa0] ss:$16 sps:$4 sm:$0xff]   ;;  %v8170_v49 = vld [vmem:[%s11151_s7 + $0xa8] ss:$16 sps:$4 sm:$0xff]  }
 0x264   : > { %4433 = vmatpush1.bf16.msra.mxu0 %v8107_v50  ;;  %4519 = vmatpush1.bf16.msra.mxu1 %v8110_v52  ;;  %v8175_v50 = vld [vmem:[%s11151_s7 + $0xc4] ss:$16 sps:$4 sm:$0xff]   ;;  %v8178_v52 = vld [vmem:[%s11151_s7 + $0xcc] ss:$16 sps:$4 sm:$0xff]  }
 0x265   : > { %4434 = vmatprep.subr.bf16.mxu0 %v8115_v53  ;;  %4520 = vmatprep.subr.bf16.mxu1 %v8118_v54  ;;  %v8173_v53 = vld [vmem:[%s11151_s7 + $0xc0] ss:$16 sps:$4 sm:$0xff]   ;;  %v8176_v54 = vld [vmem:[%s11151_s7 + $0xc8] ss:$16 sps:$4 sm:$0xff]  }
 0x268   : > { %4435 = vmatpush1.bf16.msra.mxu0 %v8113_v19  ;;  %4521 = vmatpush1.bf16.msra.mxu1 %v8116_v61  ;;  %v8181_v19 = vld [vmem:[%s11151_s7 + $0xe4] ss:$16 sps:$4 sm:$0xff]   ;;  %v8184_v61 = vld [vmem:[%s11151_s7 + $0xec] ss:$16 sps:$4 sm:$0xff]  }
 0x269   : > { %4436 = vmatprep.subr.bf16.mxu0 %v8121_v62  ;;  %4522 = vmatprep.subr.bf16.mxu1 %v8124_v0  ;;  %v8179_v62 = vld [vmem:[%s11151_s7 + $0xe0] ss:$16 sps:$4 sm:$0xff]   ;;  %v8182_v0 = vld [vmem:[%s11151_s7 + $0xe8] ss:$16 sps:$4 sm:$0xff]  }
 0x26c   : > { %4437 = vmatpush1.bf16.msra.mxu0 %v8119_v26  ;;  %4523 = vmatpush1.bf16.msra.mxu1 %v8122_v8  ;;  %v8188_v26 = vld [vmem:[%s11151_s7 + $0x108] ss:$16 sps:$4 sm:$0xff]   ;;  %v8193_v8 = vld [vmem:[%s11151_s7 + $0x124] ss:$16 sps:$4 sm:$0xff]  }
 0x26d   : > { %4438 = vmatprep.subr.bf16.mxu0 %v8127_v9  ;;  %4524 = vmatprep.subr.bf16.mxu1 %v8130_v10  ;;  %v8196_v9 = vld [vmem:[%s11151_s7 + $0x12c] ss:$16 sps:$4 sm:$0xff]   ;;  %v8191_v10 = vld [vmem:[%s11151_s7 + $0x120] ss:$16 sps:$4 sm:$0xff]  }
 0x270   : > { %4439 = vmatpush1.bf16.msra.mxu0 %v8125_v16  ;;  %4525 = vmatpush1.bf16.msra.mxu1 %v8128_v55  ;;  %v8197_v16 = vld [vmem:[%s11151_s7 + $0x140] ss:$16 sps:$4 sm:$0xff]   ;;  %v8200_v55 = vld [vmem:[%s11151_s7 + $0x148] ss:$16 sps:$4 sm:$0xff]  }
 0x271   : > { %4440 = vmatprep.subr.bf16.mxu0 %v8133_v18  ;;  %4526 = vmatprep.subr.bf16.mxu1 %v8136_v12  ;;  %v8205_v18 = vld [vmem:[%s11151_s7 + $0x164] ss:$16 sps:$4 sm:$0xff]   ;;  %v8208_v12 = vld [vmem:[%s11151_s7 + $0x16c] ss:$16 sps:$4 sm:$0xff]  }
 0x274   : > { %4441 = vmatpush1.bf16.msra.mxu0 %v8131_v21  ;;  %4527 = vmatpush1.bf16.msra.mxu1 %v8134_v22  ;;  %v8211_v21 = vld [vmem:[%s11151_s7 + $0x184] ss:$16 sps:$4 sm:$0xff]   ;;  %v8214_v22 = vld [vmem:[%s11151_s7 + $0x18c] ss:$16 sps:$4 sm:$0xff]  }
 0x275   : > { %5583 = vmatprep.subr.bf16.mxu0 %v8139_v23  ;;  %5755 = vmatprep.subr.bf16.mxu1 %v8142_v24  ;;  %v3180_v23 = vunpack.c.l.bf16 %v10188_v60  ;;  %v3187_v24 = vunpack.c.l.bf16 %v10191_v56  ;;  %v8217_v60 = vld [vmem:[%s11151_s7 + $0x1a4] ss:$16 sps:$4 sm:$0xff]   ;;  %v8220_v56 = vld [vmem:[%s11151_s7 + $0x1ac] ss:$16 sps:$4 sm:$0xff]  }
 0x277   : > { %4443 = vmatmul.mubr.bf16.vlgmr.msra.gmra.mrb[4].mxu0 %v10035_v63  ;;  %4529 = vmatmul.mubr.bf16.vlgmr.msra.gmra.mrb[4].mxu1 %v10035_v63  ;;  %v8154_v63 = vld [vmem:[%s11151_s7 + $0x4c] ss:$16 sps:$4 sm:$0xff]  }
 0x278   : > { %5584 = vmatpush1.bf16.msra.mxu0 %v8137_v28  ;;  %5756 = vmatpush1.bf16.msra.mxu1 %v8140_v29  ;;  %v10411_v28 = vld [vmem:[%s10179_s1 + $0x24] sm:$0xff]  ;;  %v8209_v29 = vld [vmem:[%s11151_s7 + $0x180] ss:$16 sps:$4 sm:$0xff]  }
 0x279   : > { %5585 = vmatprep.subr.bf16.mxu0 %v8145_v30  ;;  %5757 = vmatprep.subr.bf16.mxu1 %v8148_v31  ;;  %v8212_v30 = vld [vmem:[%s11151_s7 + $0x188] ss:$16 sps:$4 sm:$0xff]   ;;  %v3183_v31 = vunpack.c.h.bf16 %v10408_v27 }
 0x27a   : > { %5615 = vmatprep.mubr.bf16.mxu0 %v3381_v32  ;;  %5787 = vmatprep.mubr.bf16.mxu1 %v3381_v32  ;;  %v3190_v32 = vunpack.c.h.bf16 %v10411_v28 }
 0x27c   : > { %5586 = vmatpush1.bf16.msra.mxu0 %v8143_v33  ;;  %5758 = vmatpush1.bf16.msra.mxu1 %v8146_v35  ;;  %v3211_v33 = vrot.slane %v10196_v17, %v9009_v58  ;;  %v3231_v35 = vmul.f32 %v3199_v25, %v3180_v23  ;;  %v8262_v23 = vld [vmem:[%s11151_s7 + $0x28c] ss:$16 sps:$4 sm:$0xff]  }
 0x27d   : > { %5587 = vmatprep.subr.bf16.mxu0 %v8151_v36  ;;  %5759 = vmatprep.subr.bf16.mxu1 %v8154_v63  ;;  %v3238_v36 = vmul.f32 %v3199_v25, %v3187_v24  ;;  %v3251_v63 = vrot.slane %v10217_v7, %v8884_v57  ;;  %v8257_v24 = vld [vmem:[%s11151_s7 + $0x280] ss:$16 sps:$4 sm:$0xff]   ;;  %v8260_v25 = vld [vmem:[%s11151_s7 + $0x288] ss:$16 sps:$4 sm:$0xff]  }
 0x280   : > { %5588 = vmatpush1.bf16.msra.mxu0 %v8149_v51  ;;  %5760 = vmatpush1.bf16.msra.mxu1 %v8152_v43  ;;  %v8215_v51 = vld [vmem:[%s11151_s7 + $0x1a0] ss:$16 sps:$4 sm:$0xff]   ;;  %v8218_v43 = vld [vmem:[%s11151_s7 + $0x1a8] ss:$16 sps:$4 sm:$0xff]  }
 0x281   : > { %5589 = vmatprep.subr.bf16.mxu0 %v8157_v59  ;;  %5761 = vmatprep.subr.bf16.mxu1 %v8160_v37  ;;  %v8223_v59 = vld [vmem:[%s11151_s7 + $0x1c4] ss:$16 sps:$4 sm:$0xff]   ;;  %v8226_v37 = vld [vmem:[%s11151_s7 + $0x1cc] ss:$16 sps:$4 sm:$0xff]  }
 0x284   : > { %5590 = vmatpush1.bf16.msra.mxu0 %v8155_v38  ;;  %5762 = vmatpush1.bf16.msra.mxu1 %v8158_v39  ;;  %v3234_v38 = vmul.f32 %v3211_v33, %v3183_v31  ;;  %v3241_v39 = vmul.f32 %v3211_v33, %v3190_v32  ;;  %v8266_v31 = vld [vmem:[%s11151_s7 + $0x2a8] ss:$16 sps:$4 sm:$0xff]   ;;  %v8271_v32 = vld [vmem:[%s11151_s7 + $0x2c4] ss:$16 sps:$4 sm:$0xff]   ;;  %v8274_v33 = vld [vmem:[%s11151_s7 + $0x2cc] ss:$16 sps:$4 sm:$0xff]  }
 0x285   : > { %5591 = vmatprep.subr.bf16.mxu0 %v8163_v40  ;;  %5763 = vmatprep.subr.bf16.mxu1 %v8166_v41  ;;  %v3263_v40 = vrot.slane %v10217_v7, %v9009_v58  ;;  %v3283_v41 = vadd.f32 %v3251_v63, %v3231_v35  ;;  %v8269_v35 = vld [vmem:[%s11151_s7 + $0x2c0] ss:$16 sps:$4 sm:$0xff]  }
 0x288   : > { %5592 = vmatpush1.bf16.msra.mxu0 %v8161_v3  ;;  %5764 = vmatpush1.bf16.msra.mxu1 %v8164_v42  ;;  %v3290_v3 = vadd.f32 %v3251_v63, %v3238_v36  ;;  %v8221_v42 = vld [vmem:[%s11151_s7 + $0x1c0] ss:$16 sps:$4 sm:$0xff]   ;;  %v8272_v36 = vld [vmem:[%s11151_s7 + $0x2c8] ss:$16 sps:$4 sm:$0xff]   ;;  %v8277_v63 = vld [vmem:[%s11151_s7 + $0x2e4] ss:$16 sps:$4 sm:$0xff]  }
 0x289   : > { %5593 = vmatprep.subr.bf16.mxu0 %v8169_v44  ;;  %5765 = vmatprep.subr.bf16.mxu1 %v8172_v45  ;;  %v8224_v44 = vld [vmem:[%s11151_s7 + $0x1c8] ss:$16 sps:$4 sm:$0xff]   ;;  %v8229_v45 = vld [vmem:[%s11151_s7 + $0x1e4] ss:$16 sps:$4 sm:$0xff]  }
 0x28c   : > { %5594 = vmatpush1.bf16.msra.mxu0 %v8167_v47  ;;  %5766 = vmatpush1.bf16.msra.mxu1 %v8170_v49  ;;  %v8232_v47 = vld [vmem:[%s11151_s7 + $0x1ec] ss:$16 sps:$4 sm:$0xff]   ;;  %v3286_v49 = vadd.f32 %v3263_v40, %v3234_v38 }
 0x28d   : > { %5595 = vmatprep.subr.bf16.mxu0 %v8175_v50  ;;  %5767 = vmatprep.subr.bf16.mxu1 %v8178_v52  ;;  %v3293_v50 = vadd.f32 %v3263_v40, %v3241_v39  ;;  %v3297_v52 = vmax.f32 %v3283_v41, 0.0  ;;  %v8286_v38 = vld [vmem:[%s11151_s7 + $0x30c] ss:$16 sps:$4 sm:$0xff]   ;;  %v8281_v39 = vld [vmem:[%s11151_s7 + $0x300] ss:$16 sps:$4 sm:$0xff]  }
 0x28e   : > { %v8284_v40 = vld [vmem:[%s11151_s7 + $0x308] ss:$16 sps:$4 sm:$0xff]   ;;  %v8289_v41 = vld [vmem:[%s11151_s7 + $0x324] ss:$16 sps:$4 sm:$0xff]  }
 0x290   : > { %5596 = vmatpush1.bf16.msra.mxu0 %v8173_v53  ;;  %5768 = vmatpush1.bf16.msra.mxu1 %v8176_v54  ;;  %v3304_v53 = vmax.f32 %v3290_v3, 0.0  ;;  %v8227_v54 = vld [vmem:[%s11151_s7 + $0x1e0] ss:$16 sps:$4 sm:$0xff]   ;;  %v8292_v3 = vld [vmem:[%s11151_s7 + $0x32c] ss:$16 sps:$4 sm:$0xff]  }
 0x291   : > { %5597 = vmatprep.subr.bf16.mxu0 %v8181_v19  ;;  %5769 = vmatprep.subr.bf16.mxu1 %v8184_v61  ;;  %v8230_v19 = vld [vmem:[%s11151_s7 + $0x1e8] ss:$16 sps:$4 sm:$0xff]   ;;  %v8235_v61 = vld [vmem:[%s11151_s7 + $0x204] ss:$16 sps:$4 sm:$0xff]  }
 0x294   : > { %5598 = vmatpush1.bf16.msra.mxu0 %v8179_v62  ;;  %5770 = vmatpush1.bf16.msra.mxu1 %v8182_v0  ;;  %v8238_v62 = vld [vmem:[%s11151_s7 + $0x20c] ss:$16 sps:$4 sm:$0xff]   ;;  %v3300_v0 = vmax.f32 %v3286_v49, 0.0  ;;  %v8293_v49 = vld [vmem:[%s11151_s7 + $0x340] ss:$16 sps:$4 sm:$0xff]  }
 0x295   : > { %5599 = vmatprep.subr.bf16.mxu0 %v8187_v1  ;;  %5771 = vmatprep.subr.bf16.mxu1 %v8190_v2  ;;  %v3307_v1 = vmax.f32 %v3293_v50, 0.0  ;;  %v3380_v2 = vpack.c.bf16 %v3304_v53, %v3297_v52  ;;  %v8296_v50 = vld [vmem:[%s11151_s7 + $0x348] ss:$16 sps:$4 sm:$0xff]   ;;  %v8301_v52 = vld [vmem:[%s11151_s7 + $0x364] ss:$16 sps:$4 sm:$0xff]  }
 0x296   : > { %v8304_v53 = vld [vmem:[%s11151_s7 + $0x36c] ss:$16 sps:$4 sm:$0xff]  }
 0x298   : > { %5600 = vmatpush1.bf16.msra.mxu0 %v8185_v4  ;;  %5772 = vmatpush1.bf16.msra.mxu1 %v8188_v26  ;;  %v8233_v4 = vld [vmem:[%s11151_s7 + $0x200] ss:$16 sps:$4 sm:$0xff]   ;;  %v8236_v26 = vld [vmem:[%s11151_s7 + $0x208] ss:$16 sps:$4 sm:$0xff]  }
 0x299   : > { %5601 = vmatprep.subr.bf16.mxu0 %v8193_v8  ;;  %5773 = vmatprep.subr.bf16.mxu1 %v8196_v9  ;;  %v8241_v8 = vld [vmem:[%s11151_s7 + $0x224] ss:$16 sps:$4 sm:$0xff]   ;;  %v8244_v9 = vld [vmem:[%s11151_s7 + $0x22c] ss:$16 sps:$4 sm:$0xff]  }
 0x29c   : > { %5602 = vmatpush1.bf16.msra.mxu0 %v8191_v10  ;;  %5774 = vmatpush1.bf16.msra.mxu1 %v8194_v11  ;;  %v3383_v10 = vpack.c.bf16 %v3307_v1, %v3300_v0  ;;  %v8239_v11 = vld [vmem:[%s11151_s7 + $0x220] ss:$16 sps:$4 sm:$0xff]   ;;  %v3182_v0 = vunpack.c.l.bf16 %v10408_v27  ;;  %v3189_v1 = vunpack.c.l.bf16 %v10411_v28  ;;  %v8313_v27 = vld [vmem:[%s11151_s7 + $0x3a4] ss:$16 sps:$4 sm:$0xff]   ;;  %v8316_v28 = vld [vmem:[%s11151_s7 + $0x3ac] ss:$16 sps:$4 sm:$0xff]  }
 0x29d   : > { %5603 = vmatprep.subr.bf16.mxu0 %v8199_v14  ;;  %5775 = vmatprep.subr.bf16.mxu1 %v8202_v15  ;;  %v8242_v14 = vld [vmem:[%s11151_s7 + $0x228] ss:$16 sps:$4 sm:$0xff]   ;;  %v8247_v15 = vld [vmem:[%s11151_s7 + $0x244] ss:$16 sps:$4 sm:$0xff]  }
 0x2a0   : > { %5604 = vmatpush1.bf16.msra.mxu0 %v8197_v16  ;;  %5776 = vmatpush1.bf16.msra.mxu1 %v8200_v55  ;;  %v8250_v16 = vld [vmem:[%s11151_s7 + $0x24c] ss:$16 sps:$4 sm:$0xff]   ;;  %v8245_v55 = vld [vmem:[%s11151_s7 + $0x240] ss:$16 sps:$4 sm:$0xff]  }
 0x2a1   : > { %5605 = vmatprep.subr.bf16.mxu0 %v8205_v18  ;;  %5777 = vmatprep.subr.bf16.mxu1 %v8208_v12  ;;  %v8248_v18 = vld [vmem:[%s11151_s7 + $0x248] ss:$16 sps:$4 sm:$0xff]   ;;  %v8253_v12 = vld [vmem:[%s11151_s7 + $0x264] ss:$16 sps:$4 sm:$0xff]  }
 0x2a4   : > { %5606 = vmatpush1.bf16.msra.mxu0 %v8203_v13  ;;  %5778 = vmatpush1.bf16.msra.mxu1 %v8206_v20  ;;  %v8256_v13 = vld [vmem:[%s11151_s7 + $0x26c] ss:$16 sps:$4 sm:$0xff]   ;;  %v8251_v20 = vld [vmem:[%s11151_s7 + $0x260] ss:$16 sps:$4 sm:$0xff]  }
 0x2a5   : > { %5607 = vmatprep.subr.bf16.mxu0 %v8211_v21  ;;  %5779 = vmatprep.subr.bf16.mxu1 %v8214_v22  ;;  %v8254_v21 = vld [vmem:[%s11151_s7 + $0x268] ss:$16 sps:$4 sm:$0xff]   ;;  %v8259_v22 = vld [vmem:[%s11151_s7 + $0x284] ss:$16 sps:$4 sm:$0xff]  }
 0x2a8   : > { %5608 = vmatpush1.bf16.msra.mxu0 %v8209_v29  ;;  %5780 = vmatpush1.bf16.msra.mxu1 %v8212_v30  ;;  %v8265_v29 = vld [vmem:[%s11151_s7 + $0x2a4] ss:$16 sps:$4 sm:$0xff]   ;;  %v8268_v30 = vld [vmem:[%s11151_s7 + $0x2ac] ss:$16 sps:$4 sm:$0xff]  }
 0x2a9   : > { %5609 = vmatprep.subr.bf16.mxu0 %v8217_v60  ;;  %5781 = vmatprep.subr.bf16.mxu1 %v8220_v56  ;;  %v8571_v60 = vmov 0   ;;  %v8263_v56 = vld [vmem:[%s11151_s7 + $0x2a0] ss:$16 sps:$4 sm:$0xff]  }
 0x2aa   : > { %7463 = vset.pattern.permute.xlu1 %v8571_v60  ;;  %7464 = vset.pattern.permute.xlu0 %v8571_v60 }
 0x2ac   : > { %5610 = vmatpush1.bf16.msra.mxu0 %v8215_v51  ;;  %5782 = vmatpush1.bf16.msra.mxu1 %v8218_v43  ;;  %v8280_v51 = vld [vmem:[%s11151_s7 + $0x2ec] ss:$16 sps:$4 sm:$0xff]   ;;  %v8275_v43 = vld [vmem:[%s11151_s7 + $0x2e0] ss:$16 sps:$4 sm:$0xff]  }
 0x2ad   : > { %5611 = vmatprep.subr.bf16.mxu0 %v8223_v59  ;;  %5783 = vmatprep.subr.bf16.mxu1 %v8226_v37  ;;  %v8278_v59 = vld [vmem:[%s11151_s7 + $0x2e8] ss:$16 sps:$4 sm:$0xff]   ;;  %v8283_v37 = vld [vmem:[%s11151_s7 + $0x304] ss:$16 sps:$4 sm:$0xff]  }
 0x2b0   : > { %5612 = vmatpush1.bf16.msra.mxu0 %v8221_v42  ;;  %5784 = vmatpush1.bf16.msra.mxu1 %v8224_v44  ;;  %v8287_v42 = vld [vmem:[%s11151_s7 + $0x320] ss:$16 sps:$4 sm:$0xff]   ;;  %v8290_v44 = vld [vmem:[%s11151_s7 + $0x328] ss:$16 sps:$4 sm:$0xff]  }
 0x2b1   : > { %5613 = vmatprep.subr.bf16.mxu0 %v8229_v45  ;;  %5785 = vmatprep.subr.bf16.mxu1 %v8232_v47  ;;  %v8295_v45 = vld [vmem:[%s11151_s7 + $0x344] ss:$16 sps:$4 sm:$0xff]   ;;  %v8298_v47 = vld [vmem:[%s11151_s7 + $0x34c] ss:$16 sps:$4 sm:$0xff]  }
 0x2b4   : > { %5614 = vmatpush1.bf16.msra.mxu0 %v8227_v54  ;;  %5786 = vmatpush1.bf16.msra.mxu1 %v8230_v19  ;;  %v8299_v54 = vld [vmem:[%s11151_s7 + $0x360] ss:$16 sps:$4 sm:$0xff]   ;;  %v8302_v19 = vld [vmem:[%s11151_s7 + $0x368] ss:$16 sps:$4 sm:$0xff]  }
 0x2b5   : > { %5626 = vmatprep.subr.bf16.mxu0 %v8235_v61  ;;  %5798 = vmatprep.subr.bf16.mxu1 %v8238_v62  ;;  %v8307_v61 = vld [vmem:[%s11151_s7 + $0x384] ss:$16 sps:$4 sm:$0xff]   ;;  %v8310_v62 = vld [vmem:[%s11151_s7 + $0x38c] ss:$16 sps:$4 sm:$0xff]  }
 0x2b7   : > { %5616 = vmatmul.mubr.bf16.vlgmr.msra.gmra.mrb[4].mxu0 %v3380_v2  ;;  %5788 = vmatmul.mubr.bf16.vlgmr.msra.gmra.mrb[4].mxu1 %v3380_v2  ;;  %v3207_v2 = vrot.slane %v10196_v17, %v9102_v34 }
 0x2b8   : > { %5627 = vmatpush1.bf16.msra.mxu0 %v8233_v4  ;;  %5799 = vmatpush1.bf16.msra.mxu1 %v8236_v26  ;;  %v10620_v4 = vld [vmem:[%s10179_s1 + $0x10] sm:$0xff] }
 0x2b9   : > { %5628 = vmatprep.subr.bf16.mxu0 %v8241_v8  ;;  %5800 = vmatprep.subr.bf16.mxu1 %v8244_v9  ;;  %v10623_v26 = vld [vmem:[%s10179_s1 + $0x2c] sm:$0xff]  ;;  %v8308_v9 = vld [vmem:[%s11151_s7 + $0x388] ss:$16 sps:$4 sm:$0xff]  }
 0x2ba   : > { %5658 = vmatprep.mubr.bf16.mxu0 %v3383_v10  ;;  %5830 = vmatprep.mubr.bf16.mxu1 %v3383_v10  ;;  %v8305_v8 = vld [vmem:[%s11151_s7 + $0x380] ss:$16 sps:$4 sm:$0xff]   ;;  %v3185_v10 = vunpack.c.h.bf16 %v10620_v4 }
 0x2bc   : > { %5629 = vmatpush1.bf16.msra.mxu0 %v8239_v11  ;;  %5801 = vmatpush1.bf16.msra.mxu1 %v8242_v14  ;;  %v3192_v11 = vunpack.c.h.bf16 %v10623_v26  ;;  %v3219_v14 = vrot.slane %v10196_v17, %v9165_v5 }
 0x2bd   : > { %5630 = vmatprep.subr.bf16.mxu0 %v8247_v15  ;;  %5802 = vmatprep.subr.bf16.mxu1 %v8250_v16  ;;  %v3233_v15 = vmul.f32 %v3207_v2, %v3182_v0  ;;  %v3240_v16 = vmul.f32 %v3207_v2, %v3189_v1  ;;  %v8358_v0 = vld [vmem:[%s11151_s7 + $0x48c] ss:$16 sps:$4 sm:$0xff]   ;;  %v8353_v1 = vld [vmem:[%s11151_s7 + $0x480] ss:$16 sps:$4 sm:$0xff]   ;;  %v8356_v2 = vld [vmem:[%s11151_s7 + $0x488] ss:$16 sps:$4 sm:$0xff]  }
 0x2c0   : > { %5631 = vmatpush1.bf16.msra.mxu0 %v8245_v55  ;;  %5803 = vmatpush1.bf16.msra.mxu1 %v8248_v18  ;;  %v3259_v55 = vrot.slane %v10217_v7, %v9102_v34  ;;  %v8311_v18 = vld [vmem:[%s11151_s7 + $0x3a0] ss:$16 sps:$4 sm:$0xff]  }
 0x2c1   : > { %5632 = vmatprep.subr.bf16.mxu0 %v8253_v12  ;;  %5804 = vmatprep.subr.bf16.mxu1 %v8256_v13  ;;  %v8314_v12 = vld [vmem:[%s11151_s7 + $0x3a8] ss:$16 sps:$4 sm:$0xff]   ;;  %v8319_v13 = vld [vmem:[%s11151_s7 + $0x3c4] ss:$16 sps:$4 sm:$0xff]  }
 0x2c4   : > { %5633 = vmatpush1.bf16.msra.mxu0 %v8251_v20  ;;  %5805 = vmatpush1.bf16.msra.mxu1 %v8254_v21  ;;  %v8322_v20 = vld [vmem:[%s11151_s7 + $0x3cc] ss:$16 sps:$4 sm:$0xff]   ;;  %v3236_v21 = vmul.f32 %v3219_v14, %v3185_v10  ;;  %v8367_v10 = vld [vmem:[%s11151_s7 + $0x4c4] ss:$16 sps:$4 sm:$0xff]  }
 0x2c5   : > { %5634 = vmatprep.subr.bf16.mxu0 %v8259_v22  ;;  %5806 = vmatprep.subr.bf16.mxu1 %v8262_v23  ;;  %v3243_v22 = vmul.f32 %v3219_v14, %v3192_v11  ;;  %v3271_v23 = vrot.slane %v10217_v7, %v9165_v5  ;;  %v8328_v5 = vld [vmem:[%s11151_s7 + $0x3ec] ss:$16 sps:$4 sm:$0xff]   ;;  %v8365_v14 = vld [vmem:[%s11151_s7 + $0x4c0] ss:$16 sps:$4 sm:$0xff]  }
 0x2c6   : > { %v8370_v11 = vld [vmem:[%s11151_s7 + $0x4cc] ss:$16 sps:$4 sm:$0xff]  }
 0x2c8   : > { %5635 = vmatpush1.bf16.msra.mxu0 %v8257_v24  ;;  %5807 = vmatpush1.bf16.msra.mxu1 %v8260_v25  ;;  %v3285_v24 = vadd.f32 %v3259_v55, %v3233_v15  ;;  %v3292_v25 = vadd.f32 %v3259_v55, %v3240_v16  ;;  %v8368_v15 = vld [vmem:[%s11151_s7 + $0x4c8] ss:$16 sps:$4 sm:$0xff]   ;;  %v8373_v16 = vld [vmem:[%s11151_s7 + $0x4e4] ss:$16 sps:$4 sm:$0xff]   ;;  %v8376_v55 = vld [vmem:[%s11151_s7 + $0x4ec] ss:$16 sps:$4 sm:$0xff]  }
 0x2c9   : > { %5636 = vmatprep.subr.bf16.mxu0 %v8265_v29  ;;  %5808 = vmatprep.subr.bf16.mxu1 %v8268_v30  ;;  %v8317_v29 = vld [vmem:[%s11151_s7 + $0x3c0] ss:$16 sps:$4 sm:$0xff]   ;;  %v8320_v30 = vld [vmem:[%s11151_s7 + $0x3c8] ss:$16 sps:$4 sm:$0xff]  }
 0x2cc   : > { %5637 = vmatpush1.bf16.msra.mxu0 %v8263_v56  ;;  %5809 = vmatpush1.bf16.msra.mxu1 %v8266_v31  ;;  %v8325_v56 = vld [vmem:[%s11151_s7 + $0x3e4] ss:$16 sps:$4 sm:$0xff]   ;;  %v3288_v31 = vadd.f32 %v3271_v23, %v3236_v21  ;;  %v8377_v21 = vld [vmem:[%s11151_s7 + $0x500] ss:$16 sps:$4 sm:$0xff]  }
 0x2cd   : > { %5638 = vmatprep.subr.bf16.mxu0 %v8271_v32  ;;  %5810 = vmatprep.subr.bf16.mxu1 %v8274_v33  ;;  %v3295_v32 = vadd.f32 %v3271_v23, %v3243_v22  ;;  %v3299_v33 = vmax.f32 %v3285_v24, 0.0  ;;  %v8380_v22 = vld [vmem:[%s11151_s7 + $0x508] ss:$16 sps:$4 sm:$0xff]   ;;  %v8385_v23 = vld [vmem:[%s11151_s7 + $0x524] ss:$16 sps:$4 sm:$0xff]  }
 0x2ce   : > { %v8388_v24 = vld [vmem:[%s11151_s7 + $0x52c] ss:$16 sps:$4 sm:$0xff]  }
 0x2d0   : > { %5639 = vmatpush1.bf16.msra.mxu0 %v8269_v35  ;;  %5811 = vmatpush1.bf16.msra.mxu1 %v8272_v36  ;;  %v3306_v35 = vmax.f32 %v3292_v25, 0.0  ;;  %v8323_v36 = vld [vmem:[%s11151_s7 + $0x3e0] ss:$16 sps:$4 sm:$0xff]  }
 0x2d1   : > { %5640 = vmatprep.subr.bf16.mxu0 %v8277_v63  ;;  %5812 = vmatprep.subr.bf16.mxu1 %v8280_v51  ;;  %v8326_v63 = vld [vmem:[%s11151_s7 + $0x3e8] ss:$16 sps:$4 sm:$0xff]   ;;  %v8331_v51 = vld [vmem:[%s11151_s7 + $0x404] ss:$16 sps:$4 sm:$0xff]   ;;  %v8383_v25 = vld [vmem:[%s11151_s7 + $0x520] ss:$16 sps:$4 sm:$0xff]  }
 0x2d4   : > { %5641 = vmatpush1.bf16.msra.mxu0 %v8275_v43  ;;  %5813 = vmatpush1.bf16.msra.mxu1 %v8278_v59  ;;  %v8334_v43 = vld [vmem:[%s11151_s7 + $0x40c] ss:$16 sps:$4 sm:$0xff]   ;;  %v3302_v59 = vmax.f32 %v3288_v31, 0.0  ;;  %v8392_v31 = vld [vmem:[%s11151_s7 + $0x548] ss:$16 sps:$4 sm:$0xff]  }
 0x2d5   : > { %5642 = vmatprep.subr.bf16.mxu0 %v8283_v37  ;;  %5814 = vmatprep.subr.bf16.mxu1 %v8286_v38  ;;  %v3309_v37 = vmax.f32 %v3295_v32, 0.0  ;;  %v3382_v38 = vpack.c.bf16 %v3306_v35, %v3299_v33  ;;  %v8397_v32 = vld [vmem:[%s11151_s7 + $0x564] ss:$16 sps:$4 sm:$0xff]   ;;  %v8400_v33 = vld [vmem:[%s11151_s7 + $0x56c] ss:$16 sps:$4 sm:$0xff]  }
 0x2d6   : > { %v8395_v35 = vld [vmem:[%s11151_s7 + $0x560] ss:$16 sps:$4 sm:$0xff]  }
 0x2d8   : > { %5643 = vmatpush1.bf16.msra.mxu0 %v8281_v39  ;;  %5815 = vmatpush1.bf16.msra.mxu1 %v8284_v40  ;;  %v8329_v39 = vld [vmem:[%s11151_s7 + $0x400] ss:$16 sps:$4 sm:$0xff]   ;;  %v8332_v40 = vld [vmem:[%s11151_s7 + $0x408] ss:$16 sps:$4 sm:$0xff]  }
 0x2d9   : > { %5644 = vmatprep.subr.bf16.mxu0 %v8289_v41  ;;  %5816 = vmatprep.subr.bf16.mxu1 %v8292_v3  ;;  %v8337_v41 = vld [vmem:[%s11151_s7 + $0x424] ss:$16 sps:$4 sm:$0xff]   ;;  %v8340_v3 = vld [vmem:[%s11151_s7 + $0x42c] ss:$16 sps:$4 sm:$0xff]  }
 0x2dc   : > { %5645 = vmatpush1.bf16.msra.mxu0 %v8287_v42  ;;  %5817 = vmatpush1.bf16.msra.mxu1 %v8290_v44  ;;  %v3385_v42 = vpack.c.bf16 %v3309_v37, %v3302_v59  ;;  %v8335_v44 = vld [vmem:[%s11151_s7 + $0x420] ss:$16 sps:$4 sm:$0xff]   ;;  %v3191_v59 = vunpack.c.l.bf16 %v10623_v26  ;;  %v3215_v37 = vrot.slane %v10196_v17, %v9312_v6  ;;  %v8412_v26 = vld [vmem:[%s11151_s7 + $0x5ac] ss:$16 sps:$4 sm:$0xff]  }
 0x2dd   : > { %5646 = vmatprep.subr.bf16.mxu0 %v8295_v45  ;;  %5818 = vmatprep.subr.bf16.mxu1 %v8298_v47  ;;  %v8338_v45 = vld [vmem:[%s11151_s7 + $0x428] ss:$16 sps:$4 sm:$0xff]   ;;  %v8343_v47 = vld [vmem:[%s11151_s7 + $0x444] ss:$16 sps:$4 sm:$0xff]  }
 0x2e0   : > { %5647 = vmatpush1.bf16.msra.mxu0 %v8293_v49  ;;  %5819 = vmatpush1.bf16.msra.mxu1 %v8296_v50  ;;  %v8346_v49 = vld [vmem:[%s11151_s7 + $0x44c] ss:$16 sps:$4 sm:$0xff]   ;;  %v8341_v50 = vld [vmem:[%s11151_s7 + $0x440] ss:$16 sps:$4 sm:$0xff]  }
 0x2e1   : > { %5648 = vmatprep.subr.bf16.mxu0 %v8301_v52  ;;  %5820 = vmatprep.subr.bf16.mxu1 %v8304_v53  ;;  %v8344_v52 = vld [vmem:[%s11151_s7 + $0x448] ss:$16 sps:$4 sm:$0xff]   ;;  %v8349_v53 = vld [vmem:[%s11151_s7 + $0x464] ss:$16 sps:$4 sm:$0xff]  }
 0x2e4   : > { %5649 = vmatpush1.bf16.msra.mxu0 %v8299_v54  ;;  %5821 = vmatpush1.bf16.msra.mxu1 %v8302_v19  ;;  %v8352_v54 = vld [vmem:[%s11151_s7 + $0x46c] ss:$16 sps:$4 sm:$0xff]   ;;  %v8347_v19 = vld [vmem:[%s11151_s7 + $0x460] ss:$16 sps:$4 sm:$0xff]  }
 0x2e5   : > { %5650 = vmatprep.subr.bf16.mxu0 %v8307_v61  ;;  %5822 = vmatprep.subr.bf16.mxu1 %v8310_v62  ;;  %v8350_v61 = vld [vmem:[%s11151_s7 + $0x468] ss:$16 sps:$4 sm:$0xff]   ;;  %v8355_v62 = vld [vmem:[%s11151_s7 + $0x484] ss:$16 sps:$4 sm:$0xff]  }
 0x2e8   : > { %5651 = vmatpush1.bf16.msra.mxu0 %v8305_v8  ;;  %5823 = vmatpush1.bf16.msra.mxu1 %v8308_v9  ;;  %v8361_v8 = vld [vmem:[%s11151_s7 + $0x4a4] ss:$16 sps:$4 sm:$0xff]   ;;  %v8364_v9 = vld [vmem:[%s11151_s7 + $0x4ac] ss:$16 sps:$4 sm:$0xff]  }
 0x2e9   : > { %5652 = vmatprep.subr.bf16.mxu0 %v8313_v27  ;;  %5824 = vmatprep.subr.bf16.mxu1 %v8316_v28  ;;  %v8359_v27 = vld [vmem:[%s11151_s7 + $0x4a0] ss:$16 sps:$4 sm:$0xff]   ;;  %v8362_v28 = vld [vmem:[%s11151_s7 + $0x4a8] ss:$16 sps:$4 sm:$0xff]  }
 0x2ec   : > { %5653 = vmatpush1.bf16.msra.mxu0 %v8311_v18  ;;  %5825 = vmatpush1.bf16.msra.mxu1 %v8314_v12  ;;  %v8371_v18 = vld [vmem:[%s11151_s7 + $0x4e0] ss:$16 sps:$4 sm:$0xff]   ;;  %v8374_v12 = vld [vmem:[%s11151_s7 + $0x4e8] ss:$16 sps:$4 sm:$0xff]  }
 0x2ed   : > { %5654 = vmatprep.subr.bf16.mxu0 %v8319_v13  ;;  %5826 = vmatprep.subr.bf16.mxu1 %v8322_v20  ;;  %v8379_v13 = vld [vmem:[%s11151_s7 + $0x504] ss:$16 sps:$4 sm:$0xff]   ;;  %v8382_v20 = vld [vmem:[%s11151_s7 + $0x50c] ss:$16 sps:$4 sm:$0xff]  }
 0x2f0   : > { %5655 = vmatpush1.bf16.msra.mxu0 %v8317_v29  ;;  %5827 = vmatpush1.bf16.msra.mxu1 %v8320_v30  ;;  %v8386_v29 = vld [vmem:[%s11151_s7 + $0x528] ss:$16 sps:$4 sm:$0xff]   ;;  %v8391_v30 = vld [vmem:[%s11151_s7 + $0x544] ss:$16 sps:$4 sm:$0xff]  }
 0x2f1   : > { %5656 = vmatprep.subr.bf16.mxu0 %v8325_v56  ;;  %5828 = vmatprep.subr.bf16.mxu1 %v8328_v5  ;;  %v8394_v56 = vld [vmem:[%s11151_s7 + $0x54c] ss:$16 sps:$4 sm:$0xff]   ;;  %v8389_v5 = vld [vmem:[%s11151_s7 + $0x540] ss:$16 sps:$4 sm:$0xff]  }
 0x2f4   : > { %5657 = vmatpush1.bf16.msra.mxu0 %v8323_v36  ;;  %5829 = vmatpush1.bf16.msra.mxu1 %v8326_v63  ;;  %v8398_v36 = vld [vmem:[%s11151_s7 + $0x568] ss:$16 sps:$4 sm:$0xff]   ;;  %v8403_v63 = vld [vmem:[%s11151_s7 + $0x584] ss:$16 sps:$4 sm:$0xff]  }
 0x2f5   : > { %5669 = vmatprep.subr.bf16.mxu0 %v8331_v51  ;;  %5841 = vmatprep.subr.bf16.mxu1 %v8334_v43  ;;  %v8406_v51 = vld [vmem:[%s11151_s7 + $0x58c] ss:$16 sps:$4 sm:$0xff]   ;;  %v3184_v43 = vunpack.c.l.bf16 %v10620_v4  ;;  %v8409_v4 = vld [vmem:[%s11151_s7 + $0x5a4] ss:$16 sps:$4 sm:$0xff]  }
 0x2f7   : > { %5659 = vmatmul.mubr.bf16.vlgmr.msra.gmra.mrb[4].mxu0 %v3382_v38  ;;  %5831 = vmatmul.mubr.bf16.vlgmr.msra.gmra.mrb[4].mxu1 %v3382_v38  ;;  %v8401_v38 = vld [vmem:[%s11151_s7 + $0x580] ss:$16 sps:$4 sm:$0xff]  }
 0x2f8   : > { %5670 = vmatpush1.bf16.msra.mxu0 %v8329_v39  ;;  %5842 = vmatpush1.bf16.msra.mxu1 %v8332_v40  ;;  %v8404_v39 = vld [vmem:[%s11151_s7 + $0x588] ss:$16 sps:$4 sm:$0xff]   ;;  %v3235_v40 = vmul.f32 %v3215_v37, %v3184_v43 }
 0x2f9   : > { %5671 = vmatprep.subr.bf16.mxu0 %v8337_v41  ;;  %5843 = vmatprep.subr.bf16.mxu1 %v8340_v3  ;;  %v3242_v41 = vmul.f32 %v3215_v37, %v3191_v59  ;;  %v3267_v3 = vrot.slane %v10217_v7, %v9312_v6  ;;  %v8418_v6 = vld [vmem:[%s11151_s7 + $0x5cc] ss:$16 sps:$4 sm:$0xff]  }
 0x2fa   : > { %5701 = vmatprep.mubr.bf16.mxu0 %v3385_v42  ;;  %5873 = vmatprep.mubr.bf16.mxu1 %v3385_v42  ;;  %v8407_v42 = vld [vmem:[%s11151_s7 + $0x5a0] ss:$16 sps:$4 sm:$0xff]  }
 0x2fc   : > { %5672 = vmatpush1.bf16.msra.mxu0 %v8335_v44  ;;  %5844 = vmatpush1.bf16.msra.mxu1 %v8338_v45  ;;  %v8410_v44 = vld [vmem:[%s11151_s7 + $0x5a8] ss:$16 sps:$4 sm:$0xff]   ;;  %v8415_v45 = vld [vmem:[%s11151_s7 + $0x5c4] ss:$16 sps:$4 sm:$0xff]  }
 0x2fd   : > { %5673 = vmatprep.subr.bf16.mxu0 %v8343_v47  ;;  %5845 = vmatprep.subr.bf16.mxu1 %v8346_v49  ;;  %v3287_v47 = vadd.f32 %v3267_v3, %v3235_v40  ;;  %v3294_v49 = vadd.f32 %v3267_v3, %v3242_v41 }
 0x300   : > { %5674 = vmatpush1.bf16.msra.mxu0 %v8341_v50  ;;  %5846 = vmatpush1.bf16.msra.mxu1 %v8344_v52  ;;  %v8413_v50 = vld [vmem:[%s11151_s7 + $0x5c0] ss:$16 sps:$4 sm:$0xff]   ;;  %v8416_v52 = vld [vmem:[%s11151_s7 + $0x5c8] ss:$16 sps:$4 sm:$0xff]  }
 0x301   : > { %5675 = vmatprep.subr.bf16.mxu0 %v8349_v53  ;;  %5847 = vmatprep.subr.bf16.mxu1 %v8352_v54  ;;  %v8421_v53 = vld [vmem:[%s11151_s7 + $0x5e4] ss:$16 sps:$4 sm:$0xff]   ;;  %v8424_v54 = vld [vmem:[%s11151_s7 + $0x5ec] ss:$16 sps:$4 sm:$0xff]  }
 0x304   : > { %5676 = vmatpush1.bf16.msra.mxu0 %v8347_v19  ;;  %5848 = vmatpush1.bf16.msra.mxu1 %v8350_v61  ;;  %v3301_v19 = vmax.f32 %v3287_v47, 0.0  ;;  %v3308_v61 = vmax.f32 %v3294_v49, 0.0 }
 0x305   : > { %5677 = vmatprep.subr.bf16.mxu0 %v8355_v62  ;;  %5849 = vmatprep.subr.bf16.mxu1 %v8358_v0  ;;  %v8419_v62 = vld [vmem:[%s11151_s7 + $0x5e0] ss:$16 sps:$4 sm:$0xff]   ;;  %v8422_v0 = vld [vmem:[%s11151_s7 + $0x5e8] ss:$16 sps:$4 sm:$0xff]  }
 0x308   : > { %5678 = vmatpush1.bf16.msra.mxu0 %v8353_v1  ;;  %5850 = vmatpush1.bf16.msra.mxu1 %v8356_v2  ;;  %v3175_v1 = vld [vmem:[%s10179_s1 + $0x18] ss:$28 sps:$4 sm:$0xff]  }
 0x309   : > { %5679 = vmatprep.subr.bf16.mxu0 %v8361_v8  ;;  %5851 = vmatprep.subr.bf16.mxu1 %v8364_v9  ;;  %v8427_v2 = vld [vmem:[%s11151_s7 + $0x604] ss:$16 sps:$4 sm:$0xff]   ;;  %v8430_v8 = vld [vmem:[%s11151_s7 + $0x60c] ss:$16 sps:$4 sm:$0xff]   ;;  %v3384_v9 = vpack.c.bf16 %v3308_v61, %v3301_v19 }
 0x30c   : > { %5680 = vmatpush1.bf16.msra.mxu0 %v8359_v27  ;;  %5852 = vmatpush1.bf16.msra.mxu1 %v8362_v28  ;;  %v3186_v27 = vunpack.c.l.bf16 %v3175_v1  ;;  %v3193_v28 = vunpack.c.h.bf16 %v3175_v1 }
 0x30d   : > { %5681 = vmatprep.subr.bf16.mxu0 %v8367_v10  ;;  %5853 = vmatprep.subr.bf16.mxu1 %v8370_v11  ;;  %v3223_v10 = vrot.slane %v10196_v17, %v9537_v46  ;;  %v8425_v11 = vld [vmem:[%s11151_s7 + $0x600] ss:$16 sps:$4 sm:$0xff]   ;;  %v8436_v17 = vld [vmem:[%s11151_s7 + $0x62c] ss:$16 sps:$4 sm:$0xff]  }
 0x310   : > { %5682 = vmatpush1.bf16.msra.mxu0 %v8365_v14  ;;  %5854 = vmatpush1.bf16.msra.mxu1 %v8368_v15  ;;  %v8428_v14 = vld [vmem:[%s11151_s7 + $0x608] ss:$16 sps:$4 sm:$0xff]   ;;  %v8433_v15 = vld [vmem:[%s11151_s7 + $0x624] ss:$16 sps:$4 sm:$0xff]  }
 0x311   : > { %5683 = vmatprep.subr.bf16.mxu0 %v8373_v16  ;;  %5855 = vmatprep.subr.bf16.mxu1 %v8376_v55  ;;  %v3237_v16 = vmul.f32 %v3223_v10, %v3186_v27  ;;  %v3244_v55 = vmul.f32 %v3223_v10, %v3193_v28  ;;  %v8449_v28 = vld [vmem:[%s11156_s12 + $0x40] sm:$0xff]  }
 0x312   : > { %v8450_v10 = vld [vmem:[%s11156_s12 + $0xc0] sm:$0xff]  }
 0x314   : > { %5684 = vmatpush1.bf16.msra.mxu0 %v8371_v18  ;;  %5856 = vmatpush1.bf16.msra.mxu1 %v8374_v12  ;;  %v3275_v18 = vrot.slane %v10217_v7, %v9537_v46  ;;  %v8431_v12 = vld [vmem:[%s11151_s7 + $0x620] ss:$16 sps:$4 sm:$0xff]   ;;  %v8442_v46 = vld [vmem:[%s11151_s7 + $0x64c] ss:$16 sps:$4 sm:$0xff]  }
 0x315   : > { %5685 = vmatprep.subr.bf16.mxu0 %v8379_v13  ;;  %5857 = vmatprep.subr.bf16.mxu1 %v8382_v20  ;;  %v8434_v13 = vld [vmem:[%s11151_s7 + $0x628] ss:$16 sps:$4 sm:$0xff]   ;;  %v8439_v20 = vld [vmem:[%s11151_s7 + $0x644] ss:$16 sps:$4 sm:$0xff]  }
 0x316   : > { %v3289_v7 = vadd.f32 %v3275_v18, %v3237_v16  ;;  %v8455_v16 = vld [vmem:[%s11156_s12 + $0x8] sm:$0xff]  }
 0x318   : > { %5686 = vmatpush1.bf16.msra.mxu0 %v8377_v21  ;;  %5858 = vmatpush1.bf16.msra.mxu1 %v8380_v22  ;;  %v3296_v21 = vadd.f32 %v3275_v18, %v3244_v55  ;;  %v8437_v22 = vld [vmem:[%s11151_s7 + $0x640] ss:$16 sps:$4 sm:$0xff]   ;;  %v8456_v55 = vld [vmem:[%s11156_s12 + $0x88] sm:$0xff]  }
 0x319   : > { %5687 = vmatprep.subr.bf16.mxu0 %v8385_v23  ;;  %5859 = vmatprep.subr.bf16.mxu1 %v8388_v24  ;;  %v8440_v23 = vld [vmem:[%s11151_s7 + $0x648] ss:$16 sps:$4 sm:$0xff]   ;;  %v8445_v24 = vld [vmem:[%s11151_s7 + $0x664] ss:$16 sps:$4 sm:$0xff]  }
 0x31a   : > { %v8457_v18 = vld [vmem:[%s11156_s12 + $0x50] sm:$0xff]  }
 0x31c   : > { %5688 = vmatpush1.bf16.msra.mxu0 %v8383_v25  ;;  %5860 = vmatpush1.bf16.msra.mxu1 %v8386_v29  ;;  %v3303_v25 = vmax.f32 %v3289_v7, 0.0  ;;  %v3310_v29 = vmax.f32 %v3296_v21, 0.0  ;;  %v8462_v7 = vld [vmem:[%s11156_s12 + $0xd8] sm:$0xff]  }
 0x31d   : > { %5689 = vmatprep.subr.bf16.mxu0 %v8391_v30  ;;  %5861 = vmatprep.subr.bf16.mxu1 %v8394_v56  ;;  %v8443_v30 = vld [vmem:[%s11151_s7 + $0x660] ss:$16 sps:$4 sm:$0xff]   ;;  %v8446_v56 = vld [vmem:[%s11151_s7 + $0x668] ss:$16 sps:$4 sm:$0xff]  }
 0x31e   : > { %v8463_v21 = vld [vmem:[%s11156_s12 + $0x18] sm:$0xff]  }
 0x320   : > { %5690 = vmatpush1.bf16.msra.mxu0 %v8389_v5  ;;  %5862 = vmatpush1.bf16.msra.mxu1 %v8392_v31  ;;  %v3386_v5 = vpack.c.bf16 %v3310_v29, %v3303_v25  ;;  %v5927_v31 = vld [vmem:[%s11153_s9] sm:$0xf]  ;;  %v8469_v29 = vld [vmem:[%s11156_s12 + $0x68] sm:$0xff]  }
 0x321   : > { %5691 = vmatprep.subr.bf16.mxu0 %v8397_v32  ;;  %5863 = vmatprep.subr.bf16.mxu1 %v8400_v33  ;;  %v5957_v32 = vld [vmem:[%s11154_s10] sm:$0xf]  ;;  %v5932_v33 = vrot.slane %v5927_v31, %v8884_v57  ;;  %v5944_v37 = vrot.slane %v5927_v31, %v9009_v58 }
 0x322   : > { %v5966_v59 = vrot.slane %v5957_v32, %v8860_v48  ;;  %v5970_v40 = vrot.slane %v5957_v32, %v9102_v34  ;;  %v8468_v25 = vld [vmem:[%s11156_s12 + $0xa0] sm:$0xff]  }
 0x324   : > { %5692 = vmatpush1.bf16.msra.mxu0 %v8395_v35  ;;  %5864 = vmatpush1.bf16.msra.mxu1 %v8398_v36  ;;  %v5940_v35 = vrot.slane %v5927_v31, %v9102_v34  ;;  %v5936_v36 = vrot.slane %v5927_v31, %v8860_v48  ;;  %v7242_v31 = vld [vmem:[#allocation2] ss:$0 sm:$0xff] }
 0x325   : > { %5693 = vmatprep.subr.bf16.mxu0 %v8403_v63  ;;  %5865 = vmatprep.subr.bf16.mxu1 %v8406_v51  ;;  %v5962_v63 = vrot.slane %v5957_v32, %v8884_v57 }
 0x328   : > { %5694 = vmatpush1.bf16.msra.mxu0 %v8401_v38  ;;  %5866 = vmatpush1.bf16.msra.mxu1 %v8404_v39 }
 0x329   : > { %5695 = vmatprep.subr.bf16.mxu0 %v8409_v4  ;;  %5867 = vmatprep.subr.bf16.mxu1 %v8412_v26 }
 0x32c   : > { %5696 = vmatpush1.bf16.msra.mxu0 %v8407_v42  ;;  %5868 = vmatpush1.bf16.msra.mxu1 %v8410_v44 }
 0x32d   : > { %5697 = vmatprep.subr.bf16.mxu0 %v8415_v45  ;;  %5869 = vmatprep.subr.bf16.mxu1 %v8418_v6  ;;  %v5974_v6 = vrot.slane %v5957_v32, %v9009_v58 }
 0x330   : > { %5698 = vmatpush1.bf16.msra.mxu0 %v8413_v50  ;;  %5870 = vmatpush1.bf16.msra.mxu1 %v8416_v52 }
 0x331   : > { %5699 = vmatprep.subr.bf16.mxu0 %v8421_v53  ;;  %5871 = vmatprep.subr.bf16.mxu1 %v8424_v54 }
 0x334   : > { %5700 = vmatpush1.bf16.msra.mxu0 %v8419_v62  ;;  %5872 = vmatpush1.bf16.msra.mxu1 %v8422_v0 }
 0x335   : > { %5712 = vmatprep.subr.bf16.mxu0 %v8427_v2  ;;  %5884 = vmatprep.subr.bf16.mxu1 %v8430_v8 }
 0x337   : > { %5702 = vmatmul.mubr.bf16.vlgmr.msra.gmra.mrb[4].mxu0 %v3384_v9  ;;  %5874 = vmatmul.mubr.bf16.vlgmr.msra.gmra.mrb[4].mxu1 %v3384_v9 }
 0x338   : > { %5713 = vmatpush1.bf16.msra.mxu0 %v8425_v11  ;;  %5885 = vmatpush1.bf16.msra.mxu1 %v8428_v14  ;;  %v8451_v11 = vld [vmem:[%s11156_s12] sm:$0xff]  }
 0x339   : > { %5714 = vmatprep.subr.bf16.mxu0 %v8433_v15  ;;  %5886 = vmatprep.subr.bf16.mxu1 %v8436_v17  ;;  %v8452_v14 = vld [vmem:[%s11156_s12 + $0x80] sm:$0xff]   ;;  %v8453_v15 = vld [vmem:[%s11156_s12 + $0x48] sm:$0xff]  }
 0x33a   : > { %5744 = vmatprep.mubr.bf16.mxu0 %v8571_v60  ;;  %5916 = vmatprep.mubr.bf16.mxu1 %v8571_v60  ;;  %v8448_v60 = vld [vmem:[%s11151_s7 + $0x66c] ss:$16 sps:$4 sm:$0xff]  }
 0x33b   : > { %v8454_v17 = vld [vmem:[%s11156_s12 + $0xc8] sm:$0xff]  }
 0x33c   : > { %5715 = vmatpush1.bf16.msra.mxu0 %v8431_v12  ;;  %5887 = vmatpush1.bf16.msra.mxu1 %v8434_v13  ;;  %v8458_v12 = vld [vmem:[%s11156_s12 + $0xd0] sm:$0xff]  }
 0x33d   : > { %5716 = vmatprep.subr.bf16.mxu0 %v8439_v20  ;;  %5888 = vmatprep.subr.bf16.mxu1 %v8442_v46  ;;  %v8459_v13 = vld [vmem:[%s11156_s12 + $0x10] sm:$0xff]   ;;  %v8461_v46 = vld [vmem:[%s11156_s12 + $0x58] sm:$0xff]  }
 0x33e   : > { %v8460_v20 = vld [vmem:[%s11156_s12 + $0x90] sm:$0xff]  }
 0x340   : > { %5717 = vmatpush1.bf16.msra.mxu0 %v8437_v22  ;;  %5889 = vmatpush1.bf16.msra.mxu1 %v8440_v23  ;;  %v8464_v22 = vld [vmem:[%s11156_s12 + $0x98] sm:$0xff]   ;;  %v8465_v23 = vld [vmem:[%s11156_s12 + $0x60] sm:$0xff]  }
 0x341   : > { %5718 = vmatprep.subr.bf16.mxu0 %v8445_v24  ;;  %5890 = vmatprep.subr.bf16.mxu1 %v8448_v60  ;;  %v8466_v24 = vld [vmem:[%s11156_s12 + $0xe0] sm:$0xff]  }
 0x342   : > { %v8467_v60 = vld [vmem:[%s11156_s12 + $0x20] sm:$0xff]  }
 0x344   : > { %5719 = vmatpush1.bf16.msra.mxu0 %v8443_v30  ;;  %5891 = vmatpush1.bf16.msra.mxu1 %v8446_v56  ;;  %v8470_v30 = vld [vmem:[%s11156_s12 + $0xe8] sm:$0xff]  }
 0x345   : > { %7280 = vmatprep.subr.bf16.mxu0 %v8449_v28  ;;  %7302 = vmatprep.subr.bf16.mxu1 %v8450_v10  ;;  %v8471_v56 = vld [vmem:[%s11156_s12 + $0x28] sm:$0xff]  }
 0x347   : > { %7240 = vmatmul.mubr.msk.bf16.vlgmr.msra.gmra.mrb[4].mxu0 %vm5579_vm0, %v3386_v5  ;;  %7241 = vmatmul.mubr.msk.bf16.vlgmr.msra.gmra.mrb[4].mxu1 %vm5579_vm0, %v3386_v5  ;;  %v8472_v5 = vld [vmem:[%s11156_s12 + $0xa8] sm:$0xff]  }
 0x348   : > { %7281 = vmatpush3.bf16.msra.mxu0 %v8451_v11  ;;  %7303 = vmatpush3.bf16.msra.mxu1 %v8452_v14 }
 0x349   : > { %7282 = vmatprep.subr.bf16.mxu0 %v8453_v15  ;;  %7304 = vmatprep.subr.bf16.mxu1 %v8454_v17 }
 0x34c   : > { %7283 = vmatpush3.bf16.msra.mxu0 %v8455_v16  ;;  %7305 = vmatpush3.bf16.msra.mxu1 %v8456_v55 }
 0x34d   : > { %7284 = vmatprep.subr.bf16.mxu0 %v8457_v18  ;;  %7306 = vmatprep.subr.bf16.mxu1 %v8458_v12 }
 0x350   : > { %7285 = vmatpush3.bf16.msra.mxu0 %v8459_v13  ;;  %7307 = vmatpush3.bf16.msra.mxu1 %v8460_v20 }
 0x351   : > { %7286 = vmatprep.subr.bf16.mxu0 %v8461_v46  ;;  %7308 = vmatprep.subr.bf16.mxu1 %v8462_v7 }
 0x354   : > { %7287 = vmatpush3.bf16.msra.mxu0 %v8463_v21  ;;  %7309 = vmatpush3.bf16.msra.mxu1 %v8464_v22 }
 0x355   : > { %7288 = vmatprep.subr.bf16.mxu0 %v8465_v23  ;;  %7310 = vmatprep.subr.bf16.mxu1 %v8466_v24 }
 0x358   : > { %7289 = vmatpush3.bf16.msra.mxu0 %v8467_v60  ;;  %7311 = vmatpush3.bf16.msra.mxu1 %v8468_v25 }
 0x359   : > { %7290 = vmatprep.subr.bf16.mxu0 %v8469_v29  ;;  %7312 = vmatprep.subr.bf16.mxu1 %v8470_v30 }
 0x35c   : > { %7291 = vmatpush3.bf16.msra.mxu0 %v8471_v56  ;;  %7313 = vmatpush3.bf16.msra.mxu1 %v8472_v5 }
 0x41a   : > { %v5746_v51 = vpop.f32.mrb[4].mxu0  ;;  %v5918_v43 = vpop.f32.mrb[4].mxu1 }
 0x41b   : > { %v10940_v38 = vadd.f32 %v5932_v33, %v5746_v51  ;;  %v5748_v39 = vpop.f32.mrb[5].mxu0  ;;  %v5920_v4 = vpop.f32.mrb[5].mxu1  ;;  %v10942_v26 = vadd.f32 %v5940_v35, %v5918_v43 }
 0x41c   : > { %v10945_v41 = vadd.f32 %v5936_v36, %v5748_v39  ;;  %v5750_v3 = vpop.f32.mrb[6].mxu0  ;;  %v5922_v42 = vpop.f32.mrb[6].mxu1  ;;  %v10952_v49 = vadd.f32 %v5944_v37, %v5920_v4 }
 0x41d   : > { %v5979_v57 = vmul.f32 %v5962_v63, %v10940_v38  ;;  %v10948_v44 = vadd.f32 %v5932_v33, %v5750_v3  ;;  %v5752_v45 = vpop.f32.mrb[7].mxu0  ;;  %v5924_v48 = vpop.f32.mrb[7].mxu1  ;;  %v10954_v50 = vadd.f32 %v5940_v35, %v5922_v42  ;;  %v5981_v53 = vmul.f32 %v5970_v40, %v10942_v26  ;;  %v8473_v42 = vld [vmem:[%s11156_s12 + $0x70] sm:$0xff]  }
 0x41e   : > { %v5980_v47 = vmul.f32 %v5966_v59, %v10945_v41  ;;  %v10956_v52 = vadd.f32 %v5936_v36, %v5752_v45  ;;  %v10961_v61 = vadd.f32 %v5944_v37, %v5924_v48  ;;  %v5982_v0 = vmul.f32 %v5974_v6, %v10952_v49  ;;  %v8475_v45 = vld [vmem:[%s11156_s12 + $0x30] sm:$0xff]   ;;  %7292 = vmatprep.subr.bf16.mxu0 %v8473_v42 }
 0x41f   : > { %v5983_v34 = vmul.f32 %v5962_v63, %v10948_v44  ;;  %v5985_v62 = vmul.f32 %v5970_v40, %v10954_v50  ;;  %v8476_v48 = vld [vmem:[%s11156_s12 + $0xb0] sm:$0xff]   ;;  %7293 = vmatpush3.bf16.msra.mxu0 %v8475_v45 }
 0x420   : > { %v5984_v54 = vmul.f32 %v5966_v59, %v10956_v52  ;;  %v5987_v19 = vadd.f32 %v5980_v47, %v5979_v57  ;;  %v5986_v9 = vmul.f32 %v5974_v6, %v10961_v61  ;;  %v8474_v57 = vld [vmem:[%s11156_s12 + $0xf0] sm:$0xff]   ;;  %v8477_v47 = vld [vmem:[%s11156_s12 + $0x78] sm:$0xff]  }
 0x421   : > { %7314 = vmatprep.subr.bf16.mxu1 %v8474_v57  ;;  %7294 = vmatprep.subr.bf16.mxu0 %v8477_v47 }
 0x422   : > { %v5992_v58 = vadd.f32 %v5984_v54, %v5983_v34  ;;  %v5988_v1 = vadd.f32 %v5987_v19, %v5981_v53  ;;  %7315 = vmatpush3.bf16.msra.mxu1 %v8476_v48  ;;  %v8478_v34 = vld [vmem:[%s11156_s12 + $0xf8] sm:$0xff]  }
 0x423   : > { %v8479_v53 = vld [vmem:[%s11156_s12 + $0x38] sm:$0xff]   ;;  %7316 = vmatprep.subr.bf16.mxu1 %v8478_v34 }
 0x424   : > { %v5989_v2 = vadd.f32 %v5988_v1, %v5982_v0  ;;  %v5993_v8 = vadd.f32 %v5992_v58, %v5985_v62  ;;  %v8480_v54 = vld [vmem:[%s11156_s12 + $0xb8] sm:$0xff]   ;;  %7295 = vmatpush3.bf16.msra.mxu0 %v8479_v53 }
 0x426   : > { %5990 = vadd.xlane.f32.xlu0 %v5989_v2  ;;  %v5994_v27 = vadd.f32 %v5993_v8, %v5986_v9  ;;  %7317 = vmatpush3.bf16.msra.mxu1 %v8480_v54 }
 0x42a   : > { %5995 = vadd.xlane.f32.xlu0 %v5994_v27 }
 0x4b3   : > { %v5991_v32 = vpop.xlane.xlu0 %5990 }
 0x4b4   : > { %v6004_v33 = vadd.f32 %v7242_v31, %v5991_v32 }
 0x4b6   : > { %v6006_v35 = vsub.f32 0.0, %v6004_v33 }
 0x4b7   : > { %v5996_v36 = vpop.xlane.xlu0 %5995 }
 0x4b8   : > { %v6008_v63 = vmul.f32 1.442695, %v6006_v35  ;;  %v6005_v51 = vadd.f32 %v7242_v31, %v5996_v36 }
 0x4ba   : > { %8481 = vpow2.f32 %v6008_v63  ;;  %v6007_v43 = vsub.f32 0.0, %v6005_v51 }
 0x4bc   : > { %v6010_v59 = vmul.f32 1.442695, %v6007_v43 }
 0x4be   : > { %8483 = vpow2.f32 %v6010_v59 }
 0x4c4   : > { %v8482_v37 = vpop.eup %8481 }
 0x4c5   : > { %v6012_v39 = vadd.f32 1.0, %v8482_v37 }
 0x4c7   : > { %8485 = vrcp.f32 %v6012_v39 }
 0x4c8   : > { %v8484_v4 = vpop.eup %8483 }
 0x4c9   : > { %v6013_v40 = vadd.f32 1.0, %v8484_v4 }
 0x4cb   : > { %8487 = vrcp.f32 %v6013_v40 }
 0x4d1   : > { %v8486_v3 = vpop.eup %8485 }
 0x4d2   : > { %6019 = vst.msk [vmem:[%s586_s17] sm:$0xff] %vm6018_vm1, %v8486_v3  ;;  %6023 = vperm.xlu1 %7463, %v8486_v3  }
 0x4d5   : > { %v8488_v6 = vpop.eup %8487 }
 0x4d6   : > { %6020 = vst.msk [vmem:[%s586_s17 + $0x8] sm:$0xff] %vm6018_vm1, %v8488_v6  ;;  %6028 = vperm.xlu1 %7463, %v8488_v6   ;;  %s554_s17 = sand.u32 1, %s8553_s21  }
 0x4d7   : > { %s11077_s19 = scalar_lea.vmem [#allocation3], %s554_s17  ;;  %s6424_s30 = scalar_lea.sflag [#allocation4], %s554_s17 }
 0x4d8   : > { %s6440_s16 = sshll.u32 %s11077_s19, 4  ;;  %s11095_s16 = int_to_ptr.vmem [resolvable:$true] %s6440_s16 }
 0x4d9   : > { %s8491_s1 = scalar_lea.vmem %s11095_s16, 16  ;;  %p8498_p1 = scmp.lt.s32.totalorder %s11095_s16, %s8496_s11 }
 0x4da   : > { %p8492_p12 = scmp.ne.s32.totalorder %s11095_s16, %s8491_s1  ;;  %p8499_p2 = scmp.lt.s32.totalorder %s8497_s18, %s8491_s1 }
 0x4dc   : > { %p8493_p13 = pnand %p8492_p12, %p8697_p4  ;;  %p8500_p3 = por %p8499_p2, %p8498_p1 }
 0x4de   : > { %p8494_p0 = pneg %p8493_p13 }
 0x4e0   : > { %p8501_p5 = pnand %p8500_p3, %p8494_p0 }
 0x551   : > { %v6024_v19 = vpop.permute.xlu1 %6023 }
 0x552   : > { %v6031_v62 = vmul.f32 %v6024_v19, %v10940_v38  ;;  %v6032_v58 = vmul.f32 %v6024_v19, %v10945_v41  ;;  %v6033_v0 = vmul.f32 %v6024_v19, %v10942_v26  ;;  %v6034_v1 = vmul.f32 %v6024_v19, %v10952_v49  ;;  %v7243_v49 = vld [vmem:[%s11157_s13] ss:$0 sm:$0xff] }
 0x553   : > { %v8572_v26 = vmov 0.0  }
 0x554   : > { %6403 = vst.msk [vmem:[%s11077_s19] sm:$0x1] %vm6402_vm2, %v8572_v26 }
 0x555   : > { %v6029_v2 = vpop.permute.xlu1 %6028 }
 0x556   : > { %v6035_v8 = vmul.f32 %v6029_v2, %v10948_v44  ;;  %v6036_v9 = vmul.f32 %v6029_v2, %v10956_v52  ;;  %v6037_v27 = vmul.f32 %v6029_v2, %v10954_v50  ;;  %v6038_v28 = vmul.f32 %v6029_v2, %v10961_v61 }
 0x558   : > { %v6039_v10 = vpack.c.bf16 %v6035_v8, %v6031_v62  ;;  %v6041_v11 = vpack.c.bf16 %v6037_v27, %v6033_v0  ;;  %v6040_v38 = vpack.c.bf16 %v6036_v9, %v6032_v58  ;;  %v6042_v14 = vpack.c.bf16 %v6038_v28, %v6034_v1 }
 0x55a   : > { %6338 = vmatprep.mubr.bf16.mxu0 %v6040_v38  ;;  %6379 = vmatprep.mubr.bf16.mxu1 %v6042_v14 }
 0x55b   : > { %6339 = vmatmul.mubr.bf16.vlgmr.msra.gmra.mrb[8].mxu0 %v6039_v10  ;;  %6380 = vmatmul.mubr.bf16.vlgmr.msra.gmra.mrb[8].mxu1 %v6041_v11  ;;  %v6404_v5 = vld [vmem:[%s11077_s19] sm:$0x1] }
 0x62e   : > { %v7296_v41 = vpop.f32.mrb[8].mxu0  ;;  %v7318_v44 = vpop.f32.mrb[8].mxu1 }
 0x62f   : > { %v7297_v50 = vpop.f32.mrb[9].mxu0  ;;  %v7319_v52 = vpop.f32.mrb[9].mxu1 }
 0x630   : > { %v7298_v61 = vadd.f32 %v7297_v50, %v7296_v41  ;;  %v7320_v15 = vadd.f32 %v7319_v52, %v7318_v44  ;;  %v7299_v17 = vpop.f32.mrb[10].mxu0  ;;  %v7321_v16 = vpop.f32.mrb[10].mxu1 }
 0x631   : > { %v7300_v55 = vpop.f32.mrb[11].mxu0  ;;  %v7322_v18 = vpop.f32.mrb[11].mxu1 }
 0x632   : > { %v6341_v12 = vadd.f32 %v7298_v61, %v7243_v49  ;;  %v7301_v13 = vadd.f32 %v7300_v55, %v7299_v17  ;;  %v7323_v20 = vadd.f32 %v7322_v18, %v7321_v16 }
 0x634   : > { %v6382_v46 = vadd.f32 %v7320_v15, %v6341_v12  ;;  %v6344_v7 = vadd.f32 %v7301_v13, %v7243_v49 }
 0x636   : > { %v6385_v21 = vadd.f32 %v7323_v20, %v6344_v7  ;;  %v6389_v22 = vsel %vm6388_vm3, %v6382_v46, 0.0 }
 0x638   : > { %v6390_v23 = vsel %vm6388_vm3, %v6385_v21, 0.0 }
 0x639   : > { %v6391_v24 = vadd.f32 %v6390_v23, %v6389_v22 }
 0x63b   : > { %v6392_v60 = vrot.slane %v6391_v24, 4 }
 0x63d   : > { %v6393_v25 = vadd.f32 %v6392_v60, %v6391_v24 }
 0x63f   : > { %v6394_v29 = vrot.slane %v6393_v25, 2 }
 0x641   : > { %v6395_v30 = vadd.f32 %v6394_v29, %v6393_v25 }
 0x643   : > { %v6396_v56 = vrot.slane %v6395_v30, 1 }
 0x645   : > { %v6397_v31 = vadd.f32 %v6396_v56, %v6395_v30 }
 0x647   : > { %v6405_v32 = vadd.f32 %v6404_v5, %v6397_v31 }
 0x649   : > { %6407 = vst.msk [vmem:[%s11077_s19] sm:$0x1] %vm6402_vm2, %v6405_v32 }
 0x650   : > { %v6411_v33 = vld [vmem:[%s11077_s19] sm:$0x1] }
 0x651   : > { %v6412_v35 = vmul.f32 0.0625, %v6411_v33 }
 0x653   : > { %6413 = vst.msk [vmem:[%s11077_s19] sm:$0x1] %vm6402_vm2, %v6412_v35 }
 0x654   : > { %8504 = shalt.err (!%p8501_p5)
}
 0x655   : > { %s8505_s17 = scalar_lea.hbm %s11093_s27, 16  ;;  %s8509_s20 = scalar_lea.hbm %s11159_s15, 32 }
 0x656   : > { %p8506_p6 = scmp.ne.s32.totalorder %s11093_s27, %s8505_s17  ;;  %p8510_p10 = scmp.lt.u32.totalorder %s11093_s27, %s11159_s15 }
 0x657   : > { %p8511_p11 = scmp.lt.u32.totalorder %s8509_s20, %s8505_s17  ;;  %p8513_p13 = scmp.lt.u32.totalorder %s8505_s17, %s11093_s27 }
 0x658   : > { %p8507_p7 = pnand %p8506_p6, %p8697_p4 }
 0x659   : > { %p8512_p12 = por %p8511_p11, %p8510_p10 }
 0x65a   : > { %p8508_p9 = pneg %p8507_p7 }
 0x65b   : > { %p8514_p0 = por %p8513_p13, %p8512_p12 }
 0x65d   : > { %p8515_p1 = pnand %p8514_p0, %p8508_p9 }
 0x65f   : > { %8518 = shalt.err (!%p8515_p1)
}
 0x660   : > { %7406 = dma.vmem_to_hbm [thread:$0]  (%p8697_p4), %s11095_s16, 16, %s11093_s27, %s6424_s30  }
 0x661 PF: > { %s11175_s28 = sld [smem:[#allocation6_spill]]  ;;  %p7412_p2 = scmp.ge.s32.totalorder %s8569_s25, 2 }
 0x663   : > { %p7409_p3 = pnand %p7412_p2, %p8704_p8 }
 0x667   : > { %s6464_s23 = sand.u32 1, %s11175_s28  }
 0x668   : > { %s6465_s11 = scalar_lea.sflag [#allocation4], %s6464_s23 }
 0x669   : > { %8544 = dma.done.wait (!%p7409_p3), %s6465_s11, 16  }
 0x66a   : > { %8546 = vsyncadd (!%p7409_p3), %s6465_s11, 4294967280  ;;  %s31_s25 = sadd.s32 1, %s8569_s25   ;;  %s11177_s18 = sld [smem:[#allocation7_spill]] }
 0x66b   : > { %p28_p5 = scmp.ge.s32.totalorder %s31_s25, 4   ;;  %s11178_s22 = sld [smem:[#allocation11_spill]] }
 0x66c   : > { %s11179_s23 = sld [smem:[#allocation8_spill]]  ;;  %s11180_s24 = sld [smem:[#allocation9_spill]] }
 0x66d   : > { %s11181_s20 = smov %s8553_s21  ;;  %30 = sbr.rel (!%p28_p5) target bundleno = 7 (0x7), region = 139 }
 0x670   : > { %s11182_s21 = smov %s11177_s18 }
 0x674   :  { %6469 = vsyncpa [#allocation4], 1 }
 0x675   :  { %6471 = vsyncpa [#allocation4 + $0x1], 1 }

</bundles_post_ra>
